<compile_context>
chip_gen: v7x
topology: tpu7x:2x2x1
jax: 0.10.0
libtpu: 0.0.40
codegen_flags: <defaults>
</compile_context>

<pallas_src>
import functools
import math

import jax
import jax.numpy as jnp
from jax import lax
from jax.experimental import pallas as pl
from jax.experimental.pallas import tpu as pltpu

LOG_2PI = math.log(2.0 * math.pi)


def _round_up(x, m):
    return ((x + m - 1) // m) * m


def _mixture_loglik_kernel(x_ref, wq_ref, wc_ref, b_ref, out_ref, acc_ref, *,
                           n_valid, tn):
    """One grid step: (tn, P) tile of X -> per-sample logsumexp -> vector accum."""
    i = pl.program_id(0)

    @pl.when(i == 0)
    def _init():
        acc_ref[...] = jnp.zeros_like(acc_ref)

    # (tn, P) tile -> (P, tn): one in-kernel transpose so both matmuls are
    # canonical MXU form and the softmax below is lane-dense (samples on lanes).
    xt = jnp.transpose(x_ref[...].astype(jnp.float32))                          # (P, tn)

    # inner[k, n] = sum_p Wq[k,p]*x[n,p]^2 + sum_p Wc[k,p]*x[n,p] + b[k]
    # with Wq = -0.5/var, Wc = mu/var,
    #      b  = log_pi - 0.5*(sum logvar + sum mu^2/var + P*log2pi)
    # (all precomputed once in the wrapper).
    quad = jnp.dot(wq_ref[...], xt * xt, preferred_element_type=jnp.float32)    # (K, tn)
    cross = jnp.dot(wc_ref[...], xt, preferred_element_type=jnp.float32)        # (K, tn)
    inner = quad + cross + b_ref[...]                                           # (K, tn)

    # logsumexp over mixture components (sublane axis), per sample (lane axis).
    m = jnp.max(inner, axis=0, keepdims=True)                                   # (1, tn)
    lse = m + jnp.log(jnp.sum(jnp.exp(inner - m), axis=0, keepdims=True))       # (1, tn)

    row_start = i * tn

    @pl.when(row_start + tn <= n_valid)       # full tile: plain vector accumulate
    def _full():
        acc_ref[...] += lse

    @pl.when(row_start + tn > n_valid)        # tail tile only: mask garbage rows
    def _tail():
        col = lax.broadcasted_iota(jnp.int32, (1, tn), 1)
        valid = (row_start + col) < n_valid
        # Mask applied to lse (a select), so NaN/Inf from OOB rows cannot leak.
        acc_ref[...] += jnp.where(valid, lse, 0.0)

    @pl.when(i == pl.num_programs(0) - 1)     # single cross-lane reduce + store
    def _finalize():
        out_ref[...] = jnp.sum(acc_ref[...], axis=1, keepdims=True)


def mixture_log_likelihood(X, pi, mu, log_var, *, tn=None):
    """Pallas wrapper reproducing TorchMixtureModel.forward semantics.

    X: (N, P) data, pi: (K,) un-normalized mixture weights,
    mu/log_var: (K, P) diagonal-Gaussian component parameters.
    """
    N, P = X.shape
    K = pi.shape[0]

    # ---- O(K*P) parameter glue, hoisted out of the grid loop (runs once) ----
    pi32 = pi.astype(jnp.float32)
    mu32 = mu.astype(jnp.float32)
    lv32 = log_var.astype(jnp.float32)
    log_pi = jax.nn.log_softmax(jnp.logaddexp(0.0, pi32), axis=0)[:, None]   # softplus -> log-softmax, (K,1)
    inv_var = jnp.exp(-lv32)                                                 # (K,P)
    wq = -0.5 * inv_var                                                      # (K,P)
    wc = mu32 * inv_var                                                      # (K,P)
    b = log_pi - 0.5 * (jnp.sum(lv32, axis=-1, keepdims=True)
                        + jnp.sum(mu32 * mu32 * inv_var, axis=-1, keepdims=True)
                        + P * LOG_2PI)                                       # (K,1)

    # ---- tile size: target ~2 MiB of X streamed per grid step (>= the
    # ~0.5-1 MiB needed to amortize fixed per-step overhead), multiple of 128
    # rows, never bigger than needed for small N. No wrapper pad / dtype cast:
    # the grid may overrun N; the tail is masked in-kernel. ----
    if tn is None:
        bytes_per_row = max(int(P) * X.dtype.itemsize, 1)
        tn = (2 * 1024 * 1024) // bytes_per_row
    tn = int(max(128, min(_round_up(int(tn), 128), _round_up(N, 128))))
    steps = -(-N // tn)   # cdiv; last tile may overrun N (masked in-kernel)

    kernel = functools.partial(_mixture_loglik_kernel, n_valid=N, tn=tn)

    out = pl.pallas_call(
        kernel,
        out_shape=jax.ShapeDtypeStruct((1, 1), jnp.float32),
        grid_spec=pltpu.PrefetchScalarGridSpec(
            num_scalar_prefetch=0,
            grid=(steps,),
            in_specs=[
                pl.BlockSpec((tn, P), lambda i: (i, 0)),   # streamed X tile
                pl.BlockSpec((K, P), lambda i: (0, 0)),    # wq (VMEM-resident)
                pl.BlockSpec((K, P), lambda i: (0, 0)),    # wc (VMEM-resident)
                pl.BlockSpec((K, 1), lambda i: (0, 0)),    # b  (VMEM-resident)
            ],
            out_specs=pl.BlockSpec((1, 1), lambda i: (0, 0)),
            scratch_shapes=[pltpu.VMEM((1, tn), jnp.float32)],   # vector accumulator
        ),
        compiler_params=pltpu.CompilerParams(
            dimension_semantics=("arbitrary",),
            vmem_limit_bytes=32 * 1024 * 1024),
    )(X, wq, wc, b)

    return out[0, 0]


def reference_log_likelihood(X, pi, mu, log_var):
    """Pure-JAX transliteration of the PyTorch forward pass."""
    P = X.shape[-1]
    sp = jnp.logaddexp(0.0, pi)                       # softplus
    log_pi = jax.nn.log_softmax(sp, axis=0)[:, None]  # (K, 1)
    diff = X[None, :, :] - mu[:, None, :]             # (K, N, P)
    inv_var = jnp.exp(-log_var)                       # (K, P)
    log_pdf = -0.5 * (jnp.sum(diff * diff * inv_var[:, None, :], axis=-1)
                      + jnp.sum(log_var, axis=-1, keepdims=True)
                      + P * LOG_2PI)                  # (K, N)
    inner = log_pi + log_pdf
    ll_i = jax.scipy.special.logsumexp(inner, axis=0)
    return jnp.sum(ll_i)


if __name__ == "__main__":
    # K mixture components, dist_dim=P (lane-aligned for the demo), N samples.
    K, P, N = 3, 128, 5000

    key = jax.random.PRNGKey(0)
    k_pi, k_mu, k_lv, k_x = jax.random.split(key, 4)

    pi = jax.random.uniform(k_pi, (K,), dtype=jnp.float32)               # un-normalized weights
    mu = 0.5 * jax.random.normal(k_mu, (K, P), dtype=jnp.float32)        # component means
    log_var = 0.1 * jax.random.normal(k_lv, (K, P), dtype=jnp.float32)   # component log-variances
    X = jax.random.normal(k_x, (N, P), dtype=jnp.float32)                # data: (N, dist_dim)

    ll_ref = jax.block_until_ready(reference_log_likelihood(X, pi, mu, log_var))

    # Small explicit tile: exercises multi-step accumulation + tail masking
    # (5000 rows -> 3 tiles of 2048, last tile overruns by 1144 masked rows).
    ll_small = jax.block_until_ready(mixture_log_likelihood(X, pi, mu, log_var, tn=2048))
    assert jnp.isfinite(ll_small)
    assert jnp.allclose(ll_small, ll_ref, rtol=1e-5, atol=1e-2), (ll_small, ll_ref)

    # Default (large-tile, ~2 MiB/step) path.
    ll_big = jax.block_until_ready(mixture_log_likelihood(X, pi, mu, log_var))
    assert jnp.isfinite(ll_big)
    assert jnp.allclose(ll_big, ll_ref, rtol=1e-5, atol=1e-2), (ll_big, ll_ref)

    print("KERNEL_OK")
</pallas_src>

<mosaic_0001>
module attributes {stable_mosaic.version = 11 : i64} {
  func.func @_mixture_loglik_kernel(%arg0: i32, %arg1: memref<2048x128xf32, #tpu.memory_space<vmem>>, %arg2: memref<3x128xf32, #tpu.memory_space<vmem>>, %arg3: memref<3x128xf32, #tpu.memory_space<vmem>>, %arg4: memref<3x1xf32, #tpu.memory_space<vmem>>, %arg5: memref<1x1xf32, #tpu.memory_space<vmem>>, %arg6: memref<1x2048xf32, #tpu.memory_space<vmem>>) attributes {dimension_semantics = [#tpu.dimension_semantics<arbitrary>], iteration_bounds = array<i64: 3>, scalar_prefetch = 0 : i64, scratch_operands = 1 : i64, tpu.core_type = #tpu.core_type<tc>, window_params = [{transform_indices = @transform_0, window_bounds = array<i64: 2048, 128>}, {pipeline_mode = #tpu.pipeline_mode<synchronous>, transform_indices = @transform_1, window_bounds = array<i64: 3, 128>}, {pipeline_mode = #tpu.pipeline_mode<synchronous>, transform_indices = @transform_2, window_bounds = array<i64: 3, 128>}, {pipeline_mode = #tpu.pipeline_mode<synchronous>, transform_indices = @transform_3, window_bounds = array<i64: 3, 1>}, {pipeline_mode = #tpu.pipeline_mode<synchronous>, transform_indices = @transform_4, window_bounds = array<i64: 1, 1>}]} {
    %c0_i32 = arith.constant 0 : i32
    %0 = arith.cmpi eq, %arg0, %c0_i32 : i32
    %1 = arith.extui %0 : i1 to i32
    %c0_i32_0 = arith.constant 0 : i32
    %2 = arith.cmpi ne, %1, %c0_i32_0 : i32
    scf.if %2 {
      %cst_17 = arith.constant 0.000000e+00 : f32
      %35 = vector.broadcast %cst_17 : f32 to vector<1x2048xf32>
      %c0_18 = arith.constant 0 : index
      %c0_19 = arith.constant 0 : index
      %36 = vector.load %arg6[%c0_18, %c0_19] : memref<1x2048xf32, #tpu.memory_space<vmem>>, vector<1x2048xf32>
      tpu.vector_store %arg6[%c0_18, %c0_19], %35 {strides = array<i32>} : memref<1x2048xf32, #tpu.memory_space<vmem>>, vector<1x2048xf32>,
    } else {
    }
    %c0 = arith.constant 0 : index
    %c0_1 = arith.constant 0 : index
    %3 = vector.load %arg1[%c0, %c0_1] : memref<2048x128xf32, #tpu.memory_space<vmem>>, vector<2048x128xf32>
    %4 = tpu.transpose %3, [1, 0] : vector<2048x128xf32> -> vector<128x2048xf32>
    %c0_2 = arith.constant 0 : index
    %c0_3 = arith.constant 0 : index
    %5 = vector.load %arg2[%c0_2, %c0_3] : memref<3x128xf32, #tpu.memory_space<vmem>>, vector<3x128xf32>
    %6 = arith.mulf %4, %4 : vector<128x2048xf32>
    %cst = arith.constant dense<0.000000e+00> : vector<3x2048xf32>
    %7 = tpu.matmul %5, %6, %cst {dimension_numbers = #tpu.dot_dimension_numbers<[1], [0], [0], [1], [0, 0, 1, 1], [], []>} : vector<3x128xf32>, vector<128x2048xf32>, vector<3x2048xf32> -> vector<3x2048xf32>
    %c0_4 = arith.constant 0 : index
    %c0_5 = arith.constant 0 : index
    %8 = vector.load %arg3[%c0_4, %c0_5] : memref<3x128xf32, #tpu.memory_space<vmem>>, vector<3x128xf32>
    %cst_6 = arith.constant dense<0.000000e+00> : vector<3x2048xf32>
    %9 = tpu.matmul %8, %4, %cst_6 {dimension_numbers = #tpu.dot_dimension_numbers<[1], [0], [0], [1], [0, 0, 1, 1], [], []>} : vector<3x128xf32>, vector<128x2048xf32>, vector<3x2048xf32> -> vector<3x2048xf32>
    %10 = arith.addf %7, %9 : vector<3x2048xf32>
    %c0_7 = arith.constant 0 : index
    %c0_8 = arith.constant 0 : index
    %11 = vector.load %arg4[%c0_7, %c0_8] : memref<3x1xf32, #tpu.memory_space<vmem>>, vector<3x1xf32>
    %12 = vector.broadcast %11 : vector<3x1xf32> to vector<3x2048xf32>
    %13 = arith.addf %10, %12 : vector<3x2048xf32>
    %cst_9 = arith.constant dense<0xFF800000> : vector<2048xf32>
    %14 = vector.multi_reduction <maximumf>, %13, %cst_9 [0] : vector<3x2048xf32> to vector<2048xf32>
    %15 = vector.shape_cast %14 : vector<2048xf32> to vector<1x2048xf32>
    %16 = vector.broadcast %15 : vector<1x2048xf32> to vector<3x2048xf32>
    %17 = arith.subf %13, %16 : vector<3x2048xf32>
    %18 = math.exp %17 : vector<3x2048xf32>
    %cst_10 = arith.constant dense<0.000000e+00> : vector<2048xf32>
    %19 = vector.multi_reduction <add>, %18, %cst_10 [0] : vector<3x2048xf32> to vector<2048xf32>
    %20 = vector.shape_cast %19 : vector<2048xf32> to vector<1x2048xf32>
    %21 = math.log %20 : vector<1x2048xf32>
    %22 = arith.addf %15, %21 : vector<1x2048xf32>
    %c2048_i32 = arith.constant 2048 : i32
    %23 = arith.muli %arg0, %c2048_i32 : i32
    %c2048_i32_11 = arith.constant 2048 : i32
    %24 = arith.addi %23, %c2048_i32_11 : i32
    %c5000_i32 = arith.constant 5000 : i32
    %25 = arith.cmpi sle, %24, %c5000_i32 : i32
    %26 = arith.extui %25 : i1 to i32
    %c0_i32_12 = arith.constant 0 : i32
    %27 = arith.cmpi ne, %26, %c0_i32_12 : i32
    scf.if %27 {
      %c0_17 = arith.constant 0 : index
      %c0_18 = arith.constant 0 : index
      %35 = vector.load %arg6[%c0_17, %c0_18] : memref<1x2048xf32, #tpu.memory_space<vmem>>, vector<1x2048xf32>
      %36 = arith.addf %35, %22 : vector<1x2048xf32>
      %c0_19 = arith.constant 0 : index
      %c0_20 = arith.constant 0 : index
      %37 = vector.load %arg6[%c0_19, %c0_20] : memref<1x2048xf32, #tpu.memory_space<vmem>>, vector<1x2048xf32>
      tpu.vector_store %arg6[%c0_19, %c0_20], %36 {strides = array<i32>} : memref<1x2048xf32, #tpu.memory_space<vmem>>, vector<1x2048xf32>,
    } else {
    }
    %c2048_i32_13 = arith.constant 2048 : i32
    %28 = arith.addi %23, %c2048_i32_13 : i32
    %c5000_i32_14 = arith.constant 5000 : i32
    %29 = arith.cmpi sgt, %28, %c5000_i32_14 : i32
    %30 = arith.extui %29 : i1 to i32
    %c0_i32_15 = arith.constant 0 : i32
    %31 = arith.cmpi ne, %30, %c0_i32_15 : i32
    scf.if %31 {
      %35 = tpu.iota {dimensions = array<i32: 1>} : vector<1x2048xi32>
      %36 = vector.broadcast %23 : i32 to vector<1x2048xi32>
      %37 = arith.addi %36, %35 : vector<1x2048xi32>
      %c5000_i32_17 = arith.constant 5000 : i32
      %38 = vector.broadcast %c5000_i32_17 : i32 to vector<1x2048xi32>
      %39 = arith.cmpi slt, %37, %38 : vector<1x2048xi32>
      %c0_18 = arith.constant 0 : index
      %c0_19 = arith.constant 0 : index
      %40 = vector.load %arg6[%c0_18, %c0_19] : memref<1x2048xf32, #tpu.memory_space<vmem>>, vector<1x2048xf32>
      %cst_20 = arith.constant 0.000000e+00 : f32
      %41 = vector.broadcast %cst_20 : f32 to vector<1x2048xf32>
      %42 = arith.select %39, %22, %41 : vector<1x2048xi1>, vector<1x2048xf32>
      %43 = arith.addf %40, %42 : vector<1x2048xf32>
      %c0_21 = arith.constant 0 : index
      %c0_22 = arith.constant 0 : index
      %44 = vector.load %arg6[%c0_21, %c0_22] : memref<1x2048xf32, #tpu.memory_space<vmem>>, vector<1x2048xf32>
      tpu.vector_store %arg6[%c0_21, %c0_22], %43 {strides = array<i32>} : memref<1x2048xf32, #tpu.memory_space<vmem>>, vector<1x2048xf32>,
    } else {
    }
    %c2_i32 = arith.constant 2 : i32
    %32 = arith.cmpi eq, %arg0, %c2_i32 : i32
    %33 = arith.extui %32 : i1 to i32
    %c0_i32_16 = arith.constant 0 : i32
    %34 = arith.cmpi ne, %33, %c0_i32_16 : i32
    scf.if %34 {
      %c0_17 = arith.constant 0 : index
      %c0_18 = arith.constant 0 : index
      %35 = vector.load %arg6[%c0_17, %c0_18] : memref<1x2048xf32, #tpu.memory_space<vmem>>, vector<1x2048xf32>
      %cst_19 = arith.constant dense<0.000000e+00> : vector<1xf32>
      %36 = vector.multi_reduction <add>, %35, %cst_19 [1] : vector<1x2048xf32> to vector<1xf32>
      %37 = vector.shape_cast %36 : vector<1xf32> to vector<1x1xf32>
      %c0_20 = arith.constant 0 : index
      %c0_21 = arith.constant 0 : index
      %38 = vector.load %arg5[%c0_20, %c0_21] : memref<1x1xf32, #tpu.memory_space<vmem>>, vector<1x1xf32>
      tpu.vector_store %arg5[%c0_20, %c0_21], %37 {strides = array<i32>} : memref<1x1xf32, #tpu.memory_space<vmem>>, vector<1x1xf32>,
    } else {
    }
    return
  }
  func.func @transform_0(%arg0: i32) -> (i32, i32) {
    %c0_i32 = arith.constant 0 : i32
    %c0_i32_0 = arith.constant 0 : i32
    return %arg0, %c0_i32 : i32, i32
  }
  func.func @transform_1(%arg0: i32) -> (i32, i32) {
    %c0_i32 = arith.constant 0 : i32
    %c0_i32_0 = arith.constant 0 : i32
    %c0_i32_1 = arith.constant 0 : i32
    return %c0_i32, %c0_i32_0 : i32, i32
  }
  func.func @transform_2(%arg0: i32) -> (i32, i32) {
    %c0_i32 = arith.constant 0 : i32
    %c0_i32_0 = arith.constant 0 : i32
    %c0_i32_1 = arith.constant 0 : i32
    return %c0_i32, %c0_i32_0 : i32, i32
  }
  func.func @transform_3(%arg0: i32) -> (i32, i32) {
    %c0_i32 = arith.constant 0 : i32
    %c0_i32_0 = arith.constant 0 : i32
    %c0_i32_1 = arith.constant 0 : i32
    return %c0_i32, %c0_i32_0 : i32, i32
  }
  func.func @transform_4(%arg0: i32) -> (i32, i32) {
    %c0_i32 = arith.constant 0 : i32
    %c0_i32_0 = arith.constant 0 : i32
    %c0_i32_1 = arith.constant 0 : i32
    return %c0_i32, %c0_i32_0 : i32, i32
  }
}

</mosaic_0001>

<bundles_post_ra>
// kernel: tpu_custom_call.1
= control target key start
LH: loop header
LB: loop body
LE: loop exit
PB: predicated region body
PF: predicated region fallthrough
CT: control target
= control target key end

     0   :  { %9 = vsyncpa [#allocation4], 0  ;;  %s6571_s0 = inlined_call_operand.hbm [shape: f32[5000,128], index: 0, kind: input, shape index: {}]   ;;  %s6572_s1 = inlined_call_operand.hbm [shape: f32[3,128], index: 1, kind: input, shape index: {}]   ;;  %s6573_s2 = inlined_call_operand.hbm [shape: f32[3,128], index: 2, kind: input, shape index: {}]   ;;  %s6574_s3 = inlined_call_operand.vmem [shape: f32[3,1], index: 3, kind: input, shape index: {}]   ;;  %s6575_s4 = inlined_call_operand.hbm [shape: f32[1,1], index: 4, kind: output, shape index: {}]  }
   0x1   :  { %11 = vsyncpa [#allocation4 + $0x1], 0 }
   0x2   :  { %12 = vsyncpa [#allocation7], 0 }
   0x3   :  { %13 = vsyncpa [#allocation5], 0  ;;  %s4149_s15 = smov 0   ;;  %s4151_s16 = smov 0  }
   0x4   :  { %s4153_s17 = smov 0   ;;  %s4155_s18 = smov 0  }
   0x5 LB: > { %s4168_s19 = sadd.s32 4294967295, %s4111_s18   ;;  %s4171_s20 = sadd.s32 1, %s4111_s18   ;;  %s4111_s18 = sphi %s4155_s18, %s7332_s18   ;;  %s4107_s17 = sphi %s4153_s17, %s7331_s17   ;;  %s4103_s16 = sphi %s4151_s16, %s7330_s16   ;;  %s4099_s15 = sphi %s4149_s15, %s7329_s15  }
   0x6   : > { %s23_s21 = ssub.s32 %s4111_s18, %s4171_s20  ;;  %s26_s22 = sadd.s32 1, %s4107_s17 }
   0x7   : > { %p24_p0 = scmp.eq.s32.totalorder %s23_s21, 0  ;;  %p33_p1 = scmp.ne.s32.totalorder %s4107_s17, %s4103_s16 }
   0x8   : > { %p34_p2 = scmp.eq.s32.totalorder %s4111_s18, 0  ;;  %p39_p3 = scmp.ne.s32.totalorder %s4103_s16, %s4099_s15 }
   0x9   : > { %s4181_s23 = scalar_select %p24_p0, %s4107_s17, %s26_s22  }
   0xa   : > { %p4183_p4 = por %p34_p2, %p33_p1  ;;  %p6576_p5 = scmp.eq.s32.totalorder %s4168_s19, 0 }
   0xb   : > { %p3272_p6 = scmp.ge.s32.totalorder %s4111_s18, 1  ;;  %p134_p7 = scmp.lt.s32.totalorder %s4111_s18, 4 }
   0xc   : > { %s6786_s24 = scalar_select %p4183_p4, 1, 0 }
   0xd   : > { %p4192_p8 = por %p6576_p5, %p39_p3  ;;  %p4197_p10 = pnand %p3272_p6, %p134_p7 }
   0xe   : > { %s4113_s27 = smov [#allocation6]   ;;  %s4114_s29 = smov [#allocation8]  }
   0xf   : > { %s6787_s25 = scalar_select %p4192_p8, 1, 0 }
  0x10   : > { %s6788_s26 = scalar_select %p4197_p10, 1, 0 }
  0x11   : > { %s147_s28 = sshll.u32 %s4113_s27, 4  ;;  %p3838_p11 = pneg %p4197_p10  ;;  %s148_s28 = int_to_ptr.vmem [resolvable:$true] %s147_s28 }
  0x12   : > { %s158_s30 = sshll.u32 %s4114_s29, 4  ;;  %s3959_s8 = scalar_lea.hbm %s6572_s1, 64  ;;  %s4209_s30 = int_to_ptr.vmem [resolvable:$true] %s158_s30 }
  0x13   : > { %p4205_p12 = pnand %p3838_p11, %p6576_p5  ;;  %p3960_p13 = scmp.ne.s32.totalorder %s6572_s1, %s3959_s8 }
  0x14   : > { %p3966_p3 = scmp.lt.u32.totalorder %s3959_s8, %s6572_s1 }
  0x15   : > { %p3961_p0 = pneg %p4205_p12 }
  0x17   : > { %p3962_p1 = pnand %p3961_p0, %p3960_p13 }
  0x19   : > { %p3963_p2 = pneg %p3962_p1 }
  0x1b   : > { %p3968_p6 = pnand %p3966_p3, %p3963_p2 }
  0x1d   : > { %3971 = shalt.err (!%p3968_p6)
}
  0x1e   : > { %s3972_s13 = scalar_lea.vmem %s148_s28, 64  ;;  %p3980_p5 = scmp.lt.s32.totalorder %s148_s28, %s148_s28 }
  0x1f   : > { %p3973_p7 = scmp.ne.s32.totalorder %s148_s28, %s3972_s13  ;;  %p3981_p8 = scmp.lt.s32.totalorder %s3972_s13, %s3972_s13 }
  0x21   : > { %p3975_p11 = pnand %p3973_p7, %p3961_p0  ;;  %p3982_p10 = por %p3981_p8, %p3980_p5 }
  0x23   : > { %p3976_p9 = pneg %p3975_p11 }
  0x25   : > { %p3983_p4 = pnand %p3982_p10, %p3976_p9 }
  0x27   : > { %3986 = shalt.err (!%p3983_p4)
}
  0x28   : > { %3841 = dma.hbm_to_vmem [thread:$0]  (!%p4205_p12), %s6572_s1, 64, %s148_s28, [#allocation7]  }
  0x29   : > { %s3987_s27 = scalar_lea.hbm %s6573_s2, 64 }
  0x2a   : > { %p3988_p13 = scmp.ne.s32.totalorder %s6573_s2, %s3987_s27  ;;  %p3994_p4 = scmp.lt.u32.totalorder %s3987_s27, %s6573_s2 }
  0x2c   : > { %p3990_p5 = pnand %p3988_p13, %p3961_p0 }
  0x2e   : > { %p3991_p8 = pneg %p3990_p5 }
  0x30   : > { %p3996_p9 = pnand %p3994_p4, %p3991_p8 }
  0x32   : > { %3999 = shalt.err (!%p3996_p9)
}
  0x33   : > { %s4000_s28 = scalar_lea.vmem %s4209_s30, 64  ;;  %p4008_p3 = scmp.lt.s32.totalorder %s4209_s30, %s4209_s30 }
  0x34   : > { %p4001_p10 = scmp.ne.s32.totalorder %s4209_s30, %s4000_s28  ;;  %p4009_p6 = scmp.lt.s32.totalorder %s4000_s28, %s4000_s28 }
  0x36   : > { %p4003_p1 = pnand %p4001_p10, %p3961_p0  ;;  %p4010_p7 = por %p4009_p6, %p4008_p3 }
  0x38   : > { %p4004_p2 = pneg %p4003_p1 }
  0x3a   : > { %p4011_p11 = pnand %p4010_p7, %p4004_p2 }
  0x3c   : > { %4014 = shalt.err (!%p4011_p11)
}
  0x3d   : > { %3844 = dma.hbm_to_vmem [thread:$0]  (!%p4205_p12), %s6573_s2, 64, %s4209_s30, [#allocation7]  }
  0x3e   : > { %p3275_p13 = scmp.ge.s32.totalorder %s4111_s18, 3 }
  0x3f   : > { %p6790_p5 = scmp.ne.s32.totalorder (!%p3275_p13), %s6786_s24, 0 }
  0x40   : > { %168 = sbr.rel (%p3275_p13) target bundleno = 106 (0x6a), region = 28 }
  0x47   : > { %171 = sbr.rel (!%p6790_p5) target bundleno = 106 (0x6a), region = 32  ;;  %s172_s11 = sand.u32 (%p6790_p5), 1, %s4107_s17  }
  0x48   : > { %s3277_s12 = sshll.u32 (%p6790_p5), %s4111_s18, 8  ;;  %s3276_s13 = sshll.u32 (%p6790_p5), %s172_s11, 11 }
  0x49   : > { %s178_s14 = ssub.s32 (%p6790_p5), 625, %s3277_s12  ;;  %s4266_s21 = scalar_lea.sflag (%p6790_p5), [#allocation4], %s172_s11 }
  0x4a   : > { %p179_p0 = scmp.lt.s32.totalorder (%p6790_p5), %s178_s14, 256  ;;  %s176_s30 = scalar_lea.vmem (%p6790_p5), [#allocation3], %s3276_s13 }
  0x4e   : > { %s7334_s14 = smov (!%p179_p0, %s178_s14), 256 }
  0x4f   : > { %s4263_s5 = sshll.u32 %s7334_s14, 7 }
  0x50   : > { %s183_s15 = ssub.s32 32768, %s4263_s5 }
  0x51   : > { %184 = vsyncadd %s4266_s21, %s183_s15  ;;  %p3279_p12 = scmp.ne.s32.totalorder %s4263_s5, 0  ;;  %s3296_s24 = sshll.u32 %s4111_s18, 15 }
  0x52   : > { %s4274_s29 = scalar_lea.hbm %s6571_s0, %s3296_s24  ;;  %s189_s6 = sshll.u32 %s176_s30, 4  ;;  %s4276_s6 = int_to_ptr.vmem [resolvable:$true] %s189_s6 }
  0x53   : > { %s4015_s7 = scalar_lea.hbm %s4274_s29, %s4263_s5  ;;  %s4019_s18 = scalar_lea.hbm %s6571_s0, 80000 }
  0x54   : > { %p4016_p8 = scmp.ne.s32.totalorder %s4274_s29, %s4015_s7  ;;  %p4020_p10 = scmp.lt.u32.totalorder %s4274_s29, %s6571_s0 }
  0x55   : > { %p4021_p1 = scmp.lt.u32.totalorder %s4019_s18, %s4015_s7  ;;  %p4023_p3 = scmp.lt.u32.totalorder %s4015_s7, %s4274_s29 }
  0x56   : > { %p4017_p4 = pnand %p4016_p8, %p3279_p12 }
  0x57   : > { %p4022_p2 = por %p4021_p1, %p4020_p10 }
  0x58   : > { %p4018_p9 = pneg %p4017_p4 }
  0x59   : > { %p4024_p6 = por %p4023_p3, %p4022_p2 }
  0x5b   : > { %p4025_p7 = pnand %p4024_p6, %p4018_p9 }
  0x5d   : > { %4028 = shalt.err (!%p4025_p7)
}
  0x5e   : > { %s4029_s11 = scalar_lea.vmem %s4276_s6, %s4263_s5  ;;  %s4115_s12 = smov [#allocation3]  }
  0x5f   : > { %p4030_p11 = scmp.ne.s32.totalorder %s4276_s6, %s4029_s11  ;;  %s4033_s13 = sshll.u32 %s4115_s12, 4  ;;  %s4034_s13 = int_to_ptr.vmem [resolvable:$false] %s4033_s13 }
  0x60   : > { %s4035_s14 = scalar_lea.vmem %s4034_s13, 65536  ;;  %p4036_p0 = scmp.lt.s32.totalorder %s4276_s6, %s4034_s13 }
  0x61   : > { %p4031_p13 = pnand %p4030_p11, %p3279_p12  ;;  %p4037_p8 = scmp.lt.s32.totalorder %s4035_s14, %s4029_s11 }
  0x63   : > { %p4032_p5 = pneg %p4031_p13  ;;  %p4038_p4 = por %p4037_p8, %p4036_p0 }
  0x65   : > { %p4039_p10 = pnand %p4038_p4, %p4032_p5 }
  0x67   : > { %4042 = shalt.err (!%p4039_p10)
}
  0x68   : > { %s4116_s15 = smov 128   ;;  %s4117_s30 = smov 8  }
  0x69   : > { %195 = dma.hbm_to_vmem [thread:$0]  (%p3279_p12), %s4274_s29, %s4263_s5, %s4276_s6, %s4266_s21, %s4116_s15, %s4116_s15, %s4117_s30  }
  0x6a PF: > { %p6791_p9 = scmp.ne.s32.totalorder %s6788_s26, 0 }
  0x6c   : > { %201 = sbr.rel (%p6791_p9) target bundleno = 1437 (0x59d), region = 36 }
  0x73   : > { %s203_s24 = sand.u32 1, %s4103_s16   ;;  %p6792_p1 = scmp.ne.s32.totalorder %s6787_s25, 0 }
  0x74   : > { %s3284_s22 = sshll.u32 %s203_s24, 11  ;;  %s204_s27 = scalar_lea.sflag [#allocation4], %s203_s24 }
  0x75   : > { %s4306_s7 = scalar_lea.vmem [#allocation3], %s3284_s22 }
  0x76   : > { %4086 = dma.done.wait (%p6792_p1), %s204_s27, 32768  }
  0x77   : > { %4088 = vsyncadd (%p6792_p1), %s204_s27, 4294934528  ;;  %p6793_p2 = scmp.eq.s32.totalorder %s4168_s19, 0 }
  0x79   : > { %4090 = dma.done.wait (%p6793_p2), [#allocation7], 128   ;;  %p6794_p12 = pmov %p6793_p2 }
  0x7a   : > { %p6795_p3 = scmp.ne.s32.totalorder %s4168_s19, 0 }
  0x7b   : > { %4092 = vsyncadd (%p6794_p12), [#allocation7], 4294967168  ;;  %v4118_v0 = vmov (!%p6795_p3), 0.0  }
  0x7c   : > { %243 = sbr.rel (%p6795_p3) target bundleno = 131 (0x83), region = 52  ;;  %244 = vst [vmem:[#allocation2] sm:$0xff] (!%p6795_p3), %v4118_v0  ;;  %245 = vst [vmem:[#allocation2 + $0x8] sm:$0xff] (!%p6795_p3), %v4118_v0 }
  0x83 PF: > { %v294_v1 = vld [vmem:[%s4306_s7 + $0x180] sm:$0xff]  ;;  %v295_v3 = vld [vmem:[%s4306_s7 + $0x188] sm:$0xff]  ;;  %v296_v5 = vld [vmem:[%s4306_s7 + $0x190] sm:$0xff]  ;;  %vm2430_vm0 = vcmask 1042432   ;;  %s3288_s5 = sshll.u32 %s4168_s19, 11 }
  0x84   : > { %v262_v2 = vld [vmem:[%s4306_s7 + $0x80] sm:$0xff]  ;;  %598 = vxpose.xlu1.b32.start [1/16] %v294_v1, 128  ;;  %v263_v4 = vld [vmem:[%s4306_s7 + $0x88] sm:$0xff]  ;;  %v264_v6 = vld [vmem:[%s4306_s7 + $0x90] sm:$0xff]  ;;  %s6345_s21 = sadd.s32 2048, %s3288_s5 }
  0x85   : > { %534 = vxpose.xlu0.b32.start [1/16] %v262_v2, 128  ;;  %v297_v7 = vld [vmem:[%s4306_s7 + $0x198] sm:$0xff]  ;;  %v298_v9 = vld [vmem:[%s4306_s7 + $0x1a0] sm:$0xff]  ;;  %v299_v11 = vld [vmem:[%s4306_s7 + $0x1a8] sm:$0xff]  ;;  %p3289_p6 = scmp.gt.s32.totalorder %s6345_s21, 5000 }
  0x86   : > { %v265_v8 = vld [vmem:[%s4306_s7 + $0x98] sm:$0xff]  ;;  %v266_v10 = vld [vmem:[%s4306_s7 + $0xa0] sm:$0xff]  ;;  %v267_v12 = vld [vmem:[%s4306_s7 + $0xa8] sm:$0xff] }
  0x87   : > { %v300_v13 = vld [vmem:[%s4306_s7 + $0x1b0] sm:$0xff]  ;;  %v301_v15 = vld [vmem:[%s4306_s7 + $0x1b8] sm:$0xff]  ;;  %v302_v17 = vld [vmem:[%s4306_s7 + $0x1c0] sm:$0xff] }
  0x88   : > { %599 = vxpose.xlu1.b32.cont [2/16] %v295_v3, 128  ;;  %v268_v14 = vld [vmem:[%s4306_s7 + $0xb0] sm:$0xff]  ;;  %v269_v16 = vld [vmem:[%s4306_s7 + $0xb8] sm:$0xff]  ;;  %v270_v18 = vld [vmem:[%s4306_s7 + $0xc0] sm:$0xff] }
  0x89   : > { %535 = vxpose.xlu0.b32.cont [2/16] %v263_v4, 128  ;;  %v303_v19 = vld [vmem:[%s4306_s7 + $0x1c8] sm:$0xff]  ;;  %v304_v21 = vld [vmem:[%s4306_s7 + $0x1d0] sm:$0xff]  ;;  %v305_v23 = vld [vmem:[%s4306_s7 + $0x1d8] sm:$0xff] }
  0x8a   : > { %v271_v20 = vld [vmem:[%s4306_s7 + $0xc8] sm:$0xff]  ;;  %v272_v22 = vld [vmem:[%s4306_s7 + $0xd0] sm:$0xff]  ;;  %v273_v24 = vld [vmem:[%s4306_s7 + $0xd8] sm:$0xff] }
  0x8b   : > { %v306_v25 = vld [vmem:[%s4306_s7 + $0x1e0] sm:$0xff]  ;;  %v307_v27 = vld [vmem:[%s4306_s7 + $0x1e8] sm:$0xff]  ;;  %v308_v29 = vld [vmem:[%s4306_s7 + $0x1f0] sm:$0xff] }
  0x8c   : > { %600 = vxpose.xlu1.b32.cont [3/16] %v296_v5, 128  ;;  %v274_v26 = vld [vmem:[%s4306_s7 + $0xe0] sm:$0xff]  ;;  %v275_v28 = vld [vmem:[%s4306_s7 + $0xe8] sm:$0xff]  ;;  %v276_v30 = vld [vmem:[%s4306_s7 + $0xf0] sm:$0xff] }
  0x8d   : > { %536 = vxpose.xlu0.b32.cont [3/16] %v264_v6, 128  ;;  %v309_v31 = vld [vmem:[%s4306_s7 + $0x1f8] sm:$0xff]  ;;  %v278_v33 = vld [vmem:[%s4306_s7 + $0x100] sm:$0xff]  ;;  %v279_v35 = vld [vmem:[%s4306_s7 + $0x108] sm:$0xff] }
  0x8e   : > { %v277_v32 = vld [vmem:[%s4306_s7 + $0xf8] sm:$0xff]  ;;  %v246_v34 = vld [vmem:[%s4306_s7] sm:$0xff]  ;;  %v247_v36 = vld [vmem:[%s4306_s7 + $0x8] sm:$0xff] }
  0x8f   : > { %v280_v37 = vld [vmem:[%s4306_s7 + $0x110] sm:$0xff]  ;;  %v281_v39 = vld [vmem:[%s4306_s7 + $0x118] sm:$0xff]  ;;  %v282_v41 = vld [vmem:[%s4306_s7 + $0x120] sm:$0xff] }
  0x90   : > { %601 = vxpose.xlu1.b32.cont [4/16] %v297_v7, 128  ;;  %v248_v38 = vld [vmem:[%s4306_s7 + $0x10] sm:$0xff]  ;;  %v249_v40 = vld [vmem:[%s4306_s7 + $0x18] sm:$0xff]  ;;  %v250_v42 = vld [vmem:[%s4306_s7 + $0x20] sm:$0xff] }
  0x91   : > { %537 = vxpose.xlu0.b32.cont [4/16] %v265_v8, 128  ;;  %v283_v43 = vld [vmem:[%s4306_s7 + $0x128] sm:$0xff]  ;;  %v284_v45 = vld [vmem:[%s4306_s7 + $0x130] sm:$0xff]  ;;  %v285_v47 = vld [vmem:[%s4306_s7 + $0x138] sm:$0xff] }
  0x92   : > { %v251_v44 = vld [vmem:[%s4306_s7 + $0x28] sm:$0xff]  ;;  %v252_v46 = vld [vmem:[%s4306_s7 + $0x30] sm:$0xff]  ;;  %v253_v48 = vld [vmem:[%s4306_s7 + $0x38] sm:$0xff] }
  0x93   : > { %v286_v49 = vld [vmem:[%s4306_s7 + $0x140] sm:$0xff]  ;;  %v287_v51 = vld [vmem:[%s4306_s7 + $0x148] sm:$0xff]  ;;  %v288_v53 = vld [vmem:[%s4306_s7 + $0x150] sm:$0xff] }
  0x94   : > { %602 = vxpose.xlu1.b32.cont [5/16] %v298_v9, 128  ;;  %v254_v50 = vld [vmem:[%s4306_s7 + $0x40] sm:$0xff]  ;;  %v255_v52 = vld [vmem:[%s4306_s7 + $0x48] sm:$0xff]  ;;  %v256_v54 = vld [vmem:[%s4306_s7 + $0x50] sm:$0xff] }
  0x95   : > { %538 = vxpose.xlu0.b32.cont [5/16] %v266_v10, 128  ;;  %v289_v55 = vld [vmem:[%s4306_s7 + $0x158] sm:$0xff]  ;;  %v290_v57 = vld [vmem:[%s4306_s7 + $0x160] sm:$0xff]  ;;  %v291_v59 = vld [vmem:[%s4306_s7 + $0x168] sm:$0xff] }
  0x96   : > { %v257_v56 = vld [vmem:[%s4306_s7 + $0x58] sm:$0xff]  ;;  %v258_v58 = vld [vmem:[%s4306_s7 + $0x60] sm:$0xff]  ;;  %v259_v60 = vld [vmem:[%s4306_s7 + $0x68] sm:$0xff] }
  0x97   : > { %v292_v61 = vld [vmem:[%s4306_s7 + $0x170] sm:$0xff]  ;;  %v293_v63 = vld [vmem:[%s4306_s7 + $0x178] sm:$0xff]  ;;  %v358_v1 = vld [vmem:[%s4306_s7 + $0x380] sm:$0xff] }
  0x98   : > { %603 = vxpose.xlu1.b32.cont [6/16] %v299_v11, 128  ;;  %v260_v62 = vld [vmem:[%s4306_s7 + $0x70] sm:$0xff]  ;;  %v261_v0 = vld [vmem:[%s4306_s7 + $0x78] sm:$0xff]  ;;  %v326_v2 = vld [vmem:[%s4306_s7 + $0x280] sm:$0xff] }
  0x99   : > { %539 = vxpose.xlu0.b32.cont [6/16] %v267_v12, 128  ;;  %v359_v5 = vld [vmem:[%s4306_s7 + $0x388] sm:$0xff] }
  0x9a   : > { %v327_v6 = vld [vmem:[%s4306_s7 + $0x288] sm:$0xff] }
  0x9c   : > { %604 = vxpose.xlu1.b32.cont [7/16] %v300_v13, 128 }
  0x9d   : > { %540 = vxpose.xlu0.b32.cont [7/16] %v268_v14, 128 }
  0xa0   : > { %605 = vxpose.xlu1.b32.cont [8/16] %v301_v15, 128  ;;  %v360_v15 = vld [vmem:[%s4306_s7 + $0x390] sm:$0xff] }
  0xa1   : > { %541 = vxpose.xlu0.b32.cont [8/16] %v269_v16, 128  ;;  %v328_v16 = vld [vmem:[%s4306_s7 + $0x290] sm:$0xff] }
  0xa4   : > { %606 = vxpose.xlu1.b32.cont [9/16] %v302_v17, 128 }
  0xa5   : > { %542 = vxpose.xlu0.b32.cont [9/16] %v270_v18, 128  ;;  %v310_v18 = vld [vmem:[%s4306_s7 + $0x200] sm:$0xff] }
  0xa8   : > { %607 = vxpose.xlu1.b32.cont [10/16] %v303_v19, 128 }
  0xa9   : > { %543 = vxpose.xlu0.b32.cont [10/16] %v271_v20, 128 }
  0xac   : > { %608 = vxpose.xlu1.b32.cont [11/16] %v304_v21, 128  ;;  %v361_v21 = vld [vmem:[%s4306_s7 + $0x398] sm:$0xff] }
  0xad   : > { %544 = vxpose.xlu0.b32.cont [11/16] %v272_v22, 128  ;;  %v329_v22 = vld [vmem:[%s4306_s7 + $0x298] sm:$0xff] }
  0xb0   : > { %609 = vxpose.xlu1.b32.cont [12/16] %v305_v23, 128 }
  0xb1   : > { %545 = vxpose.xlu0.b32.cont [12/16] %v273_v24, 128 }
  0xb4   : > { %610 = vxpose.xlu1.b32.cont [13/16] %v306_v25, 128 }
  0xb5   : > { %546 = vxpose.xlu0.b32.cont [13/16] %v274_v26, 128 }
  0xb8   : > { %611 = vxpose.xlu1.b32.cont [14/16] %v307_v27, 128 }
  0xb9   : > { %547 = vxpose.xlu0.b32.cont [14/16] %v275_v28, 128 }
  0xbc   : > { %612 = vxpose.xlu1.b32.cont [15/16] %v308_v29, 128  ;;  %v362_v29 = vld [vmem:[%s4306_s7 + $0x3a0] sm:$0xff] }
  0xbd   : > { %548 = vxpose.xlu0.b32.cont [15/16] %v276_v30, 128  ;;  %v330_v30 = vld [vmem:[%s4306_s7 + $0x2a0] sm:$0xff] }
  0xc0   : > { %613 = vxpose.xlu1.b32.end [16/16] %v309_v31, 128 }
  0xc1   : > { %549 = vxpose.xlu0.b32.end [16/16] %v277_v32, 128 }
  0xc4   : > { %566 = vxpose.xlu1.b32.start [1/16] %v278_v33, 128 }
  0xc5   : > { %502 = vxpose.xlu0.b32.start [1/16] %v246_v34, 128 }
  0xc8   : > { %567 = vxpose.xlu1.b32.cont [2/16] %v279_v35, 128  ;;  %v363_v35 = vld [vmem:[%s4306_s7 + $0x3a8] sm:$0xff] }
  0xc9   : > { %503 = vxpose.xlu0.b32.cont [2/16] %v247_v36, 128  ;;  %v331_v36 = vld [vmem:[%s4306_s7 + $0x2a8] sm:$0xff] }
  0xcc   : > { %568 = vxpose.xlu1.b32.cont [3/16] %v280_v37, 128 }
  0xcd   : > { %504 = vxpose.xlu0.b32.cont [3/16] %v248_v38, 128 }
  0xd0   : > { %569 = vxpose.xlu1.b32.cont [4/16] %v281_v39, 128 }
  0xd1   : > { %505 = vxpose.xlu0.b32.cont [4/16] %v249_v40, 128 }
  0xd4   : > { %570 = vxpose.xlu1.b32.cont [5/16] %v282_v41, 128 }
  0xd5   : > { %506 = vxpose.xlu0.b32.cont [5/16] %v250_v42, 128 }
  0xd8   : > { %571 = vxpose.xlu1.b32.cont [6/16] %v283_v43, 128  ;;  %v364_v43 = vld [vmem:[%s4306_s7 + $0x3b0] sm:$0xff] }
  0xd9   : > { %507 = vxpose.xlu0.b32.cont [6/16] %v251_v44, 128  ;;  %v332_v44 = vld [vmem:[%s4306_s7 + $0x2b0] sm:$0xff] }
  0xdc   : > { %572 = vxpose.xlu1.b32.cont [7/16] %v284_v45, 128  ;;  %v341_v45 = vld [vmem:[%s4306_s7 + $0x2f8] sm:$0xff] }
  0xdd   : > { %508 = vxpose.xlu0.b32.cont [7/16] %v252_v46, 128  ;;  %v373_v46 = vld [vmem:[%s4306_s7 + $0x3f8] sm:$0xff] }
  0xe0   : > { %573 = vxpose.xlu1.b32.cont [8/16] %v285_v47, 128 }
  0xe1   : > { %509 = vxpose.xlu0.b32.cont [8/16] %v253_v48, 128 }
  0xe4   : > { %574 = vxpose.xlu1.b32.cont [9/16] %v286_v49, 128  ;;  %v365_v49 = vld [vmem:[%s4306_s7 + $0x3b8] sm:$0xff] }
  0xe5   : > { %510 = vxpose.xlu0.b32.cont [9/16] %v254_v50, 128  ;;  %v333_v50 = vld [vmem:[%s4306_s7 + $0x2b8] sm:$0xff] }
  0xe8   : > { %575 = vxpose.xlu1.b32.cont [10/16] %v287_v51, 128 }
  0xe9   : > { %511 = vxpose.xlu0.b32.cont [10/16] %v255_v52, 128 }
  0xec   : > { %576 = vxpose.xlu1.b32.cont [11/16] %v288_v53, 128 }
  0xed   : > { %512 = vxpose.xlu0.b32.cont [11/16] %v256_v54, 128 }
  0xf0   : > { %577 = vxpose.xlu1.b32.cont [12/16] %v289_v55, 128 }
  0xf1   : > { %513 = vxpose.xlu0.b32.cont [12/16] %v257_v56, 128 }
  0xf4   : > { %578 = vxpose.xlu1.b32.cont [13/16] %v290_v57, 128  ;;  %v366_v57 = vld [vmem:[%s4306_s7 + $0x3c0] sm:$0xff] }
  0xf5   : > { %514 = vxpose.xlu0.b32.cont [13/16] %v258_v58, 128  ;;  %v334_v58 = vld [vmem:[%s4306_s7 + $0x2c0] sm:$0xff] }
  0xf8   : > { %579 = vxpose.xlu1.b32.cont [14/16] %v291_v59, 128 }
  0xf9   : > { %515 = vxpose.xlu0.b32.cont [14/16] %v259_v60, 128 }
  0xfc   : > { %580 = vxpose.xlu1.b32.cont [15/16] %v292_v61, 128 }
  0xfd   : > { %516 = vxpose.xlu0.b32.cont [15/16] %v260_v62, 128 }
 0x100   : > { %581 = vxpose.xlu1.b32.end [16/16] %v293_v63, 128  ;;  %v367_v63 = vld [vmem:[%s4306_s7 + $0x3c8] sm:$0xff] }
 0x101   : > { %517 = vxpose.xlu0.b32.end [16/16] %v261_v0, 128  ;;  %v335_v0 = vld [vmem:[%s4306_s7 + $0x2c8] sm:$0xff] }
 0x104   : > { %v614_v3 = vpop.trf.xlu1  ;;  %726 = vxpose.xlu1.b32.start [1/16] %v358_v1, 128 }
 0x105   : > { %v550_v4 = vpop.trf.xlu0  ;;  %662 = vxpose.xlu0.b32.start [1/16] %v326_v2, 128  ;;  %v4386_v7 = vmul.f32 %v614_v3, %v614_v3 }
 0x106   : > { %v4388_v8 = vmul.f32 %v550_v4, %v550_v4 }
 0x108   : > { %v615_v9 = vpop.trf.xlu1  ;;  %727 = vxpose.xlu1.b32.cont [2/16] %v359_v5, 128 }
 0x109   : > { %v551_v10 = vpop.trf.xlu0  ;;  %663 = vxpose.xlu0.b32.cont [2/16] %v327_v6, 128  ;;  %v4390_v11 = vmul.f32 %v615_v9, %v615_v9  ;;  %v3329_v14 = vpack.c.bf16 %v615_v9, %v614_v3  ;;  %v368_v9 = vld [vmem:[%s4306_s7 + $0x3d0] sm:$0xff] }
 0x10a   : > { %v4392_v12 = vmul.f32 %v551_v10, %v551_v10  ;;  %v3297_v13 = vpack.c.bf16 %v551_v10, %v550_v4  ;;  %v336_v10 = vld [vmem:[%s4306_s7 + $0x2d0] sm:$0xff] }
 0x10b   : > { %3330 = vmatprep.subr.bf16.mxu1 %v3329_v14  ;;  %v340_v14 = vld [vmem:[%s4306_s7 + $0x2f0] sm:$0xff] }
 0x10c   : > { %3298 = vmatprep.subr.bf16.mxu0 %v3297_v13  ;;  %v4400_v19 = vpop.trf.xlu1  ;;  %728 = vxpose.xlu1.b32.cont [3/16] %v360_v15, 128 }
 0x10d   : > { %v4402_v20 = vpop.trf.xlu0  ;;  %664 = vxpose.xlu0.b32.cont [3/16] %v328_v16, 128  ;;  %v4412_v25 = vmul.f32 %v4400_v19, %v4400_v19 }
 0x10e   : > { %v4416_v26 = vmul.f32 %v4402_v20, %v4402_v20 }
 0x110   : > { %v4406_v23 = vpop.trf.xlu1  ;;  %729 = vxpose.xlu1.b32.cont [4/16] %v361_v21, 128  ;;  %v369_v21 = vld [vmem:[%s4306_s7 + $0x3d8] sm:$0xff] }
 0x111   : > { %v4408_v24 = vpop.trf.xlu0  ;;  %665 = vxpose.xlu0.b32.cont [4/16] %v329_v22, 128  ;;  %v4420_v27 = vmul.f32 %v4406_v23, %v4406_v23  ;;  %v337_v22 = vld [vmem:[%s4306_s7 + $0x2d8] sm:$0xff] }
 0x112   : > { %v4424_v28 = vmul.f32 %v4408_v24, %v4408_v24 }
 0x114   : > { %v4432_v33 = vpop.trf.xlu1  ;;  %730 = vxpose.xlu1.b32.cont [5/16] %v362_v29, 128 }
 0x115   : > { %v4434_v34 = vpop.trf.xlu0  ;;  %666 = vxpose.xlu0.b32.cont [5/16] %v330_v30, 128  ;;  %v4444_v39 = vmul.f32 %v4432_v33, %v4432_v33 }
 0x116   : > { %v4448_v40 = vmul.f32 %v4434_v34, %v4434_v34 }
 0x117   : > { %6796 = vst [vmem:[#allocation13_spill] sm:$0xff] %v4444_v39 }
 0x118   : > { %v4438_v37 = vpop.trf.xlu1  ;;  %731 = vxpose.xlu1.b32.cont [6/16] %v363_v35, 128  ;;  %6797 = vst [vmem:[#allocation14_spill] sm:$0xff] %v4448_v40 }
 0x119   : > { %v4440_v38 = vpop.trf.xlu0  ;;  %667 = vxpose.xlu0.b32.cont [6/16] %v331_v36, 128  ;;  %v4452_v41 = vmul.f32 %v4438_v37, %v4438_v37 }
 0x11a   : > { %v4456_v42 = vmul.f32 %v4440_v38, %v4440_v38 }
 0x11c   : > { %6798 = vst [vmem:[#allocation15_spill] sm:$0xff] %v4456_v42  ;;  %v4464_v47 = vpop.trf.xlu1  ;;  %732 = vxpose.xlu1.b32.cont [7/16] %v364_v43, 128 }
 0x11d   : > { %v4466_v48 = vpop.trf.xlu0  ;;  %668 = vxpose.xlu0.b32.cont [7/16] %v332_v44, 128  ;;  %v4476_v53 = vmul.f32 %v4464_v47, %v4464_v47 }
 0x11e   : > { %v4480_v54 = vmul.f32 %v4466_v48, %v4466_v48 }
 0x11f   : > { %6799 = vst [vmem:[#allocation16_spill] sm:$0xff] %v4476_v53 }
 0x120   : > { %v4470_v51 = vpop.trf.xlu1  ;;  %733 = vxpose.xlu1.b32.cont [8/16] %v365_v49, 128  ;;  %6800 = vst [vmem:[#allocation17_spill] sm:$0xff] %v4480_v54  ;;  %v370_v49 = vld [vmem:[%s4306_s7 + $0x3e0] sm:$0xff] }
 0x121   : > { %v4472_v52 = vpop.trf.xlu0  ;;  %669 = vxpose.xlu0.b32.cont [8/16] %v333_v50, 128  ;;  %v4484_v55 = vmul.f32 %v4470_v51, %v4470_v51  ;;  %v338_v50 = vld [vmem:[%s4306_s7 + $0x2e0] sm:$0xff] }
 0x122   : > { %v4488_v56 = vmul.f32 %v4472_v52, %v4472_v52 }
 0x123   : > { %6801 = vst [vmem:[#allocation18_spill] sm:$0xff] %v4484_v55 }
 0x124   : > { %6802 = vst [vmem:[#allocation19_spill] sm:$0xff] %v4488_v56  ;;  %v4496_v61 = vpop.trf.xlu1  ;;  %734 = vxpose.xlu1.b32.cont [9/16] %v366_v57, 128  ;;  %v405_v56 = vld [vmem:[%s4306_s7 + $0x4f8] sm:$0xff] }
 0x125   : > { %v4498_v62 = vpop.trf.xlu0  ;;  %670 = vxpose.xlu0.b32.cont [9/16] %v334_v58, 128  ;;  %v4508_v3 = vmul.f32 %v4496_v61, %v4496_v61 }
 0x126   : > { %v4512_v4 = vmul.f32 %v4498_v62, %v4498_v62 }
 0x127   : > { %6803 = vst [vmem:[#allocation20_spill] sm:$0xff] %v4508_v3 }
 0x128   : > { %v4502_v1 = vpop.trf.xlu1  ;;  %735 = vxpose.xlu1.b32.cont [10/16] %v367_v63, 128  ;;  %6804 = vst [vmem:[#allocation21_spill] sm:$0xff] %v4512_v4 }
 0x129   : > { %v4504_v2 = vpop.trf.xlu0  ;;  %671 = vxpose.xlu0.b32.cont [10/16] %v335_v0, 128  ;;  %v4516_v5 = vmul.f32 %v4502_v1, %v4502_v1 }
 0x12a   : > { %v4520_v6 = vmul.f32 %v4504_v2, %v4504_v2 }
 0x12b   : > { %6805 = vst [vmem:[#allocation22_spill] sm:$0xff] %v4516_v5 }
 0x12c   : > { %6806 = vst [vmem:[#allocation23_spill] sm:$0xff] %v4520_v6  ;;  %v4528_v15 = vpop.trf.xlu1  ;;  %736 = vxpose.xlu1.b32.cont [11/16] %v368_v9, 128  ;;  %v371_v9 = vld [vmem:[%s4306_s7 + $0x3e8] sm:$0xff]  ;;  %v401_v6 = vld [vmem:[%s4306_s7 + $0x4d8] sm:$0xff] }
 0x12d   : > { %v4530_v16 = vpop.trf.xlu0  ;;  %672 = vxpose.xlu0.b32.cont [11/16] %v336_v10, 128  ;;  %v4540_v35 = vmul.f32 %v4528_v15, %v4528_v15  ;;  %v339_v10 = vld [vmem:[%s4306_s7 + $0x2e8] sm:$0xff] }
 0x12e   : > { %v4544_v36 = vmul.f32 %v4530_v16, %v4530_v16 }
 0x12f   : > { %6807 = vst [vmem:[#allocation24_spill] sm:$0xff] %v4540_v35 }
 0x130   : > { %v4534_v29 = vpop.trf.xlu1  ;;  %737 = vxpose.xlu1.b32.cont [12/16] %v369_v21, 128  ;;  %6808 = vst [vmem:[#allocation25_spill] sm:$0xff] %v4544_v36 }
 0x131   : > { %v4536_v30 = vpop.trf.xlu0  ;;  %673 = vxpose.xlu0.b32.cont [12/16] %v337_v22, 128  ;;  %v4548_v43 = vmul.f32 %v4534_v29, %v4534_v29 }
 0x132   : > { %v4552_v44 = vmul.f32 %v4536_v30, %v4536_v30 }
 0x133   : > { %6809 = vst [vmem:[#allocation26_spill] sm:$0xff] %v4548_v43 }
 0x134   : > { %6810 = vst [vmem:[#allocation27_spill] sm:$0xff] %v4552_v44  ;;  %v4560_v63 = vpop.trf.xlu1  ;;  %738 = vxpose.xlu1.b32.cont [13/16] %v370_v49, 128 }
 0x135   : > { %v4562_v0 = vpop.trf.xlu0  ;;  %674 = vxpose.xlu0.b32.cont [13/16] %v338_v50, 128  ;;  %v4572_v58 = vmul.f32 %v4560_v63, %v4560_v63 }
 0x136   : > { %v4576_v49 = vmul.f32 %v4562_v0, %v4562_v0 }
 0x137   : > { %6811 = vst [vmem:[#allocation28_spill] sm:$0xff] %v4572_v58  ;;  %v343_v58 = vld [vmem:[%s4306_s7 + $0x308] sm:$0xff] }
 0x138   : > { %v4566_v21 = vpop.trf.xlu1  ;;  %739 = vxpose.xlu1.b32.cont [14/16] %v371_v9, 128  ;;  %6812 = vst [vmem:[#allocation29_spill] sm:$0xff] %v4576_v49  ;;  %v372_v9 = vld [vmem:[%s4306_s7 + $0x3f0] sm:$0xff] }
 0x139   : > { %v4568_v22 = vpop.trf.xlu0  ;;  %675 = vxpose.xlu0.b32.cont [14/16] %v339_v10, 128  ;;  %v4580_v50 = vmul.f32 %v4566_v21, %v4566_v21 }
 0x13a   : > { %v4584_v57 = vmul.f32 %v4568_v22, %v4568_v22 }
 0x13b   : > { %6813 = vst [vmem:[#allocation30_spill] sm:$0xff] %v4580_v50  ;;  %v311_v50 = vld [vmem:[%s4306_s7 + $0x208] sm:$0xff] }
 0x13c   : > { %6814 = vst [vmem:[#allocation31_spill] sm:$0xff] %v4584_v57  ;;  %v4592_v60 = vpop.trf.xlu1  ;;  %740 = vxpose.xlu1.b32.cont [15/16] %v372_v9, 128 }
 0x13d   : > { %v4594_v59 = vpop.trf.xlu0  ;;  %676 = vxpose.xlu0.b32.cont [15/16] %v340_v14, 128  ;;  %v4604_v13 = vmul.f32 %v4592_v60, %v4592_v60 }
 0x13e   : > { %v4608_v9 = vmul.f32 %v4594_v59, %v4594_v59 }
 0x13f   : > { %6815 = vst [vmem:[#allocation32_spill] sm:$0xff] %v4604_v13 }
 0x140   : > { %v4598_v32 = vpop.trf.xlu1  ;;  %741 = vxpose.xlu1.b32.end [16/16] %v373_v46, 128  ;;  %6816 = vst [vmem:[#allocation33_spill] sm:$0xff] %v4608_v9  ;;  %v342_v46 = vld [vmem:[%s4306_s7 + $0x300] sm:$0xff]  ;;  %v3333_v9 = vpack.c.bf16 %v4406_v23, %v4400_v19  ;;  %v345_v19 = vld [vmem:[%s4306_s7 + $0x318] sm:$0xff] }
 0x141   : > { %v4600_v31 = vpop.trf.xlu0  ;;  %677 = vxpose.xlu0.b32.end [16/16] %v341_v45, 128  ;;  %v4612_v14 = vmul.f32 %v4598_v32, %v4598_v32  ;;  %v313_v23 = vld [vmem:[%s4306_s7 + $0x218] sm:$0xff] }
 0x142   : > { %v4616_v10 = vmul.f32 %v4600_v31, %v4600_v31 }
 0x143   : > { %6817 = vst [vmem:[#allocation34_spill] sm:$0xff] %v4612_v14  ;;  %v3301_v14 = vpack.c.bf16 %v4408_v24, %v4402_v20 }
 0x144   : > { %6818 = vst [vmem:[#allocation35_spill] sm:$0xff] %v4616_v10  ;;  %694 = vxpose.xlu1.b32.start [1/16] %v342_v46, 128  ;;  %v582_v49 = vpop.trf.xlu1  ;;  %v312_v10 = vld [vmem:[%s4306_s7 + $0x210] sm:$0xff] }
 0x145   : > { %630 = vxpose.xlu0.b32.start [1/16] %v310_v18, 128  ;;  %v518_v57 = vpop.trf.xlu0  ;;  %v4626_v36 = vmul.f32 %v582_v49, %v582_v49  ;;  %v344_v18 = vld [vmem:[%s4306_s7 + $0x310] sm:$0xff] }
 0x146   : > { %v4628_v44 = vmul.f32 %v518_v57, %v518_v57 }
 0x148   : > { %695 = vxpose.xlu1.b32.cont [2/16] %v343_v58, 128  ;;  %v583_v35 = vpop.trf.xlu1  ;;  %v314_v58 = vld [vmem:[%s4306_s7 + $0x220] sm:$0xff] }
 0x149   : > { %631 = vxpose.xlu0.b32.cont [2/16] %v311_v50, 128  ;;  %v519_v43 = vpop.trf.xlu0  ;;  %v4630_v45 = vmul.f32 %v583_v35, %v583_v35  ;;  %v3331_v17 = vpack.c.bf16 %v583_v35, %v582_v49  ;;  %v3337_v50 = vpack.c.bf16 %v4438_v37, %v4432_v33  ;;  %v347_v33 = vld [vmem:[%s4306_s7 + $0x328] sm:$0xff] }
 0x14a   : > { %v4632_v13 = vmul.f32 %v519_v43, %v519_v43  ;;  %v3299_v46 = vpack.c.bf16 %v519_v43, %v518_v57  ;;  %v6591_v57 = vmov 0.0   ;;  %v315_v37 = vld [vmem:[%s4306_s7 + $0x228] sm:$0xff] }
 0x14b   : > { %3332 = vmatpush1.bf16.msra.mxu1 %v3331_v17  ;;  %1336 = vmatprep.mubr.f32.mxu0 %v6591_v57 }
 0x14c   : > { %3300 = vmatpush1.bf16.msra.mxu0 %v3299_v46  ;;  %696 = vxpose.xlu1.b32.cont [3/16] %v344_v18, 128  ;;  %v584_v35 = vpop.trf.xlu1  ;;  %v346_v18 = vld [vmem:[%s4306_s7 + $0x320] sm:$0xff] }
 0x14d   : > { %3334 = vmatprep.subr.bf16.mxu1 %v3333_v9  ;;  %v520_v43 = vpop.trf.xlu0  ;;  %632 = vxpose.xlu0.b32.cont [3/16] %v312_v10, 128  ;;  %v4648_v20 = vmul.f32 %v584_v35, %v584_v35 }
 0x14e   : > { %3302 = vmatprep.subr.bf16.mxu0 %v3301_v14  ;;  %1407 = vmatprep.mubr.f32.mxu1 %v6591_v57  ;;  %v4650_v24 = vmul.f32 %v520_v43, %v520_v43  ;;  %v3305_v57 = vpack.c.bf16 %v4440_v38, %v4434_v34 }
 0x150   : > { %697 = vxpose.xlu1.b32.cont [4/16] %v345_v19, 128  ;;  %v585_v17 = vpop.trf.xlu1  ;;  %v3309_v19 = vpack.c.bf16 %v4472_v52, %v4466_v48 }
 0x151   : > { %v521_v49 = vpop.trf.xlu0  ;;  %v4652_v9 = vmul.f32 %v585_v17, %v585_v17  ;;  %v3335_v10 = vpack.c.bf16 %v585_v17, %v584_v35  ;;  %633 = vxpose.xlu0.b32.cont [4/16] %v313_v23, 128 }
 0x152   : > { %v4654_v14 = vmul.f32 %v521_v49, %v521_v49  ;;  %v3303_v46 = vpack.c.bf16 %v521_v49, %v520_v43 }
 0x153   : > { %3336 = vmatpush1.bf16.msra.mxu1 %v3335_v10 }
 0x154   : > { %3304 = vmatpush1.bf16.msra.mxu0 %v3303_v46  ;;  %698 = vxpose.xlu1.b32.cont [5/16] %v346_v18, 128  ;;  %v586_v43 = vpop.trf.xlu1  ;;  %v316_v18 = vld [vmem:[%s4306_s7 + $0x230] sm:$0xff] }
 0x155   : > { %3338 = vmatprep.subr.bf16.mxu1 %v3337_v50  ;;  %v522_v23 = vpop.trf.xlu0  ;;  %634 = vxpose.xlu0.b32.cont [5/16] %v314_v58, 128  ;;  %v4668_v17 = vmul.f32 %v586_v43, %v586_v43  ;;  %v348_v58 = vld [vmem:[%s4306_s7 + $0x330] sm:$0xff] }
 0x156   : > { %3306 = vmatprep.subr.bf16.mxu0 %v3305_v57  ;;  %v4670_v34 = vmul.f32 %v522_v23, %v522_v23  ;;  %v3341_v57 = vpack.c.bf16 %v4470_v51, %v4464_v47  ;;  %v349_v47 = vld [vmem:[%s4306_s7 + $0x338] sm:$0xff] }
 0x157   : > { %6819 = vst [vmem:[#allocation36_spill] sm:$0xff] %v4668_v17  ;;  %v317_v51 = vld [vmem:[%s4306_s7 + $0x238] sm:$0xff] }
 0x158   : > { %6820 = vst [vmem:[#allocation37_spill] sm:$0xff] %v4670_v34  ;;  %699 = vxpose.xlu1.b32.cont [6/16] %v347_v33, 128  ;;  %v587_v38 = vpop.trf.xlu1  ;;  %v3313_v33 = vpack.c.bf16 %v4504_v2, %v4498_v62 }
 0x159   : > { %v523_v49 = vpop.trf.xlu0  ;;  %v4672_v35 = vmul.f32 %v587_v38, %v587_v38  ;;  %v3339_v10 = vpack.c.bf16 %v587_v38, %v586_v43  ;;  %635 = vxpose.xlu0.b32.cont [6/16] %v315_v37, 128 }
 0x15a   : > { %v4674_v50 = vmul.f32 %v523_v49, %v523_v49  ;;  %v3307_v46 = vpack.c.bf16 %v523_v49, %v522_v23 }
 0x15b   : > { %6821 = vst [vmem:[#allocation38_spill] sm:$0xff] %v4672_v35  ;;  %3340 = vmatpush1.bf16.msra.mxu1 %v3339_v10 }
 0x15c   : > { %6822 = vst [vmem:[#allocation39_spill] sm:$0xff] %v4674_v50  ;;  %3308 = vmatpush1.bf16.msra.mxu0 %v3307_v46  ;;  %700 = vxpose.xlu1.b32.cont [7/16] %v348_v58, 128  ;;  %v588_v23 = vpop.trf.xlu1  ;;  %v407_v50 = vld [vmem:[%s4306_s7 + $0x508] sm:$0xff] }
 0x15d   : > { %3342 = vmatprep.subr.bf16.mxu1 %v3341_v57  ;;  %v524_v37 = vpop.trf.xlu0  ;;  %636 = vxpose.xlu0.b32.cont [7/16] %v316_v18, 128  ;;  %v4688_v38 = vmul.f32 %v588_v23, %v588_v23  ;;  %v350_v57 = vld [vmem:[%s4306_s7 + $0x340] sm:$0xff] }
 0x15e   : > { %3310 = vmatprep.subr.bf16.mxu0 %v3309_v19  ;;  %v4690_v48 = vmul.f32 %v524_v37, %v524_v37  ;;  %v3345_v19 = vpack.c.bf16 %v4502_v1, %v4496_v61  ;;  %v318_v18 = vld [vmem:[%s4306_s7 + $0x240] sm:$0xff]  ;;  %v351_v61 = vld [vmem:[%s4306_s7 + $0x348] sm:$0xff] }
 0x15f   : > { %6823 = vst [vmem:[#allocation40_spill] sm:$0xff] %v4688_v38  ;;  %v319_v1 = vld [vmem:[%s4306_s7 + $0x248] sm:$0xff] }
 0x160   : > { %6824 = vst [vmem:[#allocation41_spill] sm:$0xff] %v4690_v48  ;;  %701 = vxpose.xlu1.b32.cont [8/16] %v349_v47, 128  ;;  %v589_v52 = vpop.trf.xlu1  ;;  %v3317_v47 = vpack.c.bf16 %v4536_v30, %v4530_v16 }
 0x161   : > { %v525_v49 = vpop.trf.xlu0  ;;  %v4692_v43 = vmul.f32 %v589_v52, %v589_v52  ;;  %v3343_v10 = vpack.c.bf16 %v589_v52, %v588_v23  ;;  %637 = vxpose.xlu0.b32.cont [8/16] %v317_v51, 128 }
 0x162   : > { %v4694_v46 = vmul.f32 %v525_v49, %v525_v49  ;;  %v3311_v58 = vpack.c.bf16 %v525_v49, %v524_v37 }
 0x163   : > { %6825 = vst [vmem:[#allocation42_spill] sm:$0xff] %v4692_v43  ;;  %3344 = vmatpush1.bf16.msra.mxu1 %v3343_v10 }
 0x164   : > { %6826 = vst [vmem:[#allocation43_spill] sm:$0xff] %v4694_v46  ;;  %3312 = vmatpush1.bf16.msra.mxu0 %v3311_v58  ;;  %702 = vxpose.xlu1.b32.cont [9/16] %v350_v57, 128  ;;  %v590_v37 = vpop.trf.xlu1  ;;  %v403_v46 = vld [vmem:[%s4306_s7 + $0x4e8] sm:$0xff] }
 0x165   : > { %3346 = vmatprep.subr.bf16.mxu1 %v3345_v19  ;;  %v526_v51 = vpop.trf.xlu0  ;;  %638 = vxpose.xlu0.b32.cont [9/16] %v318_v18, 128  ;;  %v4708_v52 = vmul.f32 %v590_v37, %v590_v37  ;;  %v352_v19 = vld [vmem:[%s4306_s7 + $0x350] sm:$0xff] }
 0x166   : > { %3314 = vmatprep.subr.bf16.mxu0 %v3313_v33  ;;  %v4710_v62 = vmul.f32 %v526_v51, %v526_v51  ;;  %v3349_v33 = vpack.c.bf16 %v4534_v29, %v4528_v15  ;;  %v320_v18 = vld [vmem:[%s4306_s7 + $0x250] sm:$0xff]  ;;  %v353_v15 = vld [vmem:[%s4306_s7 + $0x358] sm:$0xff] }
 0x167   : > { %6827 = vst [vmem:[#allocation44_spill] sm:$0xff] %v4708_v52  ;;  %v321_v29 = vld [vmem:[%s4306_s7 + $0x258] sm:$0xff] }
 0x168   : > { %6828 = vst [vmem:[#allocation45_spill] sm:$0xff] %v4710_v62  ;;  %703 = vxpose.xlu1.b32.cont [10/16] %v351_v61, 128  ;;  %v591_v2 = vpop.trf.xlu1  ;;  %v3321_v61 = vpack.c.bf16 %v4568_v22, %v4562_v0 }
 0x169   : > { %v527_v49 = vpop.trf.xlu0  ;;  %v4712_v23 = vmul.f32 %v591_v2, %v591_v2  ;;  %v3347_v10 = vpack.c.bf16 %v591_v2, %v590_v37  ;;  %639 = vxpose.xlu0.b32.cont [10/16] %v319_v1, 128 }
 0x16a   : > { %v4714_v58 = vmul.f32 %v527_v49, %v527_v49  ;;  %v3315_v57 = vpack.c.bf16 %v527_v49, %v526_v51 }
 0x16b   : > { %6829 = vst [vmem:[#allocation46_spill] sm:$0xff] %v4712_v23  ;;  %3348 = vmatpush1.bf16.msra.mxu1 %v3347_v10 }
 0x16c   : > { %6830 = vst [vmem:[#allocation47_spill] sm:$0xff] %v4714_v58  ;;  %3316 = vmatpush1.bf16.msra.mxu0 %v3315_v57  ;;  %704 = vxpose.xlu1.b32.cont [11/16] %v352_v19, 128  ;;  %v592_v51 = vpop.trf.xlu1  ;;  %v399_v58 = vld [vmem:[%s4306_s7 + $0x4c8] sm:$0xff] }
 0x16d   : > { %3350 = vmatprep.subr.bf16.mxu1 %v3349_v33  ;;  %v528_v1 = vpop.trf.xlu0  ;;  %640 = vxpose.xlu0.b32.cont [11/16] %v320_v18, 128  ;;  %v4728_v2 = vmul.f32 %v592_v51, %v592_v51  ;;  %v354_v33 = vld [vmem:[%s4306_s7 + $0x360] sm:$0xff] }
 0x16e   : > { %3318 = vmatprep.subr.bf16.mxu0 %v3317_v47  ;;  %v4730_v16 = vmul.f32 %v528_v1, %v528_v1  ;;  %v3353_v47 = vpack.c.bf16 %v4566_v21, %v4560_v63  ;;  %v322_v18 = vld [vmem:[%s4306_s7 + $0x260] sm:$0xff]  ;;  %v355_v63 = vld [vmem:[%s4306_s7 + $0x368] sm:$0xff] }
 0x16f   : > { %6831 = vst [vmem:[#allocation48_spill] sm:$0xff] %v4728_v2  ;;  %v323_v21 = vld [vmem:[%s4306_s7 + $0x268] sm:$0xff] }
 0x170   : > { %6832 = vst [vmem:[#allocation49_spill] sm:$0xff] %v4730_v16  ;;  %705 = vxpose.xlu1.b32.cont [12/16] %v353_v15, 128  ;;  %v593_v30 = vpop.trf.xlu1  ;;  %v3325_v15 = vpack.c.bf16 %v4600_v31, %v4594_v59 }
 0x171   : > { %v529_v49 = vpop.trf.xlu0  ;;  %v4732_v37 = vmul.f32 %v593_v30, %v593_v30  ;;  %v3351_v10 = vpack.c.bf16 %v593_v30, %v592_v51  ;;  %641 = vxpose.xlu0.b32.cont [12/16] %v321_v29, 128 }
 0x172   : > { %v4734_v57 = vmul.f32 %v529_v49, %v529_v49  ;;  %v3319_v19 = vpack.c.bf16 %v529_v49, %v528_v1 }
 0x173   : > { %6833 = vst [vmem:[#allocation50_spill] sm:$0xff] %v4732_v37  ;;  %3352 = vmatpush1.bf16.msra.mxu1 %v3351_v10 }
 0x174   : > { %6834 = vst [vmem:[#allocation51_spill] sm:$0xff] %v4734_v57  ;;  %3320 = vmatpush1.bf16.msra.mxu0 %v3319_v19  ;;  %706 = vxpose.xlu1.b32.cont [13/16] %v354_v33, 128  ;;  %v594_v1 = vpop.trf.xlu1  ;;  %v397_v57 = vld [vmem:[%s4306_s7 + $0x4b8] sm:$0xff] }
 0x175   : > { %3354 = vmatprep.subr.bf16.mxu1 %v3353_v47  ;;  %v530_v29 = vpop.trf.xlu0  ;;  %642 = vxpose.xlu0.b32.cont [13/16] %v322_v18, 128  ;;  %v4748_v30 = vmul.f32 %v594_v1, %v594_v1  ;;  %v356_v47 = vld [vmem:[%s4306_s7 + $0x370] sm:$0xff] }
 0x176   : > { %3322 = vmatprep.subr.bf16.mxu0 %v3321_v61  ;;  %v4750_v0 = vmul.f32 %v530_v29, %v530_v29  ;;  %v3357_v61 = vpack.c.bf16 %v4598_v32, %v4592_v60  ;;  %v324_v18 = vld [vmem:[%s4306_s7 + $0x270] sm:$0xff]  ;;  %v357_v32 = vld [vmem:[%s4306_s7 + $0x378] sm:$0xff] }
 0x177   : > { %6835 = vst [vmem:[#allocation52_spill] sm:$0xff] %v4748_v30  ;;  %v325_v60 = vld [vmem:[%s4306_s7 + $0x278] sm:$0xff] }
 0x178   : > { %6836 = vst [vmem:[#allocation53_spill] sm:$0xff] %v4750_v0  ;;  %707 = vxpose.xlu1.b32.cont [14/16] %v355_v63, 128  ;;  %v595_v22 = vpop.trf.xlu1 }
 0x179   : > { %v531_v49 = vpop.trf.xlu0  ;;  %v4752_v51 = vmul.f32 %v595_v22, %v595_v22  ;;  %v3355_v10 = vpack.c.bf16 %v595_v22, %v594_v1  ;;  %643 = vxpose.xlu0.b32.cont [14/16] %v323_v21, 128 }
 0x17a   : > { %v4754_v19 = vmul.f32 %v531_v49, %v531_v49  ;;  %v3323_v33 = vpack.c.bf16 %v531_v49, %v530_v29 }
 0x17b   : > { %6837 = vst [vmem:[#allocation54_spill] sm:$0xff] %v4752_v51  ;;  %3356 = vmatpush1.bf16.msra.mxu1 %v3355_v10 }
 0x17c   : > { %6838 = vst [vmem:[#allocation55_spill] sm:$0xff] %v4754_v19  ;;  %3324 = vmatpush1.bf16.msra.mxu0 %v3323_v33  ;;  %708 = vxpose.xlu1.b32.cont [15/16] %v356_v47, 128  ;;  %v596_v29 = vpop.trf.xlu1  ;;  %v394_v19 = vld [vmem:[%s4306_s7 + $0x4a0] sm:$0xff] }
 0x17d   : > { %3358 = vmatprep.subr.bf16.mxu1 %v3357_v61  ;;  %v532_v21 = vpop.trf.xlu0  ;;  %644 = vxpose.xlu0.b32.cont [15/16] %v324_v18, 128  ;;  %v4768_v22 = vmul.f32 %v596_v29, %v596_v29  ;;  %v422_v61 = vld [vmem:[%s4306_s7 + $0x580] sm:$0xff] }
 0x17e   : > { %3326 = vmatprep.subr.bf16.mxu0 %v3325_v15  ;;  %v4770_v31 = vmul.f32 %v532_v21, %v532_v21  ;;  %v390_v15 = vld [vmem:[%s4306_s7 + $0x480] sm:$0xff] }
 0x17f   : > { %6839 = vst [vmem:[#allocation56_spill] sm:$0xff] %v4768_v22  ;;  %v392_v22 = vld [vmem:[%s4306_s7 + $0x490] sm:$0xff] }
 0x180   : > { %6840 = vst [vmem:[#allocation57_spill] sm:$0xff] %v4770_v31  ;;  %709 = vxpose.xlu1.b32.end [16/16] %v357_v32, 128  ;;  %v597_v59 = vpop.trf.xlu1  ;;  %v4782_v32 = vld [vmem:[#allocation8] sm:$0x7] }
 0x181   : > { %v533_v49 = vpop.trf.xlu0  ;;  %v4772_v1 = vmul.f32 %v597_v59, %v597_v59  ;;  %v3359_v10 = vpack.c.bf16 %v597_v59, %v596_v29  ;;  %645 = vxpose.xlu0.b32.end [16/16] %v325_v60, 128  ;;  %v423_v60 = vld [vmem:[%s4306_s7 + $0x588] sm:$0xff] }
 0x182   : > { %v4774_v33 = vmul.f32 %v533_v49, %v533_v49  ;;  %v3327_v47 = vpack.c.bf16 %v533_v49, %v532_v21  ;;  %v391_v59 = vld [vmem:[%s4306_s7 + $0x488] sm:$0xff]  ;;  %v6843_v21 = vmov 0.0  }
 0x183   : > { %6841 = vst [vmem:[#allocation58_spill] sm:$0xff] %v4772_v1  ;;  %3360 = vmatpush1.bf16.msra.mxu1 %v3359_v10 }
 0x184   : > { %6842 = vst [vmem:[#allocation59_spill] sm:$0xff] %v4774_v33  ;;  %3328 = vmatpush1.bf16.msra.mxu0 %v3327_v47  ;;  %854 = vxpose.xlu1.b32.start [1/16] %v422_v61, 128  ;;  %v742_v0 = vpop.trf.xlu1  ;;  %v424_v33 = vld [vmem:[%s4306_s7 + $0x590] sm:$0xff] }
 0x185   : > { %v678_v29 = vpop.trf.xlu0  ;;  %790 = vxpose.xlu0.b32.start [1/16] %v390_v15, 128  ;;  %v4790_v49 = vmul.f32 %v742_v0, %v742_v0 }
 0x186   : > { %1408 = vmatmul.mubr.f32.vlgmr.msra.gmra.mrb[0].mxu1 %v4782_v32  ;;  %v4792_v10 = vmul.f32 %v678_v29, %v678_v29 }
 0x187   : > { %1337 = vmatmul.mubr.f32.vlgmr.msra.gmra.mrb[0].mxu0 %v4782_v32  ;;  %1549 = vmatprep.mubr.f32.mxu1 %v6843_v21  ;;  %6844 = vst [vmem:[#allocation60_spill] sm:$0xff] %v4790_v49 }
 0x188   : > { %1478 = vmatprep.mubr.f32.mxu0 %v6843_v21  ;;  %6845 = vst [vmem:[#allocation61_spill] sm:$0xff] %v4792_v10  ;;  %855 = vxpose.xlu1.b32.cont [2/16] %v423_v60, 128  ;;  %v743_v47 = vpop.trf.xlu1  ;;  %v428_v10 = vld [vmem:[%s4306_s7 + $0x5b0] sm:$0xff] }
 0x189   : > { %v679_v61 = vpop.trf.xlu0  ;;  %v4794_v15 = vmul.f32 %v743_v47, %v743_v47  ;;  %v3393_v63 = vpack.c.bf16 %v743_v47, %v742_v0  ;;  %791 = vxpose.xlu0.b32.cont [2/16] %v391_v59, 128  ;;  %v425_v59 = vld [vmem:[%s4306_s7 + $0x598] sm:$0xff] }
 0x18a   : > { %v4796_v18 = vmul.f32 %v679_v61, %v679_v61  ;;  %v3361_v31 = vpack.c.bf16 %v679_v61, %v678_v29  ;;  %v393_v29 = vld [vmem:[%s4306_s7 + $0x498] sm:$0xff] }
 0x18b   : > { %6846 = vst [vmem:[#allocation62_spill] sm:$0xff] %v4794_v15  ;;  %3394 = vmatprep.subr.bf16.mxu1 %v3393_v63  ;;  %v395_v15 = vld [vmem:[%s4306_s7 + $0x4a8] sm:$0xff] }
 0x18c   : > { %6847 = vst [vmem:[#allocation63_spill] sm:$0xff] %v4796_v18  ;;  %3362 = vmatprep.subr.bf16.mxu0 %v3361_v31  ;;  %856 = vxpose.xlu1.b32.cont [3/16] %v424_v33, 128  ;;  %v4804_v60 = vpop.trf.xlu1 }
 0x18d   : > { %v4806_v0 = vpop.trf.xlu0  ;;  %792 = vxpose.xlu0.b32.cont [3/16] %v392_v22, 128  ;;  %v4816_v31 = vmul.f32 %v4804_v60, %v4804_v60 }
 0x18e   : > { %v4820_v63 = vmul.f32 %v4806_v0, %v4806_v0 }
 0x18f   : > { %6848 = vst [vmem:[#allocation64_spill] sm:$0xff] %v4816_v31  ;;  %v430_v31 = vld [vmem:[%s4306_s7 + $0x5c0] sm:$0xff] }
 0x190   : > { %857 = vxpose.xlu1.b32.cont [4/16] %v425_v59, 128  ;;  %v4810_v47 = vpop.trf.xlu1  ;;  %6849 = vst [vmem:[#allocation65_spill] sm:$0xff] %v4820_v63  ;;  %v426_v59 = vld [vmem:[%s4306_s7 + $0x5a0] sm:$0xff]  ;;  %v396_v63 = vld [vmem:[%s4306_s7 + $0x4b0] sm:$0xff] }
 0x191   : > { %v4812_v61 = vpop.trf.xlu0  ;;  %v4824_v22 = vmul.f32 %v4810_v47, %v4810_v47  ;;  %793 = vxpose.xlu0.b32.cont [4/16] %v393_v29, 128  ;;  %v427_v29 = vld [vmem:[%s4306_s7 + $0x5a8] sm:$0xff] }
 0x192   : > { %v4828_v33 = vmul.f32 %v4812_v61, %v4812_v61 }
 0x193   : > { %6850 = vst [vmem:[#allocation66_spill] sm:$0xff] %v4824_v22 }
 0x194   : > { %6851 = vst [vmem:[#allocation67_spill] sm:$0xff] %v4828_v33  ;;  %858 = vxpose.xlu1.b32.cont [5/16] %v426_v59, 128  ;;  %v4836_v18 = vpop.trf.xlu1 }
 0x195   : > { %v4838_v49 = vpop.trf.xlu0  ;;  %794 = vxpose.xlu0.b32.cont [5/16] %v394_v19, 128  ;;  %v4848_v1 = vmul.f32 %v4836_v18, %v4836_v18 }
 0x196   : > { %v4852_v59 = vmul.f32 %v4838_v49, %v4838_v49 }
 0x197   : > { %6852 = vst [vmem:[#allocation68_spill] sm:$0xff] %v4848_v1  ;;  %v432_v1 = vld [vmem:[%s4306_s7 + $0x5d0] sm:$0xff] }
 0x198   : > { %859 = vxpose.xlu1.b32.cont [6/16] %v427_v29, 128  ;;  %v4842_v30 = vpop.trf.xlu1  ;;  %6853 = vst [vmem:[#allocation69_spill] sm:$0xff] %v4852_v59  ;;  %v398_v59 = vld [vmem:[%s4306_s7 + $0x4c0] sm:$0xff] }
 0x199   : > { %v4844_v51 = vpop.trf.xlu0  ;;  %v4856_v19 = vmul.f32 %v4842_v30, %v4842_v30  ;;  %795 = vxpose.xlu0.b32.cont [6/16] %v395_v15, 128  ;;  %v429_v15 = vld [vmem:[%s4306_s7 + $0x5b8] sm:$0xff] }
 0x19a   : > { %v4860_v29 = vmul.f32 %v4844_v51, %v4844_v51 }
 0x19b   : > { %6854 = vst [vmem:[#allocation70_spill] sm:$0xff] %v4856_v19 }
 0x19c   : > { %6855 = vst [vmem:[#allocation71_spill] sm:$0xff] %v4860_v29  ;;  %860 = vxpose.xlu1.b32.cont [7/16] %v428_v10, 128  ;;  %v4868_v22 = vpop.trf.xlu1 }
 0x19d   : > { %v4870_v16 = vpop.trf.xlu0  ;;  %796 = vxpose.xlu0.b32.cont [7/16] %v396_v63, 128  ;;  %v4880_v33 = vmul.f32 %v4868_v22, %v4868_v22 }
 0x19e   : > { %v4884_v10 = vmul.f32 %v4870_v16, %v4870_v16 }
 0x19f   : > { %6856 = vst [vmem:[#allocation72_spill] sm:$0xff] %v4880_v33  ;;  %v434_v33 = vld [vmem:[%s4306_s7 + $0x5e0] sm:$0xff] }
 0x1a0   : > { %861 = vxpose.xlu1.b32.cont [8/16] %v429_v15, 128  ;;  %v4874_v2 = vpop.trf.xlu1  ;;  %6857 = vst [vmem:[#allocation73_spill] sm:$0xff] %v4884_v10  ;;  %v400_v10 = vld [vmem:[%s4306_s7 + $0x4d0] sm:$0xff] }
 0x1a1   : > { %v4876_v37 = vpop.trf.xlu0  ;;  %v4888_v63 = vmul.f32 %v4874_v2, %v4874_v2  ;;  %797 = vxpose.xlu0.b32.cont [8/16] %v397_v57, 128  ;;  %v431_v57 = vld [vmem:[%s4306_s7 + $0x5c8] sm:$0xff] }
 0x1a2   : > { %v4892_v15 = vmul.f32 %v4876_v37, %v4876_v37 }
 0x1a3   : > { %6858 = vst [vmem:[#allocation74_spill] sm:$0xff] %v4888_v63 }
 0x1a4   : > { %6859 = vst [vmem:[#allocation75_spill] sm:$0xff] %v4892_v15  ;;  %862 = vxpose.xlu1.b32.cont [9/16] %v430_v31, 128  ;;  %v4900_v19 = vpop.trf.xlu1 }
 0x1a5   : > { %v4902_v62 = vpop.trf.xlu0  ;;  %798 = vxpose.xlu0.b32.cont [9/16] %v398_v59, 128  ;;  %v4912_v29 = vmul.f32 %v4900_v19, %v4900_v19 }
 0x1a6   : > { %v4916_v31 = vmul.f32 %v4902_v62, %v4902_v62 }
 0x1a7   : > { %6860 = vst [vmem:[#allocation76_spill] sm:$0xff] %v4912_v29  ;;  %v436_v29 = vld [vmem:[%s4306_s7 + $0x5f0] sm:$0xff] }
 0x1a8   : > { %863 = vxpose.xlu1.b32.cont [10/16] %v431_v57, 128  ;;  %v4906_v52 = vpop.trf.xlu1  ;;  %6861 = vst [vmem:[#allocation77_spill] sm:$0xff] %v4916_v31  ;;  %v402_v31 = vld [vmem:[%s4306_s7 + $0x4e0] sm:$0xff] }
 0x1a9   : > { %v4908_v23 = vpop.trf.xlu0  ;;  %v4920_v59 = vmul.f32 %v4906_v52, %v4906_v52  ;;  %799 = vxpose.xlu0.b32.cont [10/16] %v399_v58, 128  ;;  %v433_v58 = vld [vmem:[%s4306_s7 + $0x5d8] sm:$0xff] }
 0x1aa   : > { %v4924_v57 = vmul.f32 %v4908_v23, %v4908_v23 }
 0x1ab   : > { %6862 = vst [vmem:[#allocation78_spill] sm:$0xff] %v4920_v59 }
 0x1ac   : > { %6863 = vst [vmem:[#allocation79_spill] sm:$0xff] %v4924_v57  ;;  %864 = vxpose.xlu1.b32.cont [11/16] %v432_v1, 128  ;;  %v4932_v63 = vpop.trf.xlu1 }
 0x1ad   : > { %v4934_v4 = vpop.trf.xlu0  ;;  %800 = vxpose.xlu0.b32.cont [11/16] %v400_v10, 128  ;;  %v4944_v15 = vmul.f32 %v4932_v63, %v4932_v63 }
 0x1ae   : > { %v4948_v1 = vmul.f32 %v4934_v4, %v4934_v4 }
 0x1af   : > { %6864 = vst [vmem:[#allocation80_spill] sm:$0xff] %v4944_v15  ;;  %v406_v15 = vld [vmem:[%s4306_s7 + $0x500] sm:$0xff] }
 0x1b0   : > { %865 = vxpose.xlu1.b32.cont [12/16] %v433_v58, 128  ;;  %v4938_v3 = vpop.trf.xlu1  ;;  %6865 = vst [vmem:[#allocation81_spill] sm:$0xff] %v4948_v1  ;;  %v404_v1 = vld [vmem:[%s4306_s7 + $0x4f0] sm:$0xff] }
 0x1b1   : > { %v4940_v5 = vpop.trf.xlu0  ;;  %v4952_v10 = vmul.f32 %v4938_v3, %v4938_v3  ;;  %801 = vxpose.xlu0.b32.cont [12/16] %v401_v6, 128  ;;  %v435_v6 = vld [vmem:[%s4306_s7 + $0x5e8] sm:$0xff] }
 0x1b2   : > { %v4956_v58 = vmul.f32 %v4940_v5, %v4940_v5 }
 0x1b3   : > { %6866 = vst [vmem:[#allocation82_spill] sm:$0xff] %v4952_v10 }
 0x1b4   : > { %6867 = vst [vmem:[#allocation83_spill] sm:$0xff] %v4956_v58  ;;  %866 = vxpose.xlu1.b32.cont [13/16] %v434_v33, 128  ;;  %v4964_v59 = vpop.trf.xlu1 }
 0x1b5   : > { %v4966_v48 = vpop.trf.xlu0  ;;  %802 = vxpose.xlu0.b32.cont [13/16] %v402_v31, 128  ;;  %v4976_v57 = vmul.f32 %v4964_v59, %v4964_v59 }
 0x1b6   : > { %v4980_v33 = vmul.f32 %v4966_v48, %v4966_v48 }
 0x1b7   : > { %6868 = vst [vmem:[#allocation84_spill] sm:$0xff] %v4976_v57  ;;  %v376_v57 = vld [vmem:[%s4306_s7 + $0x410] sm:$0xff] }
 0x1b8   : > { %867 = vxpose.xlu1.b32.cont [14/16] %v435_v6, 128  ;;  %v4970_v38 = vpop.trf.xlu1  ;;  %6869 = vst [vmem:[#allocation85_spill] sm:$0xff] %v4980_v33  ;;  %v374_v33 = vld [vmem:[%s4306_s7 + $0x400] sm:$0xff] }
 0x1b9   : > { %v4972_v43 = vpop.trf.xlu0  ;;  %v4984_v31 = vmul.f32 %v4970_v38, %v4970_v38  ;;  %803 = vxpose.xlu0.b32.cont [14/16] %v403_v46, 128  ;;  %v437_v46 = vld [vmem:[%s4306_s7 + $0x5f8] sm:$0xff] }
 0x1ba   : > { %v4988_v6 = vmul.f32 %v4972_v43, %v4972_v43 }
 0x1bb   : > { %6870 = vst [vmem:[#allocation86_spill] sm:$0xff] %v4984_v31 }
 0x1bc   : > { %6871 = vst [vmem:[#allocation87_spill] sm:$0xff] %v4988_v6  ;;  %868 = vxpose.xlu1.b32.cont [15/16] %v436_v29, 128  ;;  %v4996_v10 = vpop.trf.xlu1  ;;  %v408_v6 = vld [vmem:[%s4306_s7 + $0x510] sm:$0xff] }
 0x1bd   : > { %v4998_v54 = vpop.trf.xlu0  ;;  %804 = vxpose.xlu0.b32.cont [15/16] %v404_v1, 128  ;;  %v5008_v58 = vmul.f32 %v4996_v10, %v4996_v10 }
 0x1be   : > { %v5012_v29 = vmul.f32 %v4998_v54, %v4998_v54 }
 0x1bf   : > { %6872 = vst [vmem:[#allocation88_spill] sm:$0xff] %v5008_v58 }
 0x1c0   : > { %869 = vxpose.xlu1.b32.end [16/16] %v437_v46, 128  ;;  %v5002_v53 = vpop.trf.xlu1  ;;  %6873 = vst [vmem:[#allocation89_spill] sm:$0xff] %v5012_v29 }
 0x1c1   : > { %v5004_v55 = vpop.trf.xlu0  ;;  %v5016_v1 = vmul.f32 %v5002_v53, %v5002_v53  ;;  %805 = vxpose.xlu0.b32.end [16/16] %v405_v56, 128  ;;  %v375_v56 = vld [vmem:[%s4306_s7 + $0x408] sm:$0xff] }
 0x1c2   : > { %v5020_v46 = vmul.f32 %v5004_v55, %v5004_v55 }
 0x1c3   : > { %6874 = vst [vmem:[#allocation90_spill] sm:$0xff] %v5016_v1 }
 0x1c4   : > { %6875 = vst [vmem:[#allocation91_spill] sm:$0xff] %v5020_v46  ;;  %822 = vxpose.xlu1.b32.start [1/16] %v406_v15, 128  ;;  %v710_v31 = vpop.trf.xlu1  ;;  %v455_v46 = vld [vmem:[%s4306_s7 + $0x688] sm:$0xff] }
 0x1c5   : > { %758 = vxpose.xlu0.b32.start [1/16] %v374_v33, 128  ;;  %v646_v34 = vpop.trf.xlu0  ;;  %v5030_v35 = vmul.f32 %v710_v31, %v710_v31 }
 0x1c6   : > { %v5035_v58 = vmul.f32 %v646_v34, %v646_v34 }
 0x1c7   : > { %6876 = vst [vmem:[#allocation92_spill] sm:$0xff] %v5030_v35 }
 0x1c8   : > { %823 = vxpose.xlu1.b32.cont [2/16] %v407_v50, 128  ;;  %v711_v17 = vpop.trf.xlu1  ;;  %6877 = vst [vmem:[#allocation93_spill] sm:$0xff] %v5035_v58  ;;  %v3397_v50 = vpack.c.bf16 %v4810_v47, %v4804_v60  ;;  %v377_v60 = vld [vmem:[%s4306_s7 + $0x418] sm:$0xff]  ;;  %v472_v58 = vld [vmem:[%s4306_s7 + $0x710] sm:$0xff] }
 0x1c9   : > { %v5032_v40 = vmul.f32 %v711_v17, %v711_v17  ;;  %v3395_v42 = vpack.c.bf16 %v711_v17, %v710_v31  ;;  %759 = vxpose.xlu0.b32.cont [2/16] %v375_v56, 128  ;;  %v647_v39 = vpop.trf.xlu0  ;;  %v3365_v17 = vpack.c.bf16 %v4812_v61, %v4806_v0  ;;  %v378_v31 = vld [vmem:[%s4306_s7 + $0x420] sm:$0xff] }
 0x1ca   : > { %v5037_v15 = vmul.f32 %v647_v39, %v647_v39  ;;  %v3363_v33 = vpack.c.bf16 %v647_v39, %v646_v34  ;;  %v409_v34 = vld [vmem:[%s4306_s7 + $0x518] sm:$0xff] }
 0x1cb   : > { %3396 = vmatpush1.bf16.msra.mxu1 %v3395_v42 }
 0x1cc   : > { %6878 = vst [vmem:[#allocation94_spill] sm:$0xff] %v5037_v15  ;;  %3364 = vmatpush1.bf16.msra.mxu0 %v3363_v33  ;;  %824 = vxpose.xlu1.b32.cont [3/16] %v408_v6, 128  ;;  %v712_v56 = vpop.trf.xlu1  ;;  %v410_v33 = vld [vmem:[%s4306_s7 + $0x520] sm:$0xff] }
 0x1cd   : > { %3398 = vmatprep.subr.bf16.mxu1 %v3397_v50  ;;  %760 = vxpose.xlu0.b32.cont [3/16] %v376_v57, 128  ;;  %v648_v39 = vpop.trf.xlu0  ;;  %v5050_v42 = vmul.f32 %v712_v56, %v712_v56 }
 0x1ce   : > { %3366 = vmatprep.subr.bf16.mxu0 %v3365_v17  ;;  %v5055_v6 = vmul.f32 %v648_v39, %v648_v39  ;;  %v3401_v17 = vpack.c.bf16 %v4842_v30, %v4836_v18  ;;  %v379_v30 = vld [vmem:[%s4306_s7 + $0x428] sm:$0xff] }
 0x1cf   : > { %6879 = vst [vmem:[#allocation95_spill] sm:$0xff] %v5050_v42 }
 0x1d0   : > { %825 = vxpose.xlu1.b32.cont [4/16] %v409_v34, 128  ;;  %v713_v47 = vpop.trf.xlu1  ;;  %6881 = vst [vmem:[#allocation97_spill] sm:$0xff] %v5055_v6 }
 0x1d1   : > { %v5052_v29 = vmul.f32 %v713_v47, %v713_v47  ;;  %v3399_v0 = vpack.c.bf16 %v713_v47, %v712_v56  ;;  %761 = vxpose.xlu0.b32.cont [4/16] %v377_v60, 128  ;;  %v649_v61 = vpop.trf.xlu0  ;;  %v3369_v56 = vpack.c.bf16 %v4844_v51, %v4838_v49  ;;  %v380_v60 = vld [vmem:[%s4306_s7 + $0x430] sm:$0xff] }
 0x1d2   : > { %v5057_v50 = vmul.f32 %v649_v61, %v649_v61  ;;  %v3367_v57 = vpack.c.bf16 %v649_v61, %v648_v39  ;;  %v411_v61 = vld [vmem:[%s4306_s7 + $0x528] sm:$0xff] }
 0x1d3   : > { %6880 = vst [vmem:[#allocation96_spill] sm:$0xff] %v5052_v29  ;;  %3400 = vmatpush1.bf16.msra.mxu1 %v3399_v0 }
 0x1d4   : > { %6882 = vst [vmem:[#allocation98_spill] sm:$0xff] %v5057_v50  ;;  %3368 = vmatpush1.bf16.msra.mxu0 %v3367_v57  ;;  %826 = vxpose.xlu1.b32.cont [5/16] %v410_v33, 128  ;;  %v714_v47 = vpop.trf.xlu1  ;;  %v412_v57 = vld [vmem:[%s4306_s7 + $0x530] sm:$0xff] }
 0x1d5   : > { %3402 = vmatprep.subr.bf16.mxu1 %v3401_v17  ;;  %762 = vxpose.xlu0.b32.cont [5/16] %v378_v31, 128  ;;  %v650_v39 = vpop.trf.xlu0  ;;  %v5070_v0 = vmul.f32 %v714_v47, %v714_v47 }
 0x1d6   : > { %3370 = vmatprep.subr.bf16.mxu0 %v3369_v56  ;;  %v5075_v33 = vmul.f32 %v650_v39, %v650_v39  ;;  %v3405_v56 = vpack.c.bf16 %v4874_v2, %v4868_v22  ;;  %v381_v2 = vld [vmem:[%s4306_s7 + $0x438] sm:$0xff] }
 0x1d7   : > { %6883 = vst [vmem:[#allocation99_spill] sm:$0xff] %v5070_v0 }
 0x1d8   : > { %827 = vxpose.xlu1.b32.cont [6/16] %v411_v61, 128  ;;  %v715_v18 = vpop.trf.xlu1  ;;  %6885 = vst [vmem:[#allocation101_spill] sm:$0xff] %v5075_v33  ;;  %v501_v33 = vld [vmem:[%s4306_s7 + $0x7f8] sm:$0xff] }
 0x1d9   : > { %v5072_v34 = vmul.f32 %v715_v18, %v715_v18  ;;  %v3403_v51 = vpack.c.bf16 %v715_v18, %v714_v47  ;;  %763 = vxpose.xlu0.b32.cont [6/16] %v379_v30, 128  ;;  %v651_v49 = vpop.trf.xlu0  ;;  %v3373_v47 = vpack.c.bf16 %v4876_v37, %v4870_v16  ;;  %v382_v30 = vld [vmem:[%s4306_s7 + $0x440] sm:$0xff] }
 0x1da   : > { %v5077_v17 = vmul.f32 %v651_v49, %v651_v49  ;;  %v3371_v31 = vpack.c.bf16 %v651_v49, %v650_v39  ;;  %v413_v49 = vld [vmem:[%s4306_s7 + $0x538] sm:$0xff] }
 0x1db   : > { %6884 = vst [vmem:[#allocation100_spill] sm:$0xff] %v5072_v34  ;;  %3404 = vmatpush1.bf16.msra.mxu1 %v3403_v51 }
 0x1dc   : > { %6886 = vst [vmem:[#allocation102_spill] sm:$0xff] %v5077_v17  ;;  %3372 = vmatpush1.bf16.msra.mxu0 %v3371_v31  ;;  %828 = vxpose.xlu1.b32.cont [7/16] %v412_v57, 128  ;;  %v716_v18 = vpop.trf.xlu1  ;;  %v414_v31 = vld [vmem:[%s4306_s7 + $0x540] sm:$0xff]  ;;  %v469_v17 = vld [vmem:[%s4306_s7 + $0x6f8] sm:$0xff] }
 0x1dd   : > { %3406 = vmatprep.subr.bf16.mxu1 %v3405_v56  ;;  %764 = vxpose.xlu0.b32.cont [7/16] %v380_v60, 128  ;;  %v652_v39 = vpop.trf.xlu0  ;;  %v5090_v51 = vmul.f32 %v716_v18, %v716_v18 }
 0x1de   : > { %3374 = vmatprep.subr.bf16.mxu0 %v3373_v47  ;;  %v5095_v57 = vmul.f32 %v652_v39, %v652_v39  ;;  %v3409_v47 = vpack.c.bf16 %v4906_v52, %v4900_v19  ;;  %v383_v52 = vld [vmem:[%s4306_s7 + $0x448] sm:$0xff] }
 0x1df   : > { %6887 = vst [vmem:[#allocation103_spill] sm:$0xff] %v5090_v51 }
 0x1e0   : > { %829 = vxpose.xlu1.b32.cont [8/16] %v413_v49, 128  ;;  %v717_v22 = vpop.trf.xlu1  ;;  %6889 = vst [vmem:[#allocation105_spill] sm:$0xff] %v5095_v57  ;;  %v499_v57 = vld [vmem:[%s4306_s7 + $0x7e8] sm:$0xff] }
 0x1e1   : > { %v5092_v61 = vmul.f32 %v717_v22, %v717_v22  ;;  %v3407_v37 = vpack.c.bf16 %v717_v22, %v716_v18  ;;  %765 = vxpose.xlu0.b32.cont [8/16] %v381_v2, 128  ;;  %v653_v16 = vpop.trf.xlu0  ;;  %v3377_v18 = vpack.c.bf16 %v4908_v23, %v4902_v62  ;;  %v384_v2 = vld [vmem:[%s4306_s7 + $0x450] sm:$0xff] }
 0x1e2   : > { %v5097_v56 = vmul.f32 %v653_v16, %v653_v16  ;;  %v3375_v60 = vpack.c.bf16 %v653_v16, %v652_v39  ;;  %v415_v16 = vld [vmem:[%s4306_s7 + $0x548] sm:$0xff] }
 0x1e3   : > { %6888 = vst [vmem:[#allocation104_spill] sm:$0xff] %v5092_v61  ;;  %3408 = vmatpush1.bf16.msra.mxu1 %v3407_v37 }
 0x1e4   : > { %6890 = vst [vmem:[#allocation106_spill] sm:$0xff] %v5097_v56  ;;  %3376 = vmatpush1.bf16.msra.mxu0 %v3375_v60  ;;  %830 = vxpose.xlu1.b32.cont [9/16] %v414_v31, 128  ;;  %v718_v22 = vpop.trf.xlu1  ;;  %v416_v60 = vld [vmem:[%s4306_s7 + $0x550] sm:$0xff]  ;;  %v467_v56 = vld [vmem:[%s4306_s7 + $0x6e8] sm:$0xff] }
 0x1e5   : > { %3410 = vmatprep.subr.bf16.mxu1 %v3409_v47  ;;  %766 = vxpose.xlu0.b32.cont [9/16] %v382_v30, 128  ;;  %v654_v39 = vpop.trf.xlu0  ;;  %v5110_v37 = vmul.f32 %v718_v22, %v718_v22 }
 0x1e6   : > { %3378 = vmatprep.subr.bf16.mxu0 %v3377_v18  ;;  %v5115_v31 = vmul.f32 %v654_v39, %v654_v39  ;;  %v3413_v18 = vpack.c.bf16 %v4938_v3, %v4932_v63  ;;  %v385_v3 = vld [vmem:[%s4306_s7 + $0x458] sm:$0xff] }
 0x1e7   : > { %6891 = vst [vmem:[#allocation107_spill] sm:$0xff] %v5110_v37 }
 0x1e8   : > { %831 = vxpose.xlu1.b32.cont [10/16] %v415_v16, 128  ;;  %v719_v19 = vpop.trf.xlu1  ;;  %6893 = vst [vmem:[#allocation109_spill] sm:$0xff] %v5115_v31  ;;  %v497_v31 = vld [vmem:[%s4306_s7 + $0x7d8] sm:$0xff] }
 0x1e9   : > { %v5112_v49 = vmul.f32 %v719_v19, %v719_v19  ;;  %v3411_v23 = vpack.c.bf16 %v719_v19, %v718_v22  ;;  %767 = vxpose.xlu0.b32.cont [10/16] %v383_v52, 128  ;;  %v655_v62 = vpop.trf.xlu0  ;;  %v3381_v22 = vpack.c.bf16 %v4940_v5, %v4934_v4  ;;  %v386_v52 = vld [vmem:[%s4306_s7 + $0x460] sm:$0xff] }
 0x1ea   : > { %v5117_v47 = vmul.f32 %v655_v62, %v655_v62  ;;  %v3379_v30 = vpack.c.bf16 %v655_v62, %v654_v39  ;;  %v417_v62 = vld [vmem:[%s4306_s7 + $0x558] sm:$0xff] }
 0x1eb   : > { %6892 = vst [vmem:[#allocation108_spill] sm:$0xff] %v5112_v49  ;;  %3412 = vmatpush1.bf16.msra.mxu1 %v3411_v23 }
 0x1ec   : > { %6894 = vst [vmem:[#allocation110_spill] sm:$0xff] %v5117_v47  ;;  %3380 = vmatpush1.bf16.msra.mxu0 %v3379_v30  ;;  %832 = vxpose.xlu1.b32.cont [11/16] %v416_v60, 128  ;;  %v720_v19 = vpop.trf.xlu1  ;;  %v418_v30 = vld [vmem:[%s4306_s7 + $0x560] sm:$0xff]  ;;  %v465_v47 = vld [vmem:[%s4306_s7 + $0x6d8] sm:$0xff] }
 0x1ed   : > { %3414 = vmatprep.subr.bf16.mxu1 %v3413_v18  ;;  %768 = vxpose.xlu0.b32.cont [11/16] %v384_v2, 128  ;;  %v656_v39 = vpop.trf.xlu0  ;;  %v5130_v23 = vmul.f32 %v720_v19, %v720_v19 }
 0x1ee   : > { %3382 = vmatprep.subr.bf16.mxu0 %v3381_v22  ;;  %v5135_v60 = vmul.f32 %v656_v39, %v656_v39  ;;  %v3417_v22 = vpack.c.bf16 %v4970_v38, %v4964_v59  ;;  %v387_v38 = vld [vmem:[%s4306_s7 + $0x468] sm:$0xff] }
 0x1ef   : > { %6895 = vst [vmem:[#allocation111_spill] sm:$0xff] %v5130_v23 }
 0x1f0   : > { %833 = vxpose.xlu1.b32.cont [12/16] %v417_v62, 128  ;;  %v721_v63 = vpop.trf.xlu1  ;;  %6897 = vst [vmem:[#allocation113_spill] sm:$0xff] %v5135_v60  ;;  %v495_v60 = vld [vmem:[%s4306_s7 + $0x7c8] sm:$0xff] }
 0x1f1   : > { %v5132_v16 = vmul.f32 %v721_v63, %v721_v63  ;;  %v3415_v4 = vpack.c.bf16 %v721_v63, %v720_v19  ;;  %769 = vxpose.xlu0.b32.cont [12/16] %v385_v3, 128  ;;  %v657_v5 = vpop.trf.xlu0  ;;  %v3385_v19 = vpack.c.bf16 %v4972_v43, %v4966_v48  ;;  %v388_v3 = vld [vmem:[%s4306_s7 + $0x470] sm:$0xff] }
 0x1f2   : > { %v5137_v18 = vmul.f32 %v657_v5, %v657_v5  ;;  %v3383_v2 = vpack.c.bf16 %v657_v5, %v656_v39  ;;  %v419_v5 = vld [vmem:[%s4306_s7 + $0x568] sm:$0xff] }
 0x1f3   : > { %6896 = vst [vmem:[#allocation112_spill] sm:$0xff] %v5132_v16  ;;  %3416 = vmatpush1.bf16.msra.mxu1 %v3415_v4 }
 0x1f4   : > { %6898 = vst [vmem:[#allocation114_spill] sm:$0xff] %v5137_v18  ;;  %3384 = vmatpush1.bf16.msra.mxu0 %v3383_v2  ;;  %834 = vxpose.xlu1.b32.cont [13/16] %v418_v30, 128  ;;  %v722_v63 = vpop.trf.xlu1  ;;  %v420_v2 = vld [vmem:[%s4306_s7 + $0x570] sm:$0xff]  ;;  %v463_v18 = vld [vmem:[%s4306_s7 + $0x6c8] sm:$0xff] }
 0x1f5   : > { %3418 = vmatprep.subr.bf16.mxu1 %v3417_v22  ;;  %770 = vxpose.xlu0.b32.cont [13/16] %v386_v52, 128  ;;  %v658_v39 = vpop.trf.xlu0  ;;  %v5150_v4 = vmul.f32 %v722_v63, %v722_v63 }
 0x1f6   : > { %3386 = vmatprep.subr.bf16.mxu0 %v3385_v19  ;;  %v5155_v30 = vmul.f32 %v658_v39, %v658_v39  ;;  %v3421_v19 = vpack.c.bf16 %v5002_v53, %v4996_v10  ;;  %v389_v53 = vld [vmem:[%s4306_s7 + $0x478] sm:$0xff] }
 0x1f7   : > { %6899 = vst [vmem:[#allocation115_spill] sm:$0xff] %v5150_v4 }
 0x1f8   : > { %835 = vxpose.xlu1.b32.cont [14/16] %v419_v5, 128  ;;  %v723_v59 = vpop.trf.xlu1  ;;  %6901 = vst [vmem:[#allocation117_spill] sm:$0xff] %v5155_v30  ;;  %v493_v30 = vld [vmem:[%s4306_s7 + $0x7b8] sm:$0xff] }
 0x1f9   : > { %v5152_v62 = vmul.f32 %v723_v59, %v723_v59  ;;  %v3419_v43 = vpack.c.bf16 %v723_v59, %v722_v63  ;;  %771 = vxpose.xlu0.b32.cont [14/16] %v387_v38, 128  ;;  %v659_v48 = vpop.trf.xlu0  ;;  %v3389_v63 = vpack.c.bf16 %v5004_v55, %v4998_v54  ;;  %v454_v38 = vld [vmem:[%s4306_s7 + $0x680] sm:$0xff] }
 0x1fa   : > { %v5157_v22 = vmul.f32 %v659_v48, %v659_v48  ;;  %v3387_v52 = vpack.c.bf16 %v659_v48, %v658_v39  ;;  %v421_v48 = vld [vmem:[%s4306_s7 + $0x578] sm:$0xff] }
 0x1fb   : > { %6900 = vst [vmem:[#allocation116_spill] sm:$0xff] %v5152_v62  ;;  %3420 = vmatpush1.bf16.msra.mxu1 %v3419_v43 }
 0x1fc   : > { %6902 = vst [vmem:[#allocation118_spill] sm:$0xff] %v5157_v22  ;;  %3388 = vmatpush1.bf16.msra.mxu0 %v3387_v52  ;;  %836 = vxpose.xlu1.b32.cont [15/16] %v420_v2, 128  ;;  %v724_v59 = vpop.trf.xlu1  ;;  %v486_v2 = vld [vmem:[%s4306_s7 + $0x780] sm:$0xff]  ;;  %v461_v22 = vld [vmem:[%s4306_s7 + $0x6b8] sm:$0xff] }
 0x1fd   : > { %3422 = vmatprep.subr.bf16.mxu1 %v3421_v19  ;;  %772 = vxpose.xlu0.b32.cont [15/16] %v388_v3, 128  ;;  %v660_v39 = vpop.trf.xlu0  ;;  %v5170_v43 = vmul.f32 %v724_v59, %v724_v59 }
 0x1fe   : > { %3390 = vmatprep.subr.bf16.mxu0 %v3389_v63  ;;  %v5175_v52 = vmul.f32 %v660_v39, %v660_v39 }
 0x1ff   : > { %6903 = vst [vmem:[#allocation119_spill] sm:$0xff] %v5170_v43  ;;  %v457_v43 = vld [vmem:[%s4306_s7 + $0x698] sm:$0xff] }
 0x200   : > { %837 = vxpose.xlu1.b32.end [16/16] %v421_v48, 128  ;;  %v725_v10 = vpop.trf.xlu1  ;;  %6905 = vst [vmem:[#allocation121_spill] sm:$0xff] %v5175_v52  ;;  %v456_v52 = vld [vmem:[%s4306_s7 + $0x690] sm:$0xff] }
 0x201   : > { %v5172_v5 = vmul.f32 %v725_v10, %v725_v10  ;;  %v3423_v54 = vpack.c.bf16 %v725_v10, %v724_v59  ;;  %773 = vxpose.xlu0.b32.end [16/16] %v389_v53, 128  ;;  %v661_v55 = vpop.trf.xlu0  ;;  %v487_v10 = vld [vmem:[%s4306_s7 + $0x788] sm:$0xff] }
 0x202   : > { %v5177_v3 = vmul.f32 %v661_v55, %v661_v55  ;;  %v3391_v19 = vpack.c.bf16 %v661_v55, %v660_v39 }
 0x203   : > { %6904 = vst [vmem:[#allocation120_spill] sm:$0xff] %v5172_v5  ;;  %3424 = vmatpush1.bf16.msra.mxu1 %v3423_v54 }
 0x204   : > { %6906 = vst [vmem:[#allocation122_spill] sm:$0xff] %v5177_v3  ;;  %3392 = vmatpush1.bf16.msra.mxu0 %v3391_v19  ;;  %982 = vxpose.xlu1.b32.start [1/16] %v486_v2, 128  ;;  %v870_v59 = vpop.trf.xlu1  ;;  %v488_v19 = vld [vmem:[%s4306_s7 + $0x790] sm:$0xff]  ;;  %v458_v3 = vld [vmem:[%s4306_s7 + $0x6a0] sm:$0xff] }
 0x205   : > { %918 = vxpose.xlu0.b32.start [1/16] %v454_v38, 128  ;;  %v806_v53 = vpop.trf.xlu0  ;;  %v5190_v54 = vmul.f32 %v870_v59, %v870_v59 }
 0x206   : > { %1550 = vmatmul.mubr.f32.vlgmr.msra.gmra.mrb[2].mxu1 %v4782_v32  ;;  %v5195_v48 = vmul.f32 %v806_v53, %v806_v53 }
 0x207   : > { %1479 = vmatmul.mubr.f32.vlgmr.msra.gmra.mrb[2].mxu0 %v4782_v32  ;;  %1691 = vmatprep.mubr.f32.mxu1 %v6843_v21  ;;  %6907 = vst [vmem:[#allocation123_spill] sm:$0xff] %v5190_v54  ;;  %v491_v54 = vld [vmem:[%s4306_s7 + $0x7a8] sm:$0xff] }
 0x208   : > { %983 = vxpose.xlu1.b32.cont [2/16] %v487_v10, 128  ;;  %v871_v39 = vpop.trf.xlu1  ;;  %1620 = vmatprep.mubr.f32.mxu0 %v6843_v21  ;;  %6909 = vst [vmem:[#allocation125_spill] sm:$0xff] %v5195_v48 }
 0x209   : > { %v5192_v55 = vmul.f32 %v871_v39, %v871_v39  ;;  %v3457_v2 = vpack.c.bf16 %v871_v39, %v870_v59  ;;  %919 = vxpose.xlu0.b32.cont [2/16] %v455_v46, 128  ;;  %v807_v38 = vpop.trf.xlu0  ;;  %v489_v39 = vld [vmem:[%s4306_s7 + $0x798] sm:$0xff] }
 0x20a   : > { %v5197_v63 = vmul.f32 %v807_v38, %v807_v38  ;;  %v3425_v32 = vpack.c.bf16 %v807_v38, %v806_v53 }
 0x20b   : > { %6908 = vst [vmem:[#allocation124_spill] sm:$0xff] %v5192_v55  ;;  %3458 = vmatprep.subr.bf16.mxu1 %v3457_v2  ;;  %v459_v55 = vld [vmem:[%s4306_s7 + $0x6a8] sm:$0xff] }
 0x20c   : > { %6910 = vst [vmem:[#allocation126_spill] sm:$0xff] %v5197_v63  ;;  %3426 = vmatprep.subr.bf16.mxu0 %v3425_v32  ;;  %984 = vxpose.xlu1.b32.cont [3/16] %v488_v19, 128  ;;  %v5204_v46 = vpop.trf.xlu1 }
 0x20d   : > { %920 = vxpose.xlu0.b32.cont [3/16] %v456_v52, 128  ;;  %v5206_v59 = vpop.trf.xlu0  ;;  %v5214_v2 = vmul.f32 %v5204_v46, %v5204_v46  ;;  %v490_v52 = vld [vmem:[%s4306_s7 + $0x7a0] sm:$0xff] }
 0x20e   : > { %v5225_v32 = vmul.f32 %v5206_v59, %v5206_v59 }
 0x20f   : > { %6911 = vst [vmem:[#allocation127_spill] sm:$0xff] %v5214_v2 }
 0x210   : > { %985 = vxpose.xlu1.b32.cont [4/16] %v489_v39, 128  ;;  %v5210_v53 = vpop.trf.xlu1  ;;  %6913 = vst [vmem:[#allocation129_spill] sm:$0xff] %v5225_v32 }
 0x211   : > { %v5218_v38 = vmul.f32 %v5210_v53, %v5210_v53  ;;  %921 = vxpose.xlu0.b32.cont [4/16] %v457_v43, 128  ;;  %v5220_v19 = vpop.trf.xlu0 }
 0x212   : > { %v5229_v39 = vmul.f32 %v5220_v19, %v5220_v19 }
 0x213   : > { %6912 = vst [vmem:[#allocation128_spill] sm:$0xff] %v5218_v38 }
 0x214   : > { %6914 = vst [vmem:[#allocation130_spill] sm:$0xff] %v5229_v39  ;;  %986 = vxpose.xlu1.b32.cont [5/16] %v490_v52, 128  ;;  %v5236_v43 = vpop.trf.xlu1  ;;  %v460_v39 = vld [vmem:[%s4306_s7 + $0x6b0] sm:$0xff] }
 0x215   : > { %922 = vxpose.xlu0.b32.cont [5/16] %v458_v3, 128  ;;  %v5238_v63 = vpop.trf.xlu0  ;;  %v5246_v10 = vmul.f32 %v5236_v43, %v5236_v43  ;;  %v492_v3 = vld [vmem:[%s4306_s7 + $0x7b0] sm:$0xff] }
 0x216   : > { %v5257_v32 = vmul.f32 %v5238_v63, %v5238_v63 }
 0x217   : > { %6915 = vst [vmem:[#allocation131_spill] sm:$0xff] %v5246_v10 }
 0x218   : > { %987 = vxpose.xlu1.b32.cont [6/16] %v491_v54, 128  ;;  %v5242_v5 = vpop.trf.xlu1  ;;  %6917 = vst [vmem:[#allocation133_spill] sm:$0xff] %v5257_v32 }
 0x219   : > { %v5250_v48 = vmul.f32 %v5242_v5, %v5242_v5  ;;  %923 = vxpose.xlu0.b32.cont [6/16] %v459_v55, 128  ;;  %v5252_v52 = vpop.trf.xlu0 }
 0x21a   : > { %v5261_v54 = vmul.f32 %v5252_v52, %v5252_v52 }
 0x21b   : > { %6916 = vst [vmem:[#allocation132_spill] sm:$0xff] %v5250_v48 }
 0x21c   : > { %6918 = vst [vmem:[#allocation134_spill] sm:$0xff] %v5261_v54  ;;  %988 = vxpose.xlu1.b32.cont [7/16] %v492_v3, 128  ;;  %v5268_v55 = vpop.trf.xlu1  ;;  %v462_v54 = vld [vmem:[%s4306_s7 + $0x6c0] sm:$0xff] }
 0x21d   : > { %924 = vxpose.xlu0.b32.cont [7/16] %v460_v39, 128  ;;  %v5270_v1 = vpop.trf.xlu0  ;;  %v5278_v2 = vmul.f32 %v5268_v55, %v5268_v55  ;;  %v494_v39 = vld [vmem:[%s4306_s7 + $0x7c0] sm:$0xff] }
 0x21e   : > { %v5289_v32 = vmul.f32 %v5270_v1, %v5270_v1 }
 0x21f   : > { %6919 = vst [vmem:[#allocation135_spill] sm:$0xff] %v5278_v2 }
 0x220   : > { %989 = vxpose.xlu1.b32.cont [8/16] %v493_v30, 128  ;;  %v5274_v4 = vpop.trf.xlu1  ;;  %6921 = vst [vmem:[#allocation137_spill] sm:$0xff] %v5289_v32 }
 0x221   : > { %v5282_v38 = vmul.f32 %v5274_v4, %v5274_v4  ;;  %925 = vxpose.xlu0.b32.cont [8/16] %v461_v22, 128  ;;  %v5284_v3 = vpop.trf.xlu0 }
 0x222   : > { %v5293_v30 = vmul.f32 %v5284_v3, %v5284_v3 }
 0x223   : > { %6920 = vst [vmem:[#allocation136_spill] sm:$0xff] %v5282_v38 }
 0x224   : > { %6922 = vst [vmem:[#allocation138_spill] sm:$0xff] %v5293_v30  ;;  %990 = vxpose.xlu1.b32.cont [9/16] %v494_v39, 128  ;;  %v5300_v22 = vpop.trf.xlu1  ;;  %v464_v30 = vld [vmem:[%s4306_s7 + $0x6d0] sm:$0xff] }
 0x225   : > { %926 = vxpose.xlu0.b32.cont [9/16] %v462_v54, 128  ;;  %v5302_v62 = vpop.trf.xlu0  ;;  %v5310_v10 = vmul.f32 %v5300_v22, %v5300_v22  ;;  %v496_v54 = vld [vmem:[%s4306_s7 + $0x7d0] sm:$0xff] }
 0x226   : > { %v5321_v32 = vmul.f32 %v5302_v62, %v5302_v62 }
 0x227   : > { %6923 = vst [vmem:[#allocation139_spill] sm:$0xff] %v5310_v10 }
 0x228   : > { %991 = vxpose.xlu1.b32.cont [10/16] %v495_v60, 128  ;;  %v5306_v23 = vpop.trf.xlu1  ;;  %6925 = vst [vmem:[#allocation141_spill] sm:$0xff] %v5321_v32 }
 0x229   : > { %v5314_v48 = vmul.f32 %v5306_v23, %v5306_v23  ;;  %927 = vxpose.xlu0.b32.cont [10/16] %v463_v18, 128  ;;  %v5316_v39 = vpop.trf.xlu0 }
 0x22a   : > { %v5325_v60 = vmul.f32 %v5316_v39, %v5316_v39 }
 0x22b   : > { %6924 = vst [vmem:[#allocation140_spill] sm:$0xff] %v5314_v48 }
 0x22c   : > { %6926 = vst [vmem:[#allocation142_spill] sm:$0xff] %v5325_v60  ;;  %992 = vxpose.xlu1.b32.cont [11/16] %v496_v54, 128  ;;  %v5332_v18 = vpop.trf.xlu1  ;;  %v466_v60 = vld [vmem:[%s4306_s7 + $0x6e0] sm:$0xff] }
 0x22d   : > { %928 = vxpose.xlu0.b32.cont [11/16] %v464_v30, 128  ;;  %v5334_v16 = vpop.trf.xlu0  ;;  %v5342_v2 = vmul.f32 %v5332_v18, %v5332_v18  ;;  %v498_v30 = vld [vmem:[%s4306_s7 + $0x7e0] sm:$0xff] }
 0x22e   : > { %v5353_v32 = vmul.f32 %v5334_v16, %v5334_v16 }
 0x22f   : > { %6927 = vst [vmem:[#allocation143_spill] sm:$0xff] %v5342_v2  ;;  %v438_v2 = vld [vmem:[%s4306_s7 + $0x600] sm:$0xff] }
 0x230   : > { %993 = vxpose.xlu1.b32.cont [12/16] %v497_v31, 128  ;;  %v5338_v37 = vpop.trf.xlu1  ;;  %6929 = vst [vmem:[#allocation145_spill] sm:$0xff] %v5353_v32 }
 0x231   : > { %v5346_v38 = vmul.f32 %v5338_v37, %v5338_v37  ;;  %929 = vxpose.xlu0.b32.cont [12/16] %v465_v47, 128  ;;  %v5348_v54 = vpop.trf.xlu0 }
 0x232   : > { %v5357_v31 = vmul.f32 %v5348_v54, %v5348_v54 }
 0x233   : > { %6928 = vst [vmem:[#allocation144_spill] sm:$0xff] %v5346_v38 }
 0x234   : > { %6930 = vst [vmem:[#allocation146_spill] sm:$0xff] %v5357_v31  ;;  %994 = vxpose.xlu1.b32.cont [13/16] %v498_v30, 128  ;;  %v5364_v47 = vpop.trf.xlu1  ;;  %v468_v31 = vld [vmem:[%s4306_s7 + $0x6f0] sm:$0xff] }
 0x235   : > { %930 = vxpose.xlu0.b32.cont [13/16] %v466_v60, 128  ;;  %v5366_v49 = vpop.trf.xlu0  ;;  %v5374_v10 = vmul.f32 %v5364_v47, %v5364_v47  ;;  %v500_v60 = vld [vmem:[%s4306_s7 + $0x7f0] sm:$0xff] }
 0x236   : > { %v5385_v32 = vmul.f32 %v5366_v49, %v5366_v49 }
 0x237   : > { %6931 = vst [vmem:[#allocation147_spill] sm:$0xff] %v5374_v10  ;;  %v471_v10 = vld [vmem:[%s4306_s7 + $0x708] sm:$0xff] }
 0x238   : > { %995 = vxpose.xlu1.b32.cont [14/16] %v499_v57, 128  ;;  %v5370_v51 = vpop.trf.xlu1  ;;  %6933 = vst [vmem:[#allocation149_spill] sm:$0xff] %v5385_v32  ;;  %v440_v32 = vld [vmem:[%s4306_s7 + $0x610] sm:$0xff] }
 0x239   : > { %v5378_v48 = vmul.f32 %v5370_v51, %v5370_v51  ;;  %931 = vxpose.xlu0.b32.cont [14/16] %v467_v56, 128  ;;  %v5380_v30 = vpop.trf.xlu0 }
 0x23a   : > { %v5389_v57 = vmul.f32 %v5380_v30, %v5380_v30 }
 0x23b   : > { %6932 = vst [vmem:[#allocation148_spill] sm:$0xff] %v5378_v48  ;;  %v439_v48 = vld [vmem:[%s4306_s7 + $0x608] sm:$0xff] }
 0x23c   : > { %6934 = vst [vmem:[#allocation150_spill] sm:$0xff] %v5389_v57  ;;  %996 = vxpose.xlu1.b32.cont [15/16] %v500_v60, 128  ;;  %v5396_v38 = vpop.trf.xlu1 }
 0x23d   : > { %932 = vxpose.xlu0.b32.cont [15/16] %v468_v31, 128  ;;  %v5398_v61 = vpop.trf.xlu0  ;;  %v5406_v34 = vmul.f32 %v5396_v38, %v5396_v38  ;;  %v470_v31 = vld [vmem:[%s4306_s7 + $0x700] sm:$0xff] }
 0x23e   : > { %6935 = vst [vmem:[#allocation151_spill] sm:$0xff] %v5398_v61 }
 0x23f   : > { %6936 = vst [vmem:[#allocation152_spill] sm:$0xff] %v5406_v34 }
 0x240   : > { %997 = vxpose.xlu1.b32.end [16/16] %v501_v33, 128  ;;  %v5402_v0 = vpop.trf.xlu1 }
 0x241   : > { %v5410_v56 = vmul.f32 %v5402_v0, %v5402_v0  ;;  %933 = vxpose.xlu0.b32.end [16/16] %v469_v17, 128  ;;  %v5412_v60 = vpop.trf.xlu0 }
 0x242   : > { %6938 = vst [vmem:[#allocation154_spill] sm:$0xff] %v5412_v60 }
 0x243   : > { %6937 = vst [vmem:[#allocation153_spill] sm:$0xff] %v5410_v56  ;;  %v453_v56 = vld [vmem:[%s4306_s7 + $0x678] sm:$0xff] }
 0x244   : > { %950 = vxpose.xlu1.b32.start [1/16] %v470_v31, 128  ;;  %v838_v33 = vpop.trf.xlu1 }
 0x245   : > { %886 = vxpose.xlu0.b32.start [1/16] %v438_v2, 128  ;;  %v774_v57 = vpop.trf.xlu0  ;;  %v5420_v50 = vmul.f32 %v838_v33, %v838_v33 }
 0x246   : > { %v5425_v15 = vmul.f32 %v774_v57, %v774_v57 }
 0x247   : > { %6939 = vst [vmem:[#allocation155_spill] sm:$0xff] %v5420_v50 }
 0x248   : > { %951 = vxpose.xlu1.b32.cont [2/16] %v471_v10, 128  ;;  %v839_v6 = vpop.trf.xlu1  ;;  %6941 = vst [vmem:[#allocation157_spill] sm:$0xff] %v5425_v15  ;;  %v3461_v10 = vpack.c.bf16 %v5210_v53, %v5204_v46  ;;  %v441_v46 = vld [vmem:[%s4306_s7 + $0x618] sm:$0xff] }
 0x249   : > { %v5422_v17 = vmul.f32 %v839_v6, %v839_v6  ;;  %v3459_v42 = vpack.c.bf16 %v839_v6, %v838_v33  ;;  %887 = vxpose.xlu0.b32.cont [2/16] %v439_v48, 128  ;;  %v775_v29 = vpop.trf.xlu0  ;;  %v3429_v6 = vpack.c.bf16 %v5220_v19, %v5206_v59  ;;  %v442_v48 = vld [vmem:[%s4306_s7 + $0x620] sm:$0xff] }
 0x24a   : > { %v5427_v31 = vmul.f32 %v775_v29, %v775_v29  ;;  %v3427_v2 = vpack.c.bf16 %v775_v29, %v774_v57  ;;  %v473_v57 = vld [vmem:[%s4306_s7 + $0x718] sm:$0xff] }
 0x24b   : > { %6940 = vst [vmem:[#allocation156_spill] sm:$0xff] %v5422_v17  ;;  %3460 = vmatpush1.bf16.msra.mxu1 %v3459_v42 }
 0x24c   : > { %6942 = vst [vmem:[#allocation158_spill] sm:$0xff] %v5427_v31  ;;  %3428 = vmatpush1.bf16.msra.mxu0 %v3427_v2  ;;  %952 = vxpose.xlu1.b32.cont [3/16] %v472_v58, 128  ;;  %v840_v33 = vpop.trf.xlu1  ;;  %v474_v2 = vld [vmem:[%s4306_s7 + $0x720] sm:$0xff] }
 0x24d   : > { %3462 = vmatprep.subr.bf16.mxu1 %v3461_v10  ;;  %888 = vxpose.xlu0.b32.cont [3/16] %v440_v32, 128  ;;  %v776_v29 = vpop.trf.xlu0  ;;  %v5440_v42 = vmul.f32 %v840_v33, %v840_v33 }
 0x24e   : > { %3430 = vmatprep.subr.bf16.mxu0 %v3429_v6  ;;  %v5445_v58 = vmul.f32 %v776_v29, %v776_v29  ;;  %v3465_v6 = vpack.c.bf16 %v5242_v5, %v5236_v43  ;;  %v443_v5 = vld [vmem:[%s4306_s7 + $0x628] sm:$0xff] }
 0x24f   : > { %6943 = vst [vmem:[#allocation159_spill] sm:$0xff] %v5440_v42 }
 0x250   : > { %953 = vxpose.xlu1.b32.cont [4/16] %v473_v57, 128  ;;  %v841_v53 = vpop.trf.xlu1  ;;  %6945 = vst [vmem:[#allocation161_spill] sm:$0xff] %v5445_v58 }
 0x251   : > { %v5442_v34 = vmul.f32 %v841_v53, %v841_v53  ;;  %v3463_v59 = vpack.c.bf16 %v841_v53, %v840_v33  ;;  %889 = vxpose.xlu0.b32.cont [4/16] %v441_v46, 128  ;;  %v777_v19 = vpop.trf.xlu0  ;;  %v3433_v33 = vpack.c.bf16 %v5252_v52, %v5238_v63  ;;  %v444_v46 = vld [vmem:[%s4306_s7 + $0x630] sm:$0xff] }
 0x252   : > { %v5447_v10 = vmul.f32 %v777_v19, %v777_v19  ;;  %v3431_v32 = vpack.c.bf16 %v777_v19, %v776_v29  ;;  %v475_v19 = vld [vmem:[%s4306_s7 + $0x728] sm:$0xff] }
 0x253   : > { %6944 = vst [vmem:[#allocation160_spill] sm:$0xff] %v5442_v34  ;;  %3464 = vmatpush1.bf16.msra.mxu1 %v3463_v59 }
 0x254   : > { %6946 = vst [vmem:[#allocation162_spill] sm:$0xff] %v5447_v10  ;;  %3432 = vmatpush1.bf16.msra.mxu0 %v3431_v32  ;;  %954 = vxpose.xlu1.b32.cont [5/16] %v474_v2, 128  ;;  %v842_v53 = vpop.trf.xlu1  ;;  %v476_v32 = vld [vmem:[%s4306_s7 + $0x730] sm:$0xff] }
 0x255   : > { %3466 = vmatprep.subr.bf16.mxu1 %v3465_v6  ;;  %890 = vxpose.xlu0.b32.cont [5/16] %v442_v48, 128  ;;  %v778_v29 = vpop.trf.xlu0  ;;  %v5460_v59 = vmul.f32 %v842_v53, %v842_v53 }
 0x256   : > { %3434 = vmatprep.subr.bf16.mxu0 %v3433_v33  ;;  %v5465_v2 = vmul.f32 %v778_v29, %v778_v29  ;;  %v3469_v33 = vpack.c.bf16 %v5274_v4, %v5268_v55  ;;  %v445_v4 = vld [vmem:[%s4306_s7 + $0x638] sm:$0xff] }
 0x257   : > { %6947 = vst [vmem:[#allocation163_spill] sm:$0xff] %v5460_v59 }
 0x258   : > { %955 = vxpose.xlu1.b32.cont [6/16] %v475_v19, 128  ;;  %v843_v43 = vpop.trf.xlu1  ;;  %6949 = vst [vmem:[#allocation165_spill] sm:$0xff] %v5465_v2 }
 0x259   : > { %v5462_v57 = vmul.f32 %v843_v43, %v843_v43  ;;  %v3467_v63 = vpack.c.bf16 %v843_v43, %v842_v53  ;;  %891 = vxpose.xlu0.b32.cont [6/16] %v443_v5, 128  ;;  %v779_v52 = vpop.trf.xlu0  ;;  %v3437_v53 = vpack.c.bf16 %v5284_v3, %v5270_v1  ;;  %v446_v5 = vld [vmem:[%s4306_s7 + $0x640] sm:$0xff] }
 0x25a   : > { %v5467_v6 = vmul.f32 %v779_v52, %v779_v52  ;;  %v3435_v48 = vpack.c.bf16 %v779_v52, %v778_v29  ;;  %v477_v52 = vld [vmem:[%s4306_s7 + $0x738] sm:$0xff] }
 0x25b   : > { %6948 = vst [vmem:[#allocation164_spill] sm:$0xff] %v5462_v57  ;;  %3468 = vmatpush1.bf16.msra.mxu1 %v3467_v63 }
 0x25c   : > { %6950 = vst [vmem:[#allocation166_spill] sm:$0xff] %v5467_v6  ;;  %3436 = vmatpush1.bf16.msra.mxu0 %v3435_v48  ;;  %956 = vxpose.xlu1.b32.cont [7/16] %v476_v32, 128  ;;  %v844_v43 = vpop.trf.xlu1  ;;  %v478_v48 = vld [vmem:[%s4306_s7 + $0x740] sm:$0xff] }
 0x25d   : > { %3470 = vmatprep.subr.bf16.mxu1 %v3469_v33  ;;  %892 = vxpose.xlu0.b32.cont [7/16] %v444_v46, 128  ;;  %v780_v29 = vpop.trf.xlu0  ;;  %v5480_v63 = vmul.f32 %v844_v43, %v844_v43 }
 0x25e   : > { %3438 = vmatprep.subr.bf16.mxu0 %v3437_v53  ;;  %v5485_v32 = vmul.f32 %v780_v29, %v780_v29  ;;  %v3473_v53 = vpack.c.bf16 %v5306_v23, %v5300_v22  ;;  %v447_v23 = vld [vmem:[%s4306_s7 + $0x648] sm:$0xff] }
 0x25f   : > { %6951 = vst [vmem:[#allocation167_spill] sm:$0xff] %v5480_v63 }
 0x260   : > { %957 = vxpose.xlu1.b32.cont [8/16] %v477_v52, 128  ;;  %v845_v55 = vpop.trf.xlu1  ;;  %6953 = vst [vmem:[#allocation169_spill] sm:$0xff] %v5485_v32 }
 0x261   : > { %v5482_v19 = vmul.f32 %v845_v55, %v845_v55  ;;  %v3471_v1 = vpack.c.bf16 %v845_v55, %v844_v43  ;;  %893 = vxpose.xlu0.b32.cont [8/16] %v445_v4, 128  ;;  %v781_v3 = vpop.trf.xlu0  ;;  %v3441_v43 = vpack.c.bf16 %v5316_v39, %v5302_v62  ;;  %v448_v4 = vld [vmem:[%s4306_s7 + $0x650] sm:$0xff] }
 0x262   : > { %v5487_v33 = vmul.f32 %v781_v3, %v781_v3  ;;  %v3439_v46 = vpack.c.bf16 %v781_v3, %v780_v29  ;;  %v479_v3 = vld [vmem:[%s4306_s7 + $0x748] sm:$0xff] }
 0x263   : > { %6952 = vst [vmem:[#allocation168_spill] sm:$0xff] %v5482_v19  ;;  %3472 = vmatpush1.bf16.msra.mxu1 %v3471_v1 }
 0x264   : > { %6954 = vst [vmem:[#allocation170_spill] sm:$0xff] %v5487_v33  ;;  %3440 = vmatpush1.bf16.msra.mxu0 %v3439_v46  ;;  %958 = vxpose.xlu1.b32.cont [9/16] %v478_v48, 128  ;;  %v846_v55 = vpop.trf.xlu1  ;;  %v480_v46 = vld [vmem:[%s4306_s7 + $0x750] sm:$0xff] }
 0x265   : > { %3474 = vmatprep.subr.bf16.mxu1 %v3473_v53  ;;  %894 = vxpose.xlu0.b32.cont [9/16] %v446_v5, 128  ;;  %v782_v29 = vpop.trf.xlu0  ;;  %v5500_v1 = vmul.f32 %v846_v55, %v846_v55 }
 0x266   : > { %3442 = vmatprep.subr.bf16.mxu0 %v3441_v43  ;;  %v5505_v48 = vmul.f32 %v782_v29, %v782_v29  ;;  %v3477_v43 = vpack.c.bf16 %v5338_v37, %v5332_v18  ;;  %v449_v37 = vld [vmem:[%s4306_s7 + $0x658] sm:$0xff] }
 0x267   : > { %6955 = vst [vmem:[#allocation171_spill] sm:$0xff] %v5500_v1 }
 0x268   : > { %959 = vxpose.xlu1.b32.cont [10/16] %v479_v3, 128  ;;  %v847_v22 = vpop.trf.xlu1  ;;  %6957 = vst [vmem:[#allocation173_spill] sm:$0xff] %v5505_v48 }
 0x269   : > { %v5502_v52 = vmul.f32 %v847_v22, %v847_v22  ;;  %v3475_v62 = vpack.c.bf16 %v847_v22, %v846_v55  ;;  %895 = vxpose.xlu0.b32.cont [10/16] %v447_v23, 128  ;;  %v783_v39 = vpop.trf.xlu0  ;;  %v3445_v55 = vpack.c.bf16 %v5348_v54, %v5334_v16  ;;  %v450_v23 = vld [vmem:[%s4306_s7 + $0x660] sm:$0xff] }
 0x26a   : > { %v5507_v53 = vmul.f32 %v783_v39, %v783_v39  ;;  %v3443_v5 = vpack.c.bf16 %v783_v39, %v782_v29  ;;  %v481_v39 = vld [vmem:[%s4306_s7 + $0x758] sm:$0xff] }
 0x26b   : > { %6956 = vst [vmem:[#allocation172_spill] sm:$0xff] %v5502_v52  ;;  %3476 = vmatpush1.bf16.msra.mxu1 %v3475_v62 }
 0x26c   : > { %6958 = vst [vmem:[#allocation174_spill] sm:$0xff] %v5507_v53  ;;  %3444 = vmatpush1.bf16.msra.mxu0 %v3443_v5  ;;  %960 = vxpose.xlu1.b32.cont [11/16] %v480_v46, 128  ;;  %v848_v22 = vpop.trf.xlu1  ;;  %v482_v5 = vld [vmem:[%s4306_s7 + $0x760] sm:$0xff] }
 0x26d   : > { %3478 = vmatprep.subr.bf16.mxu1 %v3477_v43  ;;  %896 = vxpose.xlu0.b32.cont [11/16] %v448_v4, 128  ;;  %v784_v29 = vpop.trf.xlu0  ;;  %v5520_v62 = vmul.f32 %v848_v22, %v848_v22 }
 0x26e   : > { %3446 = vmatprep.subr.bf16.mxu0 %v3445_v55  ;;  %v5525_v46 = vmul.f32 %v784_v29, %v784_v29  ;;  %v3481_v55 = vpack.c.bf16 %v5370_v51, %v5364_v47  ;;  %v451_v51 = vld [vmem:[%s4306_s7 + $0x668] sm:$0xff] }
 0x26f   : > { %6959 = vst [vmem:[#allocation175_spill] sm:$0xff] %v5520_v62 }
 0x270   : > { %961 = vxpose.xlu1.b32.cont [12/16] %v481_v39, 128  ;;  %v849_v18 = vpop.trf.xlu1  ;;  %6961 = vst [vmem:[#allocation177_spill] sm:$0xff] %v5525_v46 }
 0x271   : > { %v5522_v3 = vmul.f32 %v849_v18, %v849_v18  ;;  %v3479_v16 = vpack.c.bf16 %v849_v18, %v848_v22  ;;  %897 = vxpose.xlu0.b32.cont [12/16] %v449_v37, 128  ;;  %v785_v54 = vpop.trf.xlu0  ;;  %v3449_v22 = vpack.c.bf16 %v5380_v30, %v5366_v49  ;;  %v452_v37 = vld [vmem:[%s4306_s7 + $0x670] sm:$0xff] }
 0x272   : > { %v5527_v43 = vmul.f32 %v785_v54, %v785_v54  ;;  %v3447_v4 = vpack.c.bf16 %v785_v54, %v784_v29  ;;  %v483_v54 = vld [vmem:[%s4306_s7 + $0x768] sm:$0xff] }
 0x273   : > { %6960 = vst [vmem:[#allocation176_spill] sm:$0xff] %v5522_v3  ;;  %3480 = vmatpush1.bf16.msra.mxu1 %v3479_v16 }
 0x274   : > { %6962 = vst [vmem:[#allocation178_spill] sm:$0xff] %v5527_v43  ;;  %3448 = vmatpush1.bf16.msra.mxu0 %v3447_v4  ;;  %962 = vxpose.xlu1.b32.cont [13/16] %v482_v5, 128  ;;  %v850_v18 = vpop.trf.xlu1  ;;  %v484_v4 = vld [vmem:[%s4306_s7 + $0x770] sm:$0xff] }
 0x275   : > { %3482 = vmatprep.subr.bf16.mxu1 %v3481_v55  ;;  %898 = vxpose.xlu0.b32.cont [13/16] %v450_v23, 128  ;;  %v786_v29 = vpop.trf.xlu0  ;;  %v5540_v16 = vmul.f32 %v850_v18, %v850_v18 }
 0x276   : > { %3450 = vmatprep.subr.bf16.mxu0 %v3449_v22  ;;  %v5545_v5 = vmul.f32 %v786_v29, %v786_v29  ;;  %v3485_v22 = vpack.c.bf16 %v5402_v0, %v5396_v38 }
 0x277   : > { %6963 = vst [vmem:[#allocation179_spill] sm:$0xff] %v5540_v16 }
 0x278   : > { %963 = vxpose.xlu1.b32.cont [14/16] %v483_v54, 128  ;;  %v851_v47 = vpop.trf.xlu1  ;;  %6965 = vst [vmem:[#allocation181_spill] sm:$0xff] %v5545_v5 }
 0x279   : > { %v5542_v39 = vmul.f32 %v851_v47, %v851_v47  ;;  %v3483_v49 = vpack.c.bf16 %v851_v47, %v850_v18  ;;  %899 = vxpose.xlu0.b32.cont [14/16] %v451_v51, 128  ;;  %v787_v30 = vpop.trf.xlu0  ;;  %v3453_v18 = vpack.c.bf16 %v5412_v60, %v5398_v61  ;;  %v5572_v51 = vld [vmem:[#allocation8] sm:$0x7] }
 0x27a   : > { %v5547_v55 = vmul.f32 %v787_v30, %v787_v30  ;;  %v3451_v23 = vpack.c.bf16 %v787_v30, %v786_v29  ;;  %v485_v30 = vld [vmem:[%s4306_s7 + $0x778] sm:$0xff] }
 0x27b   : > { %6964 = vst [vmem:[#allocation180_spill] sm:$0xff] %v5542_v39  ;;  %3484 = vmatpush1.bf16.msra.mxu1 %v3483_v49 }
 0x27c   : > { %6966 = vst [vmem:[#allocation182_spill] sm:$0xff] %v5547_v55  ;;  %3452 = vmatpush1.bf16.msra.mxu0 %v3451_v23  ;;  %964 = vxpose.xlu1.b32.cont [15/16] %v484_v4, 128  ;;  %v852_v47 = vpop.trf.xlu1 }
 0x27d   : > { %3486 = vmatprep.subr.bf16.mxu1 %v3485_v22  ;;  %900 = vxpose.xlu0.b32.cont [15/16] %v452_v37, 128  ;;  %v788_v29 = vpop.trf.xlu0  ;;  %v5560_v38 = vmul.f32 %v852_v47, %v852_v47 }
 0x27e   : > { %3454 = vmatprep.subr.bf16.mxu0 %v3453_v18  ;;  %v5564_v39 = vmul.f32 %v788_v29, %v788_v29 }
 0x27f   : > { %6967 = vst [vmem:[#allocation183_spill] sm:$0xff] %v5560_v38 }
 0x280   : > { %965 = vxpose.xlu1.b32.end [16/16] %v485_v30, 128  ;;  %v853_v0 = vpop.trf.xlu1  ;;  %6969 = vst [vmem:[#allocation185_spill] sm:$0xff] %v5564_v39 }
 0x281   : > { %v5562_v49 = vmul.f32 %v853_v0, %v853_v0  ;;  %v3487_v54 = vpack.c.bf16 %v853_v0, %v852_v47  ;;  %901 = vxpose.xlu0.b32.end [16/16] %v453_v56, 128  ;;  %v789_v16 = vpop.trf.xlu0 }
 0x282   : > { %v5566_v23 = vmul.f32 %v789_v16, %v789_v16  ;;  %v3455_v4 = vpack.c.bf16 %v789_v16, %v788_v29 }
 0x283   : > { %6968 = vst [vmem:[#allocation184_spill] sm:$0xff] %v5562_v49  ;;  %3488 = vmatpush1.bf16.msra.mxu1 %v3487_v54 }
 0x284   : > { %6970 = vst [vmem:[#allocation186_spill] sm:$0xff] %v5566_v23  ;;  %3456 = vmatpush1.bf16.msra.mxu0 %v3455_v4  ;;  %v998_v18 = vpop.trf.xlu1 }
 0x285   : > { %v934_v30 = vpop.trf.xlu0  ;;  %v5578_v16 = vmul.f32 %v998_v18, %v998_v18 }
 0x286   : > { %1692 = vmatmul.mubr.f32.vlgmr.msra.gmra.mrb[4].mxu1 %v5572_v51  ;;  %v5582_v0 = vmul.f32 %v934_v30, %v934_v30 }
 0x287   : > { %1621 = vmatmul.mubr.f32.vlgmr.msra.gmra.mrb[4].mxu0 %v5572_v51  ;;  %1833 = vmatprep.mubr.f32.mxu1 %v6843_v21  ;;  %6971 = vst [vmem:[#allocation187_spill] sm:$0xff] %v5578_v16 }
 0x288   : > { %v999_v56 = vpop.trf.xlu1  ;;  %1762 = vmatprep.mubr.f32.mxu0 %v6843_v21  ;;  %6973 = vst [vmem:[#allocation189_spill] sm:$0xff] %v5582_v0 }
 0x289   : > { %v5580_v54 = vmul.f32 %v999_v56, %v999_v56  ;;  %v3521_v47 = vpack.c.bf16 %v999_v56, %v998_v18  ;;  %v935_v29 = vpop.trf.xlu0 }
 0x28a   : > { %v5584_v4 = vmul.f32 %v935_v29, %v935_v29  ;;  %v3489_v22 = vpack.c.bf16 %v935_v29, %v934_v30 }
 0x28b   : > { %6972 = vst [vmem:[#allocation188_spill] sm:$0xff] %v5580_v54  ;;  %3522 = vmatprep.subr.bf16.mxu1 %v3521_v47 }
 0x28c   : > { %6974 = vst [vmem:[#allocation190_spill] sm:$0xff] %v5584_v4  ;;  %3490 = vmatprep.subr.bf16.mxu0 %v3489_v22  ;;  %v5590_v23 = vpop.trf.xlu1 }
 0x28d   : > { %v5592_v38 = vpop.trf.xlu0  ;;  %v5598_v18 = vmul.f32 %v5590_v23, %v5590_v23 }
 0x28e   : > { %v5608_v47 = vmul.f32 %v5592_v38, %v5592_v38 }
 0x28f   : > { %6975 = vst [vmem:[#allocation191_spill] sm:$0xff] %v5598_v18 }
 0x290   : > { %v5594_v49 = vpop.trf.xlu1  ;;  %6977 = vst [vmem:[#allocation193_spill] sm:$0xff] %v5608_v47 }
 0x291   : > { %v5602_v30 = vmul.f32 %v5594_v49, %v5594_v49  ;;  %v5604_v56 = vpop.trf.xlu0  ;;  %v3525_v50 = vpack.c.bf16 %v5594_v49, %v5590_v23 }
 0x292   : > { %v5612_v22 = vmul.f32 %v5604_v56, %v5604_v56 }
 0x293   : > { %6976 = vst [vmem:[#allocation192_spill] sm:$0xff] %v5602_v30 }
 0x294   : > { %6978 = vst [vmem:[#allocation194_spill] sm:$0xff] %v5612_v22  ;;  %v5618_v37 = vpop.trf.xlu1 }
 0x295   : > { %v5620_v0 = vpop.trf.xlu0  ;;  %v5626_v16 = vmul.f32 %v5618_v37, %v5618_v37 }
 0x296   : > { %v5636_v29 = vmul.f32 %v5620_v0, %v5620_v0 }
 0x297   : > { %6979 = vst [vmem:[#allocation195_spill] sm:$0xff] %v5626_v16 }
 0x298   : > { %v5622_v4 = vpop.trf.xlu1  ;;  %6981 = vst [vmem:[#allocation197_spill] sm:$0xff] %v5636_v29 }
 0x299   : > { %v5630_v54 = vmul.f32 %v5622_v4, %v5622_v4  ;;  %v5632_v5 = vpop.trf.xlu0 }
 0x29a   : > { %v5640_v39 = vmul.f32 %v5632_v5, %v5632_v5 }
 0x29b   : > { %6980 = vst [vmem:[#allocation196_spill] sm:$0xff] %v5630_v54 }
 0x29c   : > { %6982 = vst [vmem:[#allocation198_spill] sm:$0xff] %v5640_v39  ;;  %v5646_v18 = vpop.trf.xlu1 }
 0x29d   : > { %v5648_v30 = vpop.trf.xlu0  ;;  %v5654_v61 = vmul.f32 %v5646_v18, %v5646_v18 }
 0x29e   : > { %v5664_v47 = vmul.f32 %v5648_v30, %v5648_v30 }
 0x29f   : > { %6983 = vst [vmem:[#allocation199_spill] sm:$0xff] %v5654_v61 }
 0x2a0   : > { %v5650_v55 = vpop.trf.xlu1  ;;  %6985 = vst [vmem:[#allocation201_spill] sm:$0xff] %v5664_v47 }
 0x2a1   : > { %v5658_v46 = vmul.f32 %v5650_v55, %v5650_v55  ;;  %v5660_v43 = vpop.trf.xlu0 }
 0x2a2   : > { %v5668_v22 = vmul.f32 %v5660_v43, %v5660_v43 }
 0x2a3   : > { %6984 = vst [vmem:[#allocation200_spill] sm:$0xff] %v5658_v46 }
 0x2a4   : > { %6986 = vst [vmem:[#allocation202_spill] sm:$0xff] %v5668_v22  ;;  %v5674_v16 = vpop.trf.xlu1 }
 0x2a5   : > { %v5676_v54 = vpop.trf.xlu0  ;;  %v5682_v3 = vmul.f32 %v5674_v16, %v5674_v16 }
 0x2a6   : > { %v5692_v29 = vmul.f32 %v5676_v54, %v5676_v54 }
 0x2a7   : > { %6987 = vst [vmem:[#allocation203_spill] sm:$0xff] %v5682_v3 }
 0x2a8   : > { %v5678_v62 = vpop.trf.xlu1  ;;  %6989 = vst [vmem:[#allocation205_spill] sm:$0xff] %v5692_v29 }
 0x2a9   : > { %v5686_v60 = vmul.f32 %v5678_v62, %v5678_v62  ;;  %v5688_v48 = vpop.trf.xlu0 }
 0x2aa   : > { %v5696_v39 = vmul.f32 %v5688_v48, %v5688_v48 }
 0x2ab   : > { %6988 = vst [vmem:[#allocation204_spill] sm:$0xff] %v5686_v60 }
 0x2ac   : > { %6990 = vst [vmem:[#allocation206_spill] sm:$0xff] %v5696_v39  ;;  %v5702_v61 = vpop.trf.xlu1 }
 0x2ad   : > { %v5704_v46 = vpop.trf.xlu0  ;;  %v5710_v1 = vmul.f32 %v5702_v61, %v5702_v61 }
 0x2ae   : > { %v5720_v47 = vmul.f32 %v5704_v46, %v5704_v46 }
 0x2af   : > { %6991 = vst [vmem:[#allocation207_spill] sm:$0xff] %v5710_v1 }
 0x2b0   : > { %v5706_v53 = vpop.trf.xlu1  ;;  %6993 = vst [vmem:[#allocation209_spill] sm:$0xff] %v5720_v47 }
 0x2b1   : > { %v5714_v52 = vmul.f32 %v5706_v53, %v5706_v53  ;;  %v5716_v32 = vpop.trf.xlu0 }
 0x2b2   : > { %v5724_v22 = vmul.f32 %v5716_v32, %v5716_v32 }
 0x2b3   : > { %6992 = vst [vmem:[#allocation208_spill] sm:$0xff] %v5714_v52 }
 0x2b4   : > { %6994 = vst [vmem:[#allocation210_spill] sm:$0xff] %v5724_v22  ;;  %v5730_v3 = vpop.trf.xlu1 }
 0x2b5   : > { %v5732_v60 = vpop.trf.xlu0  ;;  %v5738_v63 = vmul.f32 %v5730_v3, %v5730_v3 }
 0x2b6   : > { %v5748_v29 = vmul.f32 %v5732_v60, %v5732_v60 }
 0x2b7   : > { %6995 = vst [vmem:[#allocation211_spill] sm:$0xff] %v5738_v63 }
 0x2b8   : > { %v5734_v33 = vpop.trf.xlu1  ;;  %6997 = vst [vmem:[#allocation213_spill] sm:$0xff] %v5748_v29 }
 0x2b9   : > { %v5742_v19 = vmul.f32 %v5734_v33, %v5734_v33  ;;  %v5744_v2 = vpop.trf.xlu0 }
 0x2ba   : > { %v5752_v39 = vmul.f32 %v5744_v2, %v5744_v2 }
 0x2bb   : > { %6996 = vst [vmem:[#allocation212_spill] sm:$0xff] %v5742_v19 }
 0x2bc   : > { %6998 = vst [vmem:[#allocation214_spill] sm:$0xff] %v5752_v39  ;;  %v5758_v1 = vpop.trf.xlu1  ;;  %v3493_v39 = vpack.c.bf16 %v5604_v56, %v5592_v38  ;;  %v3529_v38 = vpack.c.bf16 %v5622_v4, %v5618_v37 }
 0x2bd   : > { %v5760_v52 = vpop.trf.xlu0  ;;  %v5766_v59 = vmul.f32 %v5758_v1, %v5758_v1 }
 0x2be   : > { %v5776_v47 = vmul.f32 %v5760_v52, %v5760_v52 }
 0x2bf   : > { %6999 = vst [vmem:[#allocation215_spill] sm:$0xff] %v5766_v59 }
 0x2c0   : > { %v5762_v6 = vpop.trf.xlu1  ;;  %7000 = vst [vmem:[#allocation216_spill] sm:$0xff] %v5776_v47 }
 0x2c1   : > { %v5770_v57 = vmul.f32 %v5762_v6, %v5762_v6  ;;  %v5772_v58 = vpop.trf.xlu0 }
 0x2c2   : > { %v5780_v22 = vmul.f32 %v5772_v58, %v5772_v58 }
 0x2c4   : > { %7001 = vst [vmem:[#allocation217_spill] sm:$0xff] %v5780_v22  ;;  %v966_v63 = vpop.trf.xlu1 }
 0x2c5   : > { %v902_v19 = vpop.trf.xlu0  ;;  %v5786_v42 = vmul.f32 %v966_v63, %v966_v63 }
 0x2c6   : > { %v5792_v17 = vmul.f32 %v902_v19, %v902_v19 }
 0x2c8   : > { %v967_v10 = vpop.trf.xlu1 }
 0x2c9   : > { %v5788_v34 = vmul.f32 %v967_v10, %v967_v10  ;;  %v3523_v15 = vpack.c.bf16 %v967_v10, %v966_v63  ;;  %v903_v31 = vpop.trf.xlu0 }
 0x2ca   : > { %v5794_v35 = vmul.f32 %v903_v31, %v903_v31  ;;  %v3491_v29 = vpack.c.bf16 %v903_v31, %v902_v19 }
 0x2cb   : > { %3524 = vmatpush1.bf16.msra.mxu1 %v3523_v15 }
 0x2cc   : > { %3492 = vmatpush1.bf16.msra.mxu0 %v3491_v29  ;;  %3526 = vmatprep.subr.bf16.mxu1 %v3525_v50  ;;  %v968_v10 = vpop.trf.xlu1  ;;  %v3497_v50 = vpack.c.bf16 %v5632_v5, %v5620_v0  ;;  %v3533_v5 = vpack.c.bf16 %v5650_v55, %v5646_v18 }
 0x2cd   : > { %3494 = vmatprep.subr.bf16.mxu0 %v3493_v39  ;;  %v904_v63 = vpop.trf.xlu0  ;;  %v5802_v23 = vmul.f32 %v968_v10, %v968_v10 }
 0x2ce   : > { %v5808_v56 = vmul.f32 %v904_v63, %v904_v63 }
 0x2d0   : > { %v969_v49 = vpop.trf.xlu1 }
 0x2d1   : > { %v5804_v59 = vmul.f32 %v969_v49, %v969_v49  ;;  %v3527_v31 = vpack.c.bf16 %v969_v49, %v968_v10  ;;  %v905_v19 = vpop.trf.xlu0 }
 0x2d2   : > { %v5810_v15 = vmul.f32 %v905_v19, %v905_v19  ;;  %v3495_v22 = vpack.c.bf16 %v905_v19, %v904_v63 }
 0x2d3   : > { %3528 = vmatpush1.bf16.msra.mxu1 %v3527_v31 }
 0x2d4   : > { %3496 = vmatpush1.bf16.msra.mxu0 %v3495_v22  ;;  %3530 = vmatprep.subr.bf16.mxu1 %v3529_v38  ;;  %v970_v10 = vpop.trf.xlu1  ;;  %v3501_v22 = vpack.c.bf16 %v5660_v43, %v5648_v30  ;;  %v3537_v43 = vpack.c.bf16 %v5678_v62, %v5674_v16 }
 0x2d5   : > { %3498 = vmatprep.subr.bf16.mxu0 %v3497_v50  ;;  %v906_v37 = vpop.trf.xlu0  ;;  %v5818_v49 = vmul.f32 %v970_v10, %v970_v10 }
 0x2d6   : > { %v5824_v0 = vmul.f32 %v906_v37, %v906_v37 }
 0x2d8   : > { %v971_v4 = vpop.trf.xlu1 }
 0x2d9   : > { %v5820_v47 = vmul.f32 %v971_v4, %v971_v4  ;;  %v3531_v63 = vpack.c.bf16 %v971_v4, %v970_v10  ;;  %v907_v19 = vpop.trf.xlu0 }
 0x2da   : > { %v5826_v31 = vmul.f32 %v907_v19, %v907_v19  ;;  %v3499_v29 = vpack.c.bf16 %v907_v19, %v906_v37 }
 0x2db   : > { %3532 = vmatpush1.bf16.msra.mxu1 %v3531_v63 }
 0x2dc   : > { %3500 = vmatpush1.bf16.msra.mxu0 %v3499_v29  ;;  %3534 = vmatprep.subr.bf16.mxu1 %v3533_v5  ;;  %v972_v10 = vpop.trf.xlu1  ;;  %v3505_v29 = vpack.c.bf16 %v5688_v48, %v5676_v54  ;;  %v3541_v48 = vpack.c.bf16 %v5706_v53, %v5702_v61 }
 0x2dd   : > { %3502 = vmatprep.subr.bf16.mxu0 %v3501_v22  ;;  %v908_v55 = vpop.trf.xlu0  ;;  %v5834_v4 = vmul.f32 %v972_v10, %v972_v10 }
 0x2de   : > { %v5840_v30 = vmul.f32 %v908_v55, %v908_v55 }
 0x2e0   : > { %v973_v18 = vpop.trf.xlu1 }
 0x2e1   : > { %v5836_v39 = vmul.f32 %v973_v18, %v973_v18  ;;  %v3535_v37 = vpack.c.bf16 %v973_v18, %v972_v10  ;;  %v909_v19 = vpop.trf.xlu0 }
 0x2e2   : > { %v5842_v63 = vmul.f32 %v909_v19, %v909_v19  ;;  %v3503_v50 = vpack.c.bf16 %v909_v19, %v908_v55 }
 0x2e3   : > { %3536 = vmatpush1.bf16.msra.mxu1 %v3535_v37 }
 0x2e4   : > { %3504 = vmatpush1.bf16.msra.mxu0 %v3503_v50  ;;  %3538 = vmatprep.subr.bf16.mxu1 %v3537_v43  ;;  %v974_v10 = vpop.trf.xlu1  ;;  %v3509_v50 = vpack.c.bf16 %v5716_v32, %v5704_v46  ;;  %v3545_v32 = vpack.c.bf16 %v5734_v33, %v5730_v3 }
 0x2e5   : > { %3506 = vmatprep.subr.bf16.mxu0 %v3505_v29  ;;  %v910_v62 = vpop.trf.xlu0  ;;  %v5850_v18 = vmul.f32 %v974_v10, %v974_v10 }
 0x2e6   : > { %v5856_v54 = vmul.f32 %v910_v62, %v910_v62 }
 0x2e8   : > { %v975_v16 = vpop.trf.xlu1 }
 0x2e9   : > { %v5852_v38 = vmul.f32 %v975_v16, %v975_v16  ;;  %v3539_v55 = vpack.c.bf16 %v975_v16, %v974_v10  ;;  %v911_v19 = vpop.trf.xlu0 }
 0x2ea   : > { %v5858_v37 = vmul.f32 %v911_v19, %v911_v19  ;;  %v3507_v22 = vpack.c.bf16 %v911_v19, %v910_v62 }
 0x2eb   : > { %3540 = vmatpush1.bf16.msra.mxu1 %v3539_v55 }
 0x2ec   : > { %3508 = vmatpush1.bf16.msra.mxu0 %v3507_v22  ;;  %3542 = vmatprep.subr.bf16.mxu1 %v3541_v48  ;;  %v976_v10 = vpop.trf.xlu1  ;;  %v3513_v22 = vpack.c.bf16 %v5744_v2, %v5732_v60  ;;  %v2408_v60 = vld [vmem:[%s6574_s3] sm:$0x7]  ;;  %v3549_v2 = vpack.c.bf16 %v5762_v6, %v5758_v1 }
 0x2ed   : > { %3510 = vmatprep.subr.bf16.mxu0 %v3509_v50  ;;  %v912_v61 = vpop.trf.xlu0  ;;  %v5866_v16 = vmul.f32 %v976_v10, %v976_v10  ;;  %v3517_v50 = vpack.c.bf16 %v5772_v58, %v5760_v52 }
 0x2ee   : > { %v5872_v46 = vmul.f32 %v912_v61, %v912_v61 }
 0x2f0   : > { %v977_v53 = vpop.trf.xlu1 }
 0x2f1   : > { %v5868_v5 = vmul.f32 %v977_v53, %v977_v53  ;;  %v3543_v62 = vpack.c.bf16 %v977_v53, %v976_v10  ;;  %v913_v19 = vpop.trf.xlu0 }
 0x2f2   : > { %v5874_v55 = vmul.f32 %v913_v19, %v913_v19  ;;  %v3511_v29 = vpack.c.bf16 %v913_v19, %v912_v61 }
 0x2f3   : > { %v3799_v48 = vpack.c.bf16 %v5868_v5, %v5866_v16  ;;  %3544 = vmatpush1.bf16.msra.mxu1 %v3543_v62  ;;  %v7324_v16 = vld [vmem:[#allocation215_spill] sm:$0xff] }
 0x2f4   : > { %3512 = vmatpush1.bf16.msra.mxu0 %v3511_v29  ;;  %3546 = vmatprep.subr.bf16.mxu1 %v3545_v32  ;;  %v978_v10 = vpop.trf.xlu1 }
 0x2f5   : > { %3514 = vmatprep.subr.bf16.mxu0 %v3513_v22  ;;  %v914_v33 = vpop.trf.xlu0  ;;  %v5882_v53 = vmul.f32 %v978_v10, %v978_v10  ;;  %v4120_v22 = vmov 0  }
 0x2f6   : > { %v5891_v62 = vmul.f32 %v914_v33, %v914_v33  ;;  %3893 = vset.pattern.permute.xlu0 %v4120_v22 }
 0x2f7   : > { %2411 = vperm.xlu0 %3893, %v2408_v60  }
 0x2f8   : > { %v979_v3 = vpop.trf.xlu1 }
 0x2f9   : > { %v5884_v43 = vmul.f32 %v979_v3, %v979_v3  ;;  %v3547_v61 = vpack.c.bf16 %v979_v3, %v978_v10  ;;  %v915_v19 = vpop.trf.xlu0 }
 0x2fa   : > { %v5893_v29 = vmul.f32 %v915_v19, %v915_v19  ;;  %v3515_v32 = vpack.c.bf16 %v915_v19, %v914_v33 }
 0x2fb   : > { %v3803_v10 = vpack.c.bf16 %v5884_v43, %v5882_v53  ;;  %3548 = vmatpush1.bf16.msra.mxu1 %v3547_v61 }
 0x2fc   : > { %v3771_v3 = vpack.c.bf16 %v5893_v29, %v5891_v62  ;;  %3516 = vmatpush1.bf16.msra.mxu0 %v3515_v32  ;;  %3550 = vmatprep.subr.bf16.mxu1 %v3549_v2  ;;  %v980_v6 = vpop.trf.xlu1  ;;  %v7003_v2 = vpack.c.bf16 %v4392_v12, %v4388_v8  ;;  %v7004_v32 = vpack.c.bf16 %v4630_v45, %v4626_v36  ;;  %v7013_v36 = vld [vmem:[#allocation14_spill] sm:$0xff] }
 0x2fd   : > { %3518 = vmatprep.subr.bf16.mxu0 %v3517_v50  ;;  %v5901_v1 = vpop.trf.xlu0  ;;  %v5903_v19 = vmul.f32 %v980_v6, %v980_v6  ;;  %v7002_v50 = vpack.c.bf16 %v4390_v11, %v4386_v7  ;;  %v7006_v7 = vpack.c.bf16 %v4420_v27, %v4412_v25  ;;  %v7007_v8 = vpack.c.bf16 %v4424_v28, %v4416_v26  ;;  %v7012_v27 = vld [vmem:[#allocation15_spill] sm:$0xff]  ;;  %v7015_v28 = vld [vmem:[#allocation38_spill] sm:$0xff] }
 0x2fe   : > { %v7008_v11 = vpack.c.bf16 %v4652_v9, %v4648_v20  ;;  %v7009_v12 = vpack.c.bf16 %v4654_v14, %v4650_v24  ;;  %v7014_v26 = vpack.c.bf16 %v7012_v27, %v7013_v36  ;;  %v7021_v9 = vld [vmem:[#allocation18_spill] sm:$0xff]  ;;  %v7024_v14 = vld [vmem:[#allocation19_spill] sm:$0xff]  ;;  %v7037_v27 = vld [vmem:[#allocation21_spill] sm:$0xff]  ;;  %v1251_v5 = vmul.f32 %v5901_v1, %v5901_v1 }
 0x300   : > { %v981_v33 = vpop.trf.xlu1 }
 0x301   : > { %v5905_v22 = vmul.f32 %v981_v33, %v981_v33  ;;  %v3551_v58 = vpack.c.bf16 %v981_v33, %v980_v6  ;;  %v5907_v52 = vpop.trf.xlu0  ;;  %v7005_v6 = vpack.c.bf16 %v4632_v13, %v4628_v44  ;;  %v7010_v13 = vld [vmem:[#allocation13_spill] sm:$0xff]  ;;  %v7016_v44 = vld [vmem:[#allocation36_spill] sm:$0xff] }
 0x302   : > { %v3519_v61 = vpack.c.bf16 %v5907_v52, %v5901_v1  ;;  %v7011_v25 = vpack.c.bf16 %v4452_v41, %v7010_v13  ;;  %v7017_v45 = vpack.c.bf16 %v7015_v28, %v7016_v44  ;;  %v7019_v33 = vld [vmem:[#allocation37_spill] sm:$0xff]  ;;  %v7040_v28 = vld [vmem:[#allocation44_spill] sm:$0xff] }
 0x303   : > { %v3807_v60 = vpack.c.bf16 %v5905_v22, %v5903_v19  ;;  %3552 = vmatpush1.bf16.msra.mxu1 %v3551_v58  ;;  %v7022_v58 = vld [vmem:[#allocation16_spill] sm:$0xff] }
 0x304   : > { %3520 = vmatpush1.bf16.msra.mxu0 %v3519_v61  ;;  %3586 = vmatprep.subr.bf16.mxu1 %v7002_v50  ;;  %v7023_v24 = vpack.c.bf16 %v7021_v9, %v7022_v58  ;;  %v7025_v61 = vld [vmem:[#allocation17_spill] sm:$0xff]  ;;  %v7027_v50 = vld [vmem:[#allocation42_spill] sm:$0xff]  ;;  %v7046_v9 = vld [vmem:[#allocation24_spill] sm:$0xff] }
 0x305   : > { %3554 = vmatprep.subr.bf16.mxu0 %v7003_v2  ;;  %v7026_v41 = vpack.c.bf16 %v7024_v14, %v7025_v61  ;;  %v7028_v2 = vld [vmem:[#allocation40_spill] sm:$0xff]  ;;  %v7049_v14 = vld [vmem:[#allocation25_spill] sm:$0xff] }
 0x306   : > { %1834 = vmatmul.mubr.f32.vlgmr.msra.gmra.mrb[6].mxu1 %v5572_v51 }
 0x307   : > { %1763 = vmatmul.mubr.f32.vlgmr.msra.gmra.mrb[6].mxu0 %v5572_v51  ;;  %3588 = vmatpush1.bf16.msra.mxu1 %v7004_v32  ;;  %v7018_v51 = vld [vmem:[#allocation39_spill] sm:$0xff]  ;;  %v7029_v32 = vpack.c.bf16 %v7027_v50, %v7028_v2  ;;  %v7052_v50 = vld [vmem:[#allocation48_spill] sm:$0xff] }
 0x308   : > { %3556 = vmatpush1.bf16.msra.mxu0 %v7005_v6  ;;  %3590 = vmatprep.subr.bf16.mxu1 %v7006_v7  ;;  %v7020_v20 = vpack.c.bf16 %v7018_v51, %v7019_v33  ;;  %v7030_v6 = vld [vmem:[#allocation43_spill] sm:$0xff]  ;;  %v7031_v7 = vld [vmem:[#allocation41_spill] sm:$0xff] }
 0x309   : > { %3558 = vmatprep.subr.bf16.mxu0 %v7007_v8  ;;  %1904 = vmatprep.mubr.f32.mxu0 %v6843_v21  ;;  %v7032_v8 = vpack.c.bf16 %v7030_v6, %v7031_v7  ;;  %v7043_v51 = vld [vmem:[#allocation45_spill] sm:$0xff] }
 0x30a   : > { %1975 = vmatprep.mubr.f32.mxu1 %v6843_v21  ;;  %v7055_v6 = vld [vmem:[#allocation49_spill] sm:$0xff] }
 0x30b   : > { %3592 = vmatpush1.bf16.msra.mxu1 %v7008_v11  ;;  %v7033_v11 = vld [vmem:[#allocation22_spill] sm:$0xff] }
 0x30c   : > { %3560 = vmatpush1.bf16.msra.mxu0 %v7009_v12  ;;  %3594 = vmatprep.subr.bf16.mxu1 %v7011_v25  ;;  %v7034_v12 = vld [vmem:[#allocation20_spill] sm:$0xff]  ;;  %v7036_v25 = vld [vmem:[#allocation23_spill] sm:$0xff] }
 0x30d   : > { %3562 = vmatprep.subr.bf16.mxu0 %v7014_v26  ;;  %v7035_v13 = vpack.c.bf16 %v7033_v11, %v7034_v12  ;;  %v7038_v36 = vpack.c.bf16 %v7036_v25, %v7037_v27  ;;  %v7039_v26 = vld [vmem:[#allocation46_spill] sm:$0xff]  ;;  %v7058_v11 = vld [vmem:[#allocation28_spill] sm:$0xff]  ;;  %v7061_v25 = vld [vmem:[#allocation29_spill] sm:$0xff] }
 0x30e   : > { %v7041_v44 = vpack.c.bf16 %v7039_v26, %v7040_v28  ;;  %v7064_v26 = vld [vmem:[#allocation52_spill] sm:$0xff] }
 0x30f   : > { %3596 = vmatpush1.bf16.msra.mxu1 %v7017_v45  ;;  %v7042_v45 = vld [vmem:[#allocation47_spill] sm:$0xff] }
 0x310   : > { %3564 = vmatpush1.bf16.msra.mxu0 %v7020_v20  ;;  %3598 = vmatprep.subr.bf16.mxu1 %v7023_v24  ;;  %v7044_v33 = vpack.c.bf16 %v7042_v45, %v7043_v51  ;;  %v7045_v20 = vld [vmem:[#allocation26_spill] sm:$0xff]  ;;  %v7048_v24 = vld [vmem:[#allocation27_spill] sm:$0xff]  ;;  %v7067_v45 = vld [vmem:[#allocation53_spill] sm:$0xff] }
 0x311   : > { %3566 = vmatprep.subr.bf16.mxu0 %v7026_v41  ;;  %v7047_v58 = vpack.c.bf16 %v7045_v20, %v7046_v9  ;;  %v7050_v61 = vpack.c.bf16 %v7048_v24, %v7049_v14  ;;  %v7051_v41 = vld [vmem:[#allocation50_spill] sm:$0xff]  ;;  %v7070_v20 = vld [vmem:[#allocation32_spill] sm:$0xff]  ;;  %v7073_v24 = vld [vmem:[#allocation33_spill] sm:$0xff] }
 0x312   : > { %v7053_v2 = vpack.c.bf16 %v7051_v41, %v7052_v50  ;;  %v7076_v41 = vld [vmem:[#allocation56_spill] sm:$0xff] }
 0x313   : > { %3600 = vmatpush1.bf16.msra.mxu1 %v7029_v32  ;;  %v7054_v32 = vld [vmem:[#allocation51_spill] sm:$0xff] }
 0x314   : > { %3568 = vmatpush1.bf16.msra.mxu0 %v7032_v8  ;;  %3602 = vmatprep.subr.bf16.mxu1 %v7035_v13  ;;  %v7056_v7 = vpack.c.bf16 %v7054_v32, %v7055_v6  ;;  %v7057_v8 = vld [vmem:[#allocation30_spill] sm:$0xff]  ;;  %v7060_v13 = vld [vmem:[#allocation31_spill] sm:$0xff]  ;;  %v7079_v6 = vld [vmem:[#allocation57_spill] sm:$0xff] }
 0x315   : > { %3570 = vmatprep.subr.bf16.mxu0 %v7038_v36  ;;  %v7059_v12 = vpack.c.bf16 %v7057_v8, %v7058_v11  ;;  %v7062_v27 = vpack.c.bf16 %v7060_v13, %v7061_v25  ;;  %v7063_v36 = vld [vmem:[#allocation54_spill] sm:$0xff]  ;;  %v7078_v32 = vld [vmem:[#allocation59_spill] sm:$0xff]  ;;  %v7082_v11 = vld [vmem:[#allocation60_spill] sm:$0xff] }
 0x316   : > { %v7065_v28 = vpack.c.bf16 %v7063_v36, %v7064_v26  ;;  %v7081_v8 = vld [vmem:[#allocation62_spill] sm:$0xff]  ;;  %v7084_v13 = vld [vmem:[#allocation63_spill] sm:$0xff]  ;;  %v7085_v25 = vld [vmem:[#allocation61_spill] sm:$0xff] }
 0x317   : > { %3604 = vmatpush1.bf16.msra.mxu1 %v7041_v44  ;;  %v7066_v44 = vld [vmem:[#allocation55_spill] sm:$0xff]  ;;  %v7087_v36 = vld [vmem:[#allocation92_spill] sm:$0xff] }
 0x318   : > { %3572 = vmatpush1.bf16.msra.mxu0 %v7044_v33  ;;  %3606 = vmatprep.subr.bf16.mxu1 %v7047_v58  ;;  %v7068_v51 = vpack.c.bf16 %v7066_v44, %v7067_v45  ;;  %v7069_v33 = vld [vmem:[#allocation34_spill] sm:$0xff]  ;;  %v7072_v58 = vld [vmem:[#allocation35_spill] sm:$0xff]  ;;  %v7088_v26 = vpack.c.bf16 %v5032_v40, %v7087_v36  ;;  %v7090_v44 = vld [vmem:[#allocation93_spill] sm:$0xff] }
 0x319   : > { %3574 = vmatprep.subr.bf16.mxu0 %v7050_v61  ;;  %v7071_v9 = vpack.c.bf16 %v7069_v33, %v7070_v20  ;;  %v7074_v14 = vpack.c.bf16 %v7072_v58, %v7073_v24  ;;  %v7075_v61 = vld [vmem:[#allocation58_spill] sm:$0xff]  ;;  %v7093_v33 = vld [vmem:[#allocation64_spill] sm:$0xff]  ;;  %v7096_v58 = vld [vmem:[#allocation65_spill] sm:$0xff] }
 0x31a   : > { %v7077_v50 = vpack.c.bf16 %v7075_v61, %v7076_v41  ;;  %v7099_v61 = vld [vmem:[#allocation95_spill] sm:$0xff]  ;;  %v7101_v41 = vld [vmem:[#allocation98_spill] sm:$0xff] }
 0x31b   : > { %3608 = vmatpush1.bf16.msra.mxu1 %v7053_v2  ;;  %v6010_v2 = vld [vmem:[#allocation6] sm:$0x7] }
 0x31c   : > { %3576 = vmatpush1.bf16.msra.mxu0 %v7056_v7  ;;  %3610 = vmatprep.subr.bf16.mxu1 %v7059_v12  ;;  %v7080_v7 = vpack.c.bf16 %v7078_v32, %v7079_v6  ;;  %v7083_v12 = vpack.c.bf16 %v7081_v8, %v7082_v11  ;;  %v7104_v6 = vld [vmem:[#allocation70_spill] sm:$0xff]  ;;  %v7107_v11 = vld [vmem:[#allocation71_spill] sm:$0xff] }
 0x31d   : > { %3578 = vmatprep.subr.bf16.mxu0 %v7062_v27  ;;  %v7086_v27 = vpack.c.bf16 %v7084_v13, %v7085_v25  ;;  %v7110_v25 = vld [vmem:[#allocation100_spill] sm:$0xff] }
 0x31f   : > { %3612 = vmatpush1.bf16.msra.mxu1 %v7065_v28  ;;  %v7089_v28 = vld [vmem:[#allocation94_spill] sm:$0xff] }
 0x320   : > { %3580 = vmatpush1.bf16.msra.mxu0 %v7068_v51  ;;  %3614 = vmatprep.subr.bf16.mxu1 %v7071_v9  ;;  %v7091_v45 = vpack.c.bf16 %v7089_v28, %v7090_v44  ;;  %v7092_v51 = vld [vmem:[#allocation66_spill] sm:$0xff]  ;;  %v7095_v9 = vld [vmem:[#allocation67_spill] sm:$0xff]  ;;  %v7114_v28 = vld [vmem:[#allocation101_spill] sm:$0xff] }
 0x321   : > { %3582 = vmatprep.subr.bf16.mxu0 %v7074_v14  ;;  %v7094_v20 = vpack.c.bf16 %v7092_v51, %v7093_v33  ;;  %v7097_v24 = vpack.c.bf16 %v7095_v9, %v7096_v58  ;;  %v7098_v14 = vld [vmem:[#allocation96_spill] sm:$0xff]  ;;  %v7120_v9 = vld [vmem:[#allocation73_spill] sm:$0xff] }
 0x322   : > { %v7100_v40 = vpack.c.bf16 %v7098_v14, %v7099_v61  ;;  %v7117_v51 = vld [vmem:[#allocation72_spill] sm:$0xff]  ;;  %v7123_v14 = vld [vmem:[#allocation103_spill] sm:$0xff] }
 0x323   : > { %3616 = vmatpush1.bf16.msra.mxu1 %v7077_v50  ;;  %v7102_v50 = vld [vmem:[#allocation97_spill] sm:$0xff] }
 0x324   : > { %3584 = vmatpush1.bf16.msra.mxu0 %v7080_v7  ;;  %3650 = vmatprep.subr.bf16.mxu1 %v7083_v12  ;;  %v7103_v32 = vpack.c.bf16 %v7101_v41, %v7102_v50  ;;  %v7105_v7 = vld [vmem:[#allocation68_spill] sm:$0xff]  ;;  %v7108_v12 = vld [vmem:[#allocation69_spill] sm:$0xff] }
 0x325   : > { %3618 = vmatprep.subr.bf16.mxu0 %v7086_v27  ;;  %v7106_v8 = vpack.c.bf16 %v7104_v6, %v7105_v7  ;;  %v7109_v13 = vpack.c.bf16 %v7107_v11, %v7108_v12  ;;  %v7111_v27 = vld [vmem:[#allocation99_spill] sm:$0xff]  ;;  %v7126_v41 = vld [vmem:[#allocation105_spill] sm:$0xff]  ;;  %v7129_v6 = vld [vmem:[#allocation76_spill] sm:$0xff] }
 0x326   : > { %1976 = vmatmul.mubr.f32.vlgmr.msra.gmra.mrb[0].mxu1 %v6010_v2  ;;  %v7112_v36 = vpack.c.bf16 %v7110_v25, %v7111_v27  ;;  %v7132_v11 = vld [vmem:[#allocation77_spill] sm:$0xff]  ;;  %v7135_v25 = vld [vmem:[#allocation107_spill] sm:$0xff] }
 0x327   : > { %1905 = vmatmul.mubr.f32.vlgmr.msra.gmra.mrb[0].mxu0 %v6010_v2  ;;  %3652 = vmatpush1.bf16.msra.mxu1 %v7088_v26  ;;  %v7113_v26 = vld [vmem:[#allocation102_spill] sm:$0xff] }
 0x328   : > { %3620 = vmatpush1.bf16.msra.mxu0 %v7091_v45  ;;  %3654 = vmatprep.subr.bf16.mxu1 %v7094_v20  ;;  %v7115_v44 = vpack.c.bf16 %v7113_v26, %v7114_v28  ;;  %v7116_v45 = vld [vmem:[#allocation74_spill] sm:$0xff]  ;;  %v7119_v20 = vld [vmem:[#allocation75_spill] sm:$0xff]  ;;  %v7138_v26 = vld [vmem:[#allocation109_spill] sm:$0xff] }
 0x329   : > { %3622 = vmatprep.subr.bf16.mxu0 %v7097_v24  ;;  %2046 = vmatprep.mubr.f32.mxu0 %v6843_v21  ;;  %v7118_v33 = vpack.c.bf16 %v7116_v45, %v7117_v51  ;;  %v7121_v58 = vpack.c.bf16 %v7119_v20, %v7120_v9  ;;  %v7122_v24 = vld [vmem:[#allocation104_spill] sm:$0xff]  ;;  %v7144_v20 = vld [vmem:[#allocation81_spill] sm:$0xff] }
 0x32a   : > { %2117 = vmatprep.mubr.f32.mxu1 %v6843_v21  ;;  %v7124_v61 = vpack.c.bf16 %v7122_v24, %v7123_v14  ;;  %v7141_v45 = vld [vmem:[#allocation80_spill] sm:$0xff]  ;;  %v7147_v24 = vld [vmem:[#allocation111_spill] sm:$0xff] }
 0x32b   : > { %3656 = vmatpush1.bf16.msra.mxu1 %v7100_v40  ;;  %v7125_v40 = vld [vmem:[#allocation106_spill] sm:$0xff] }
 0x32c   : > { %3624 = vmatpush1.bf16.msra.mxu0 %v7103_v32  ;;  %3658 = vmatprep.subr.bf16.mxu1 %v7106_v8  ;;  %v7127_v50 = vpack.c.bf16 %v7125_v40, %v7126_v41  ;;  %v7128_v32 = vld [vmem:[#allocation78_spill] sm:$0xff]  ;;  %v7131_v8 = vld [vmem:[#allocation79_spill] sm:$0xff]  ;;  %v7150_v40 = vld [vmem:[#allocation113_spill] sm:$0xff] }
 0x32d   : > { %3626 = vmatprep.subr.bf16.mxu0 %v7109_v13  ;;  %v7130_v7 = vpack.c.bf16 %v7128_v32, %v7129_v6  ;;  %v7133_v12 = vpack.c.bf16 %v7131_v8, %v7132_v11  ;;  %v7134_v13 = vld [vmem:[#allocation108_spill] sm:$0xff]  ;;  %v7156_v8 = vld [vmem:[#allocation85_spill] sm:$0xff] }
 0x32e   : > { %v7136_v27 = vpack.c.bf16 %v7134_v13, %v7135_v25  ;;  %v7153_v32 = vld [vmem:[#allocation84_spill] sm:$0xff]  ;;  %v7159_v13 = vld [vmem:[#allocation115_spill] sm:$0xff] }
 0x32f   : > { %3660 = vmatpush1.bf16.msra.mxu1 %v7112_v36  ;;  %v7137_v36 = vld [vmem:[#allocation110_spill] sm:$0xff] }
 0x330   : > { %3628 = vmatpush1.bf16.msra.mxu0 %v7115_v44  ;;  %3662 = vmatprep.subr.bf16.mxu1 %v7118_v33  ;;  %v7139_v28 = vpack.c.bf16 %v7137_v36, %v7138_v26  ;;  %v7140_v44 = vld [vmem:[#allocation82_spill] sm:$0xff]  ;;  %v7143_v33 = vld [vmem:[#allocation83_spill] sm:$0xff]  ;;  %v7162_v36 = vld [vmem:[#allocation117_spill] sm:$0xff] }
 0x331   : > { %3630 = vmatprep.subr.bf16.mxu0 %v7121_v58  ;;  %v7142_v51 = vpack.c.bf16 %v7140_v44, %v7141_v45  ;;  %v7145_v9 = vpack.c.bf16 %v7143_v33, %v7144_v20  ;;  %v7146_v58 = vld [vmem:[#allocation112_spill] sm:$0xff]  ;;  %v7168_v33 = vld [vmem:[#allocation89_spill] sm:$0xff] }
 0x332   : > { %v7148_v14 = vpack.c.bf16 %v7146_v58, %v7147_v24  ;;  %v7165_v44 = vld [vmem:[#allocation88_spill] sm:$0xff]  ;;  %v7171_v58 = vld [vmem:[#allocation119_spill] sm:$0xff] }
 0x333   : > { %3664 = vmatpush1.bf16.msra.mxu1 %v7124_v61  ;;  %v7149_v61 = vld [vmem:[#allocation114_spill] sm:$0xff] }
 0x334   : > { %3632 = vmatpush1.bf16.msra.mxu0 %v7127_v50  ;;  %3666 = vmatprep.subr.bf16.mxu1 %v7130_v7  ;;  %v7151_v41 = vpack.c.bf16 %v7149_v61, %v7150_v40  ;;  %v7152_v50 = vld [vmem:[#allocation86_spill] sm:$0xff]  ;;  %v7155_v7 = vld [vmem:[#allocation87_spill] sm:$0xff]  ;;  %v7174_v61 = vld [vmem:[#allocation121_spill] sm:$0xff] }
 0x335   : > { %3634 = vmatprep.subr.bf16.mxu0 %v7133_v12  ;;  %v7154_v6 = vpack.c.bf16 %v7152_v50, %v7153_v32  ;;  %v7157_v11 = vpack.c.bf16 %v7155_v7, %v7156_v8  ;;  %v7158_v12 = vld [vmem:[#allocation116_spill] sm:$0xff]  ;;  %v7177_v50 = vld [vmem:[#allocation123_spill] sm:$0xff]  ;;  %v7180_v7 = vld [vmem:[#allocation125_spill] sm:$0xff] }
 0x336   : > { %v7160_v25 = vpack.c.bf16 %v7158_v12, %v7159_v13  ;;  %v7183_v12 = vld [vmem:[#allocation155_spill] sm:$0xff] }
 0x337   : > { %3668 = vmatpush1.bf16.msra.mxu1 %v7136_v27  ;;  %v7161_v27 = vld [vmem:[#allocation118_spill] sm:$0xff] }
 0x338   : > { %3636 = vmatpush1.bf16.msra.mxu0 %v7139_v28  ;;  %3670 = vmatprep.subr.bf16.mxu1 %v7142_v51  ;;  %v7163_v26 = vpack.c.bf16 %v7161_v27, %v7162_v36  ;;  %v7164_v28 = vld [vmem:[#allocation90_spill] sm:$0xff]  ;;  %v7167_v51 = vld [vmem:[#allocation91_spill] sm:$0xff]  ;;  %v7186_v27 = vld [vmem:[#allocation157_spill] sm:$0xff] }
 0x339   : > { %3638 = vmatprep.subr.bf16.mxu0 %v7145_v9  ;;  %v7166_v45 = vpack.c.bf16 %v7164_v28, %v7165_v44  ;;  %v7169_v20 = vpack.c.bf16 %v7167_v51, %v7168_v33  ;;  %v7170_v9 = vld [vmem:[#allocation120_spill] sm:$0xff]  ;;  %v7189_v28 = vld [vmem:[#allocation127_spill] sm:$0xff]  ;;  %v7192_v51 = vld [vmem:[#allocation129_spill] sm:$0xff] }
 0x33a   : > { %v7172_v24 = vpack.c.bf16 %v7170_v9, %v7171_v58  ;;  %v7195_v9 = vld [vmem:[#allocation159_spill] sm:$0xff] }
 0x33b   : > { %3672 = vmatpush1.bf16.msra.mxu1 %v7148_v14  ;;  %v7173_v14 = vld [vmem:[#allocation122_spill] sm:$0xff] }
 0x33c   : > { %3640 = vmatpush1.bf16.msra.mxu0 %v7151_v41  ;;  %3674 = vmatprep.subr.bf16.mxu1 %v7154_v6  ;;  %v7175_v40 = vpack.c.bf16 %v7173_v14, %v7174_v61  ;;  %v7176_v41 = vld [vmem:[#allocation124_spill] sm:$0xff]  ;;  %v7179_v6 = vld [vmem:[#allocation126_spill] sm:$0xff]  ;;  %v7198_v14 = vld [vmem:[#allocation161_spill] sm:$0xff] }
 0x33d   : > { %3642 = vmatprep.subr.bf16.mxu0 %v7157_v11  ;;  %v7178_v32 = vpack.c.bf16 %v7176_v41, %v7177_v50  ;;  %v7181_v8 = vpack.c.bf16 %v7179_v6, %v7180_v7  ;;  %v7182_v11 = vld [vmem:[#allocation156_spill] sm:$0xff]  ;;  %v7201_v41 = vld [vmem:[#allocation131_spill] sm:$0xff]  ;;  %v7204_v6 = vld [vmem:[#allocation133_spill] sm:$0xff] }
 0x33e   : > { %v7184_v13 = vpack.c.bf16 %v7182_v11, %v7183_v12  ;;  %v7207_v11 = vld [vmem:[#allocation163_spill] sm:$0xff] }
 0x33f   : > { %3676 = vmatpush1.bf16.msra.mxu1 %v7160_v25  ;;  %v7185_v25 = vld [vmem:[#allocation158_spill] sm:$0xff] }
 0x340   : > { %3644 = vmatpush1.bf16.msra.mxu0 %v7163_v26  ;;  %3678 = vmatprep.subr.bf16.mxu1 %v7166_v45  ;;  %v7187_v36 = vpack.c.bf16 %v7185_v25, %v7186_v27  ;;  %v7188_v26 = vld [vmem:[#allocation128_spill] sm:$0xff]  ;;  %v7191_v45 = vld [vmem:[#allocation130_spill] sm:$0xff]  ;;  %v7210_v25 = vld [vmem:[#allocation165_spill] sm:$0xff] }
 0x341   : > { %3646 = vmatprep.subr.bf16.mxu0 %v7169_v20  ;;  %v7190_v44 = vpack.c.bf16 %v7188_v26, %v7189_v28  ;;  %v7193_v33 = vpack.c.bf16 %v7191_v45, %v7192_v51  ;;  %v7194_v20 = vld [vmem:[#allocation160_spill] sm:$0xff]  ;;  %v7213_v26 = vld [vmem:[#allocation135_spill] sm:$0xff]  ;;  %v7216_v45 = vld [vmem:[#allocation137_spill] sm:$0xff] }
 0x342   : > { %v7196_v58 = vpack.c.bf16 %v7194_v20, %v7195_v9  ;;  %v7219_v20 = vld [vmem:[#allocation167_spill] sm:$0xff] }
 0x343   : > { %3680 = vmatpush1.bf16.msra.mxu1 %v7172_v24  ;;  %v7197_v24 = vld [vmem:[#allocation162_spill] sm:$0xff] }
 0x344   : > { %3648 = vmatpush1.bf16.msra.mxu0 %v7175_v40  ;;  %3714 = vmatprep.subr.bf16.mxu1 %v7178_v32  ;;  %v7199_v61 = vpack.c.bf16 %v7197_v24, %v7198_v14  ;;  %v7200_v40 = vld [vmem:[#allocation132_spill] sm:$0xff]  ;;  %v7203_v32 = vld [vmem:[#allocation134_spill] sm:$0xff]  ;;  %v7222_v24 = vld [vmem:[#allocation169_spill] sm:$0xff] }
 0x345   : > { %3682 = vmatprep.subr.bf16.mxu0 %v7181_v8  ;;  %v7202_v50 = vpack.c.bf16 %v7200_v40, %v7201_v41  ;;  %v7205_v7 = vpack.c.bf16 %v7203_v32, %v7204_v6  ;;  %v7206_v8 = vld [vmem:[#allocation164_spill] sm:$0xff]  ;;  %v7225_v40 = vld [vmem:[#allocation139_spill] sm:$0xff]  ;;  %v7228_v32 = vld [vmem:[#allocation141_spill] sm:$0xff] }
 0x346   : > { %2118 = vmatmul.mubr.f32.vlgmr.msra.gmra.mrb[2].mxu1 %v6010_v2  ;;  %v7208_v12 = vpack.c.bf16 %v7206_v8, %v7207_v11  ;;  %v7231_v8 = vld [vmem:[#allocation171_spill] sm:$0xff] }
 0x347   : > { %2047 = vmatmul.mubr.f32.vlgmr.msra.gmra.mrb[2].mxu0 %v6010_v2  ;;  %3716 = vmatpush1.bf16.msra.mxu1 %v7184_v13  ;;  %v7209_v13 = vld [vmem:[#allocation166_spill] sm:$0xff] }
 0x348   : > { %3684 = vmatpush1.bf16.msra.mxu0 %v7187_v36  ;;  %3718 = vmatprep.subr.bf16.mxu1 %v7190_v44  ;;  %v7211_v27 = vpack.c.bf16 %v7209_v13, %v7210_v25  ;;  %v7212_v36 = vld [vmem:[#allocation136_spill] sm:$0xff]  ;;  %v7215_v44 = vld [vmem:[#allocation138_spill] sm:$0xff]  ;;  %v7234_v13 = vld [vmem:[#allocation173_spill] sm:$0xff] }
 0x349   : > { %3686 = vmatprep.subr.bf16.mxu0 %v7193_v33  ;;  %2188 = vmatprep.mubr.f32.mxu0 %v6843_v21  ;;  %v7214_v28 = vpack.c.bf16 %v7212_v36, %v7213_v26  ;;  %v7217_v51 = vpack.c.bf16 %v7215_v44, %v7216_v45  ;;  %v7218_v33 = vld [vmem:[#allocation168_spill] sm:$0xff]  ;;  %v7237_v36 = vld [vmem:[#allocation143_spill] sm:$0xff]  ;;  %v7240_v44 = vld [vmem:[#allocation145_spill] sm:$0xff] }
 0x34a   : > { %2259 = vmatprep.mubr.f32.mxu1 %v6843_v21  ;;  %v7220_v9 = vpack.c.bf16 %v7218_v33, %v7219_v20  ;;  %v7243_v20 = vld [vmem:[#allocation176_spill] sm:$0xff] }
 0x34b   : > { %3720 = vmatpush1.bf16.msra.mxu1 %v7196_v58  ;;  %v7221_v58 = vld [vmem:[#allocation170_spill] sm:$0xff] }
 0x34c   : > { %3688 = vmatpush1.bf16.msra.mxu0 %v7199_v61  ;;  %3722 = vmatprep.subr.bf16.mxu1 %v7202_v50  ;;  %v7223_v14 = vpack.c.bf16 %v7221_v58, %v7222_v24  ;;  %v7224_v61 = vld [vmem:[#allocation140_spill] sm:$0xff]  ;;  %v7227_v50 = vld [vmem:[#allocation142_spill] sm:$0xff] }
 0x34d   : > { %3690 = vmatprep.subr.bf16.mxu0 %v7205_v7  ;;  %v7226_v41 = vpack.c.bf16 %v7224_v61, %v7225_v40  ;;  %v7229_v6 = vpack.c.bf16 %v7227_v50, %v7228_v32  ;;  %v7230_v7 = vld [vmem:[#allocation172_spill] sm:$0xff]  ;;  %v7246_v24 = vld [vmem:[#allocation178_spill] sm:$0xff]  ;;  %v7252_v32 = vld [vmem:[#allocation151_spill] sm:$0xff] }
 0x34e   : > { %v7232_v11 = vpack.c.bf16 %v7230_v7, %v7231_v8  ;;  %v7249_v40 = vld [vmem:[#allocation148_spill] sm:$0xff]  ;;  %v7253_v7 = vld [vmem:[#allocation150_spill] sm:$0xff]  ;;  %v7254_v8 = vld [vmem:[#allocation149_spill] sm:$0xff] }
 0x34f   : > { %3724 = vmatpush1.bf16.msra.mxu1 %v7208_v12  ;;  %v7233_v12 = vld [vmem:[#allocation174_spill] sm:$0xff] }
 0x350   : > { %3692 = vmatpush1.bf16.msra.mxu0 %v7211_v27  ;;  %3726 = vmatprep.subr.bf16.mxu1 %v7214_v28  ;;  %v7235_v25 = vpack.c.bf16 %v7233_v12, %v7234_v13  ;;  %v7236_v27 = vld [vmem:[#allocation144_spill] sm:$0xff]  ;;  %v7239_v28 = vld [vmem:[#allocation146_spill] sm:$0xff]  ;;  %v7257_v13 = vld [vmem:[#allocation179_spill] sm:$0xff] }
 0x351   : > { %3694 = vmatprep.subr.bf16.mxu0 %v7217_v51  ;;  %v7238_v26 = vpack.c.bf16 %v7236_v27, %v7237_v36  ;;  %v7241_v45 = vpack.c.bf16 %v7239_v28, %v7240_v44  ;;  %v7242_v51 = vld [vmem:[#allocation154_spill] sm:$0xff]  ;;  %v7256_v12 = vld [vmem:[#allocation180_spill] sm:$0xff]  ;;  %v7262_v44 = vld [vmem:[#allocation153_spill] sm:$0xff] }
 0x352   : > { %v1264_v33 = vmul.f32 %v7242_v51, %v7242_v51  ;;  %v7259_v36 = vld [vmem:[#allocation182_spill] sm:$0xff] }
 0x353   : > { %3728 = vmatpush1.bf16.msra.mxu1 %v7220_v9  ;;  %v7244_v9 = vld [vmem:[#allocation175_spill] sm:$0xff] }
 0x354   : > { %3696 = vmatpush1.bf16.msra.mxu0 %v7223_v14  ;;  %3730 = vmatprep.subr.bf16.mxu1 %v7226_v41  ;;  %v7245_v58 = vpack.c.bf16 %v7243_v20, %v7244_v9  ;;  %v7247_v14 = vld [vmem:[#allocation177_spill] sm:$0xff]  ;;  %v7250_v41 = vld [vmem:[#allocation147_spill] sm:$0xff]  ;;  %v7265_v20 = vld [vmem:[#allocation184_spill] sm:$0xff] }
 0x355   : > { %3698 = vmatprep.subr.bf16.mxu0 %v7229_v6  ;;  %v7248_v61 = vpack.c.bf16 %v7246_v24, %v7247_v14  ;;  %v7251_v50 = vpack.c.bf16 %v7249_v40, %v7250_v41  ;;  %v1248_v6 = vmul.f32 %v7252_v32, %v7252_v32  ;;  %v7266_v9 = vld [vmem:[#allocation183_spill] sm:$0xff]  ;;  %v7268_v24 = vld [vmem:[#allocation186_spill] sm:$0xff]  ;;  %v7269_v14 = vld [vmem:[#allocation185_spill] sm:$0xff] }
 0x356   : > { %v7271_v40 = vld [vmem:[#allocation188_spill] sm:$0xff]  ;;  %v7272_v41 = vld [vmem:[#allocation187_spill] sm:$0xff]  ;;  %v7275_v32 = vld [vmem:[#allocation189_spill] sm:$0xff] }
 0x357   : > { %3732 = vmatpush1.bf16.msra.mxu1 %v7232_v11  ;;  %v7255_v11 = vpack.c.bf16 %v7253_v7, %v7254_v8  ;;  %v3709_v27 = vpack.c.bf16 %v1264_v33, %v1248_v6  ;;  %v7273_v33 = vpack.c.bf16 %v7271_v40, %v7272_v41  ;;  %v7277_v7 = vpack.c.bf16 %v5788_v34, %v5786_v42  ;;  %v7288_v42 = vld [vmem:[#allocation195_spill] sm:$0xff] }
 0x358   : > { %3700 = vmatpush1.bf16.msra.mxu0 %v7235_v25  ;;  %3734 = vmatprep.subr.bf16.mxu1 %v7238_v26  ;;  %v7258_v25 = vpack.c.bf16 %v7256_v12, %v7257_v13  ;;  %v7260_v26 = vld [vmem:[#allocation181_spill] sm:$0xff]  ;;  %v7278_v8 = vpack.c.bf16 %v5794_v35, %v5792_v17  ;;  %v7280_v12 = vld [vmem:[#allocation191_spill] sm:$0xff]  ;;  %v7285_v34 = vpack.c.bf16 %v5804_v59, %v5802_v23  ;;  %v7287_v17 = vld [vmem:[#allocation196_spill] sm:$0xff] }
 0x359   : > { %3702 = vmatprep.subr.bf16.mxu0 %v7241_v45  ;;  %v7261_v28 = vpack.c.bf16 %v7259_v36, %v7260_v26  ;;  %v7263_v45 = vld [vmem:[#allocation152_spill] sm:$0xff]  ;;  %v7286_v35 = vpack.c.bf16 %v5810_v15, %v5808_v56  ;;  %v7289_v26 = vpack.c.bf16 %v7287_v17, %v7288_v42  ;;  %v7296_v23 = vld [vmem:[#allocation199_spill] sm:$0xff]  ;;  %v7298_v15 = vld [vmem:[#allocation202_spill] sm:$0xff]  ;;  %v7309_v40 = vpack.c.bf16 %v5852_v38, %v5850_v18 }
 0x35a   : > { %v7264_v51 = vpack.c.bf16 %v7262_v44, %v7263_v45  ;;  %v7291_v44 = vld [vmem:[#allocation197_spill] sm:$0xff]  ;;  %v7295_v59 = vld [vmem:[#allocation200_spill] sm:$0xff]  ;;  %v7312_v41 = vld [vmem:[#allocation207_spill] sm:$0xff]  ;;  %v7317_v38 = vpack.c.bf16 %v5874_v55, %v5872_v46  ;;  %v7325_v46 = vpack.c.bf16 %v5770_v57, %v7324_v16 }
 0x35b   : > { %3736 = vmatpush1.bf16.msra.mxu1 %v7245_v58  ;;  %v7267_v58 = vpack.c.bf16 %v7265_v20, %v7266_v9  ;;  %v7297_v56 = vpack.c.bf16 %v7295_v59, %v7296_v23  ;;  %v7299_v20 = vld [vmem:[#allocation201_spill] sm:$0xff]  ;;  %v7318_v18 = vld [vmem:[#allocation212_spill] sm:$0xff] }
 0x35c   : > { %3704 = vmatpush1.bf16.msra.mxu0 %v7248_v61  ;;  %3738 = vmatprep.subr.bf16.mxu1 %v7251_v50  ;;  %v7270_v61 = vpack.c.bf16 %v7268_v24, %v7269_v14  ;;  %v7274_v50 = vld [vmem:[#allocation190_spill] sm:$0xff]  ;;  %v7300_v9 = vpack.c.bf16 %v7298_v15, %v7299_v20  ;;  %v7304_v24 = vld [vmem:[#allocation203_spill] sm:$0xff]  ;;  %v7307_v14 = vld [vmem:[#allocation205_spill] sm:$0xff] }
 0x35d   : > { %3706 = vmatprep.subr.bf16.mxu0 %v7255_v11  ;;  %v7276_v6 = vpack.c.bf16 %v7274_v50, %v7275_v32  ;;  %v7279_v11 = vld [vmem:[#allocation192_spill] sm:$0xff]  ;;  %v7319_v32 = vld [vmem:[#allocation211_spill] sm:$0xff]  ;;  %v7326_v55 = vld [vmem:[#allocation217_spill] sm:$0xff] }
 0x35e   : > { %v7281_v13 = vpack.c.bf16 %v7279_v11, %v7280_v12 }
 0x35f   : > { %3740 = vmatpush1.bf16.msra.mxu1 %v7258_v25  ;;  %v7282_v25 = vld [vmem:[#allocation194_spill] sm:$0xff] }
 0x360   : > { %3708 = vmatpush1.bf16.msra.mxu0 %v7261_v28  ;;  %3742 = vmatprep.subr.bf16.mxu1 %v7264_v51  ;;  %v7290_v28 = vld [vmem:[#allocation198_spill] sm:$0xff]  ;;  %v7293_v51 = vpack.c.bf16 %v5820_v47, %v5818_v49  ;;  %v7302_v47 = vpack.c.bf16 %v5842_v63, %v5840_v30  ;;  %v7303_v49 = vld [vmem:[#allocation204_spill] sm:$0xff] }
 0x361   : > { %3710 = vmatprep.subr.bf16.mxu0 %v3709_v27  ;;  %v7283_v27 = vld [vmem:[#allocation193_spill] sm:$0xff]  ;;  %v7292_v45 = vpack.c.bf16 %v7290_v28, %v7291_v44  ;;  %v7314_v63 = vld [vmem:[#allocation210_spill] sm:$0xff] }
 0x362   : > { %v7284_v36 = vpack.c.bf16 %v7282_v25, %v7283_v27 }
 0x363   : > { %3744 = vmatpush1.bf16.msra.mxu1 %v7267_v58  ;;  %v7301_v58 = vpack.c.bf16 %v5836_v39, %v5834_v4  ;;  %v7310_v39 = vpack.c.bf16 %v5858_v37, %v5856_v54  ;;  %v7311_v4 = vld [vmem:[#allocation208_spill] sm:$0xff]  ;;  %v7320_v54 = vpack.c.bf16 %v7318_v18, %v7319_v32  ;;  %v7321_v37 = vld [vmem:[#allocation214_spill] sm:$0xff] }
 0x364   : > { %3712 = vmatpush1.bf16.msra.mxu0 %v7270_v61  ;;  %3778 = vmatprep.subr.bf16.mxu1 %v7273_v33  ;;  %v7313_v30 = vpack.c.bf16 %v7311_v4, %v7312_v41  ;;  %v7315_v33 = vld [vmem:[#allocation209_spill] sm:$0xff] }
 0x365   : > { %3746 = vmatprep.subr.bf16.mxu0 %v7276_v6  ;;  %v7316_v50 = vpack.c.bf16 %v7314_v63, %v7315_v33  ;;  %v7322_v6 = vld [vmem:[#allocation213_spill] sm:$0xff] }
 0x366   : > { %2260 = vmatmul.mubr.f32.vlgmr.msra.gmra.mrb[4].mxu1 %v6010_v2 }
 0x367   : > { %2189 = vmatmul.mubr.f32.vlgmr.msra.gmra.mrb[4].mxu0 %v6010_v2  ;;  %3780 = vmatpush1.bf16.msra.mxu1 %v7277_v7  ;;  %v7323_v7 = vpack.c.bf16 %v7321_v37, %v7322_v6 }
 0x368   : > { %3748 = vmatpush1.bf16.msra.mxu0 %v7278_v8  ;;  %3782 = vmatprep.subr.bf16.mxu1 %v7281_v13  ;;  %v1267_v8 = vmul.f32 %v5907_v52, %v5907_v52 }
 0x369   : > { %3750 = vmatprep.subr.bf16.mxu0 %v7284_v36  ;;  %2330 = vmatprep.mubr.f32.mxu0 %v6843_v21 }
 0x36a   : > { %2401 = vmatprep.mubr.f32.mxu1 %v6843_v21  ;;  %v7294_v21 = vpack.c.bf16 %v5826_v31, %v5824_v0  ;;  %v7305_v0 = vpack.c.bf16 %v7303_v49, %v7304_v24  ;;  %v7306_v31 = vld [vmem:[#allocation206_spill] sm:$0xff]  ;;  %v3775_v52 = vpack.c.bf16 %v1267_v8, %v1251_v5 }
 0x36b   : > { %3784 = vmatpush1.bf16.msra.mxu1 %v7285_v34  ;;  %v7308_v61 = vpack.c.bf16 %v7306_v31, %v7307_v14 }
 0x36c   : > { %3752 = vmatpush1.bf16.msra.mxu0 %v7286_v35  ;;  %3786 = vmatprep.subr.bf16.mxu1 %v7289_v26 }
 0x36d   : > { %3754 = vmatprep.subr.bf16.mxu0 %v7292_v45 }
 0x36f   : > { %3788 = vmatpush1.bf16.msra.mxu1 %v7293_v51 }
 0x370   : > { %3756 = vmatpush1.bf16.msra.mxu0 %v7294_v21  ;;  %3790 = vmatprep.subr.bf16.mxu1 %v7297_v56 }
 0x371   : > { %3758 = vmatprep.subr.bf16.mxu0 %v7300_v9 }
 0x373   : > { %3792 = vmatpush1.bf16.msra.mxu1 %v7301_v58 }
 0x374   : > { %3760 = vmatpush1.bf16.msra.mxu0 %v7302_v47  ;;  %3794 = vmatprep.subr.bf16.mxu1 %v7305_v0 }
 0x375   : > { %3762 = vmatprep.subr.bf16.mxu0 %v7308_v61 }
 0x376   : > { %v6319_v43 = vpop.permute.xlu0 %2411 }
 0x377   : > { %3796 = vmatpush1.bf16.msra.mxu1 %v7309_v40 }
 0x378   : > { %3764 = vmatpush1.bf16.msra.mxu0 %v7310_v39  ;;  %3798 = vmatprep.subr.bf16.mxu1 %v7313_v30 }
 0x379   : > { %3766 = vmatprep.subr.bf16.mxu0 %v7316_v50 }
 0x37b   : > { %3800 = vmatpush1.bf16.msra.mxu1 %v3799_v48  ;;  %v7327_v48 = vld [vmem:[#allocation216_spill] sm:$0xff] }
 0x37c   : > { %3768 = vmatpush1.bf16.msra.mxu0 %v7317_v38  ;;  %3802 = vmatprep.subr.bf16.mxu1 %v7320_v54  ;;  %v7328_v11 = vpack.c.bf16 %v7326_v55, %v7327_v48 }
 0x37d   : > { %3770 = vmatprep.subr.bf16.mxu0 %v7323_v7 }
 0x37f   : > { %3804 = vmatpush1.bf16.msra.mxu1 %v3803_v10 }
 0x380   : > { %3772 = vmatpush1.bf16.msra.mxu0 %v3771_v3  ;;  %3806 = vmatprep.subr.bf16.mxu1 %v7325_v46 }
 0x381   : > { %3774 = vmatprep.subr.bf16.mxu0 %v7328_v11 }
 0x383   : > { %3808 = vmatpush1.bf16.msra.mxu1 %v3807_v60 }
 0x384   : > { %3776 = vmatpush1.bf16.msra.mxu0 %v3775_v52 }
 0x386   : > { %2402 = vmatmul.mubr.f32.vlgmr.msra.gmra.mrb[6].mxu1 %v6010_v2 }
 0x387   : > { %2331 = vmatmul.mubr.f32.vlgmr.msra.gmra.mrb[6].mxu0 %v6010_v2 }
 0x3f9   : > { %v1977_v53 = vpop.f32.mrb[0].mxu1 }
 0x3fa   : > { %v1906_v57 = vpop.f32.mrb[0].mxu0  ;;  %v2416_v62 = vadd.f32 %v6319_v43, %v1977_v53  ;;  %v1979_v29 = vpop.f32.mrb[1].mxu1 }
 0x3fb   : > { %v2414_v10 = vadd.f32 %v6319_v43, %v1906_v57  ;;  %v1908_v3 = vpop.f32.mrb[1].mxu0  ;;  %v2417_v1 = vadd.f32 %v6319_v43, %v1979_v29 }
 0x3fc   : > { %v2445_v19 = vsel %vm2430_vm0, %v2416_v62, -inf  ;;  %v2415_v22 = vadd.f32 %v6319_v43, %v1908_v3 }
 0x3fd   : > { %v2431_v60 = vsel %vm2430_vm0, %v2414_v10, -inf  ;;  %v2446_v2 = vrot.slane %v2445_v19, 4  ;;  %v2452_v12 = vsel %vm2430_vm0, %v2417_v1, -inf }
 0x3fe   : > { %v2432_v13 = vrot.slane %v2431_v60, 4  ;;  %v2438_v25 = vsel %vm2430_vm0, %v2415_v22, -inf  ;;  %v2453_v27 = vrot.slane %v2452_v12, 4 }
 0x3ff   : > { %v2447_v36 = vmax.f32 %v2445_v19, %v2446_v2  ;;  %v2439_v34 = vrot.slane %v2438_v25, 4 }
 0x400   : > { %v2433_v35 = vmax.f32 %v2431_v60, %v2432_v13  ;;  %v2454_v17 = vmax.f32 %v2452_v12, %v2453_v27 }
 0x401   : > { %v2448_v42 = vrot.slane %v2447_v36, 2  ;;  %v2440_v26 = vmax.f32 %v2438_v25, %v2439_v34 }
 0x402   : > { %v2434_v28 = vrot.slane %v2433_v35, 2  ;;  %v2455_v44 = vrot.slane %v2454_v17, 2 }
 0x403   : > { %v2449_v45 = vmax.f32 %v2447_v36, %v2448_v42  ;;  %v2441_v51 = vrot.slane %v2440_v26, 2 }
 0x404   : > { %v2435_v21 = vmax.f32 %v2433_v35, %v2434_v28  ;;  %v2456_v59 = vmax.f32 %v2454_v17, %v2455_v44 }
 0x405   : > { %v2450_v23 = vrot.slane %v2449_v45, 1  ;;  %v2442_v56 = vmax.f32 %v2440_v26, %v2441_v51 }
 0x406   : > { %v2436_v15 = vrot.slane %v2435_v21, 1  ;;  %v2457_v20 = vrot.slane %v2456_v59, 1 }
 0x407   : > { %v6329_v9 = vmax.f32 %v2449_v45, %v2450_v23  ;;  %v2443_v58 = vrot.slane %v2442_v56, 1 }
 0x408   : > { %v6331_v47 = vmax.f32 %v2435_v21, %v2436_v15  ;;  %v6333_v49 = vmax.f32 %v2456_v59, %v2457_v20 }
 0x409   : > { %v2545_v24 = vsub.f32 %v2416_v62, %v6329_v9  ;;  %v6336_v0 = vmax.f32 %v2442_v56, %v2443_v58 }
 0x40a   : > { %v2543_v31 = vsub.f32 %v2414_v10, %v6331_v47  ;;  %v2546_v14 = vsub.f32 %v2417_v1, %v6333_v49 }
 0x40b   : > { %v2563_v61 = vmul.f32 1.442695, %v2545_v24  ;;  %v2544_v40 = vsub.f32 %v2415_v22, %v6336_v0 }
 0x40c   : > { %v2559_v39 = vmul.f32 1.442695, %v2543_v31  ;;  %v2565_v4 = vmul.f32 1.442695, %v2546_v14 }
 0x40d   : > { %3894 = vpow2.f32 %v2563_v61  ;;  %v2561_v41 = vmul.f32 1.442695, %v2544_v40 }
 0x40e   : > { %3896 = vpow2.f32 %v2559_v39 }
 0x40f   : > { %3898 = vpow2.f32 %v2561_v41 }
 0x410   : > { %3900 = vpow2.f32 %v2565_v4 }
 0x417   : > { %v3895_v30 = vpop.eup %3894 }
 0x418   : > { %v3897_v63 = vpop.eup %3896  ;;  %v2605_v33 = vsel %vm2430_vm0, %v3895_v30, 0.0 }
 0x419   : > { %v3899_v50 = vpop.eup %3898  ;;  %v2591_v38 = vsel %vm2430_vm0, %v3897_v63, 0.0  ;;  %v2606_v18 = vrot.slane %v2605_v33, 4  ;;  %v2119_v32 = vpop.f32.mrb[2].mxu1 }
 0x41a   : > { %v3901_v54 = vpop.eup %3900  ;;  %v2592_v37 = vrot.slane %v2591_v38, 4  ;;  %v2598_v6 = vsel %vm2430_vm0, %v3899_v50, 0.0  ;;  %v2048_v7 = vpop.f32.mrb[2].mxu0  ;;  %v2420_v8 = vadd.f32 %v6319_v43, %v2119_v32 }
 0x41b   : > { %v2121_v5 = vpop.f32.mrb[3].mxu1  ;;  %v2607_v16 = vadd.f32 %v2606_v18, %v2605_v33  ;;  %v2599_v46 = vrot.slane %v2598_v6, 4  ;;  %v2612_v55 = vsel %vm2430_vm0, %v3901_v54, 0.0  ;;  %v2418_v48 = vadd.f32 %v6319_v43, %v2048_v7  ;;  %v2050_v11 = vpop.f32.mrb[3].mxu0 }
 0x41c   : > { %v2593_v52 = vadd.f32 %v2592_v37, %v2591_v38  ;;  %v2613_v53 = vrot.slane %v2612_v55, 4  ;;  %v2473_v57 = vsel %vm2430_vm0, %v2420_v8, -inf  ;;  %v2419_v62 = vadd.f32 %v6319_v43, %v2050_v11 }
 0x41d   : > { %v2608_v29 = vrot.slane %v2607_v16, 2  ;;  %v2600_v10 = vadd.f32 %v2599_v46, %v2598_v6  ;;  %v2459_v3 = vsel %vm2430_vm0, %v2418_v48, -inf  ;;  %v2474_v1 = vrot.slane %v2473_v57, 4 }
 0x41e   : > { %v2594_v19 = vrot.slane %v2593_v52, 2  ;;  %v2614_v22 = vadd.f32 %v2613_v53, %v2612_v55  ;;  %v2460_v60 = vrot.slane %v2459_v3, 4  ;;  %v2466_v2 = vsel %vm2430_vm0, %v2419_v62, -inf }
 0x41f   : > { %v2609_v12 = vadd.f32 %v2608_v29, %v2607_v16  ;;  %v2601_v13 = vrot.slane %v2600_v10, 2  ;;  %v2475_v25 = vmax.f32 %v2473_v57, %v2474_v1  ;;  %v2467_v27 = vrot.slane %v2466_v2, 4 }
 0x420   : > { %v2595_v36 = vadd.f32 %v2594_v19, %v2593_v52  ;;  %v2615_v34 = vrot.slane %v2614_v22, 2  ;;  %v2461_v35 = vmax.f32 %v2459_v3, %v2460_v60  ;;  %v2421_v17 = vadd.f32 %v6319_v43, %v2121_v5 }
 0x421   : > { %v2610_v42 = vrot.slane %v2609_v12, 1  ;;  %v2602_v26 = vadd.f32 %v2601_v13, %v2600_v10  ;;  %v2476_v28 = vrot.slane %v2475_v25, 2  ;;  %v2468_v44 = vmax.f32 %v2466_v2, %v2467_v27 }
 0x422   : > { %v2596_v45 = vrot.slane %v2595_v36, 1  ;;  %v2616_v51 = vadd.f32 %v2615_v34, %v2614_v22  ;;  %v2462_v21 = vrot.slane %v2461_v35, 2  ;;  %v2480_v59 = vsel %vm2430_vm0, %v2421_v17, -inf }
 0x423   : > { %v2611_v23 = vadd.f32 %v2610_v42, %v2609_v12  ;;  %v2603_v56 = vrot.slane %v2602_v26, 1  ;;  %v2477_v15 = vmax.f32 %v2475_v25, %v2476_v28  ;;  %v2469_v20 = vrot.slane %v2468_v44, 2 }
 0x424   : > { %v2597_v58 = vadd.f32 %v2596_v45, %v2595_v36  ;;  %v2617_v24 = vrot.slane %v2616_v51, 1  ;;  %v2463_v31 = vmax.f32 %v2461_v35, %v2462_v21  ;;  %v2481_v14 = vrot.slane %v2480_v59, 4 }
 0x425   : > { %3902 = vlog2.f32 %v2611_v23  ;;  %v2604_v61 = vadd.f32 %v2603_v56, %v2602_v26  ;;  %v2478_v40 = vrot.slane %v2477_v15, 1  ;;  %v2470_v39 = vmax.f32 %v2468_v44, %v2469_v20 }
 0x426   : > { %3904 = vlog2.f32 %v2597_v58  ;;  %v2618_v4 = vadd.f32 %v2617_v24, %v2616_v51  ;;  %v2464_v41 = vrot.slane %v2463_v31, 1  ;;  %v2482_v30 = vmax.f32 %v2480_v59, %v2481_v14 }
 0x427   : > { %3906 = vlog2.f32 %v2604_v61  ;;  %v6358_v63 = vmax.f32 %v2477_v15, %v2478_v40  ;;  %v2471_v33 = vrot.slane %v2470_v39, 1 }
 0x428   : > { %3908 = vlog2.f32 %v2618_v4  ;;  %v6360_v50 = vmax.f32 %v2463_v31, %v2464_v41  ;;  %v2483_v38 = vrot.slane %v2482_v30, 2 }
 0x429   : > { %v2549_v18 = vsub.f32 %v2420_v8, %v6358_v63  ;;  %v6363_v32 = vmax.f32 %v2470_v39, %v2471_v33 }
 0x42a   : > { %v2547_v54 = vsub.f32 %v2418_v48, %v6360_v50  ;;  %v2484_v37 = vmax.f32 %v2482_v30, %v2483_v38 }
 0x42b   : > { %v2571_v6 = vmul.f32 1.442695, %v2549_v18  ;;  %v2548_v7 = vsub.f32 %v2419_v62, %v6363_v32 }
 0x42c   : > { %v2567_v5 = vmul.f32 1.442695, %v2547_v54  ;;  %v2485_v16 = vrot.slane %v2484_v37, 1 }
 0x42d   : > { %3910 = vpow2.f32 %v2571_v6  ;;  %v2569_v46 = vmul.f32 1.442695, %v2548_v7 }
 0x42e   : > { %3912 = vpow2.f32 %v2567_v5  ;;  %v6367_v55 = vmax.f32 %v2484_v37, %v2485_v16 }
 0x42f   : > { %v3903_v11 = vpop.eup %3902  ;;  %3914 = vpow2.f32 %v2569_v46 }
 0x430   : > { %v3905_v52 = vpop.eup %3904  ;;  %v2708_v53 = vmul.f32 0.6931472, %v3903_v11  ;;  %v2550_v8 = vsub.f32 %v2421_v17, %v6367_v55 }
 0x431   : > { %v3907_v57 = vpop.eup %3906  ;;  %v2704_v29 = vmul.f32 0.6931472, %v3905_v52 }
 0x432   : > { %v3909_v48 = vpop.eup %3908  ;;  %v6371_v10 = vadd.f32 %v2708_v53, %v6329_v9  ;;  %v2706_v62 = vmul.f32 0.6931472, %v3907_v57  ;;  %v2573_v3 = vmul.f32 1.442695, %v2550_v8 }
 0x433   : > { %v6374_v1 = vadd.f32 %v2704_v29, %v6331_v47  ;;  %v2710_v19 = vmul.f32 0.6931472, %v3909_v48 }
 0x434   : > { %v6377_v22 = vadd.f32 %v2706_v62, %v6336_v0  ;;  %3916 = vpow2.f32 %v2573_v3 }
 0x435   : > { %v6380_v60 = vadd.f32 %v2710_v19, %v6333_v49 }
 0x437   : > { %v3911_v2 = vpop.eup %3910 }
 0x438   : > { %v3913_v12 = vpop.eup %3912  ;;  %v2633_v13 = vsel %vm2430_vm0, %v3911_v2, 0.0 }
 0x439   : > { %v3915_v25 = vpop.eup %3914  ;;  %v2619_v9 = vsel %vm2430_vm0, %v3913_v12, 0.0  ;;  %v2634_v27 = vrot.slane %v2633_v13, 4  ;;  %v2261_v36 = vpop.f32.mrb[4].mxu1 }
 0x43a   : > { %v2620_v34 = vrot.slane %v2619_v9, 4  ;;  %v2626_v47 = vsel %vm2430_vm0, %v3915_v25, 0.0  ;;  %v2190_v35 = vpop.f32.mrb[4].mxu0  ;;  %v2424_v0 = vadd.f32 %v6319_v43, %v2261_v36  ;;  %v2263_v17 = vpop.f32.mrb[5].mxu1 }
 0x43b   : > { %v2635_v42 = vadd.f32 %v2634_v27, %v2633_v13  ;;  %v2627_v26 = vrot.slane %v2626_v47, 4  ;;  %v2422_v49 = vadd.f32 %v6319_v43, %v2190_v35  ;;  %v2192_v28 = vpop.f32.mrb[5].mxu0  ;;  %v6388_v44 = vadd.f32 %v6319_v43, %v2263_v17 }
 0x43c   : > { %v2621_v45 = vadd.f32 %v2620_v34, %v2619_v9  ;;  %v2501_v51 = vsel %vm2430_vm0, %v2424_v0, -inf  ;;  %v2423_v21 = vadd.f32 %v6319_v43, %v2192_v28 }
 0x43d   : > { %v2636_v59 = vrot.slane %v2635_v42, 2  ;;  %v2628_v23 = vadd.f32 %v2627_v26, %v2626_v47  ;;  %v2487_v56 = vsel %vm2430_vm0, %v2422_v49, -inf  ;;  %v2502_v15 = vrot.slane %v2501_v51, 4 }
 0x43e   : > { %v3917_v20 = vpop.eup %3916  ;;  %v2622_v58 = vrot.slane %v2621_v45, 2  ;;  %v2488_v24 = vrot.slane %v2487_v56, 4  ;;  %v2494_v31 = vsel %vm2430_vm0, %v2423_v21, -inf  ;;  %v2508_v14 = vsel %vm2430_vm0, %v6388_v44, -inf }
 0x43f   : > { %v2637_v61 = vadd.f32 %v2636_v59, %v2635_v42  ;;  %v2629_v40 = vrot.slane %v2628_v23, 2  ;;  %v2640_v39 = vsel %vm2430_vm0, %v3917_v20, 0.0  ;;  %v2503_v4 = vmax.f32 %v2501_v51, %v2502_v15 }
 0x440   : > { %v2623_v41 = vadd.f32 %v2622_v58, %v2621_v45  ;;  %v2641_v30 = vrot.slane %v2640_v39, 4  ;;  %v2489_v33 = vmax.f32 %v2487_v56, %v2488_v24  ;;  %v2495_v38 = vrot.slane %v2494_v31, 4 }
 0x441   : > { %v2638_v18 = vrot.slane %v2637_v61, 1  ;;  %v2630_v54 = vadd.f32 %v2629_v40, %v2628_v23  ;;  %v2504_v37 = vrot.slane %v2503_v4, 2  ;;  %v2509_v6 = vrot.slane %v2508_v14, 4 }
 0x442   : > { %v2624_v7 = vrot.slane %v2623_v41, 1  ;;  %v2642_v5 = vadd.f32 %v2641_v30, %v2640_v39  ;;  %v2490_v16 = vrot.slane %v2489_v33, 2  ;;  %v2496_v46 = vmax.f32 %v2494_v31, %v2495_v38 }
 0x443   : > { %v2639_v11 = vadd.f32 %v2638_v18, %v2637_v61  ;;  %v2631_v52 = vrot.slane %v2630_v54, 1  ;;  %v2505_v53 = vmax.f32 %v2503_v4, %v2504_v37  ;;  %v2510_v8 = vmax.f32 %v2508_v14, %v2509_v6 }
 0x444   : > { %v2625_v57 = vadd.f32 %v2624_v7, %v2623_v41  ;;  %v2643_v29 = vrot.slane %v2642_v5, 2  ;;  %v2491_v48 = vmax.f32 %v2489_v33, %v2490_v16  ;;  %v2497_v62 = vrot.slane %v2496_v46, 2 }
 0x445   : > { %3918 = vlog2.f32 %v2639_v11  ;;  %v2632_v3 = vadd.f32 %v2631_v52, %v2630_v54  ;;  %v2506_v19 = vrot.slane %v2505_v53, 1  ;;  %v2511_v2 = vrot.slane %v2510_v8, 2 }
 0x446   : > { %3920 = vlog2.f32 %v2625_v57  ;;  %v2644_v12 = vadd.f32 %v2643_v29, %v2642_v5  ;;  %v2492_v13 = vrot.slane %v2491_v48, 1  ;;  %v2498_v25 = vmax.f32 %v2496_v46, %v2497_v62 }
 0x447   : > { %3922 = vlog2.f32 %v2632_v3  ;;  %v6397_v9 = vmax.f32 %v2505_v53, %v2506_v19  ;;  %v2512_v27 = vmax.f32 %v2510_v8, %v2511_v2 }
 0x448   : > { %v2645_v36 = vrot.slane %v2644_v12, 1  ;;  %v6399_v34 = vmax.f32 %v2491_v48, %v2492_v13  ;;  %v2499_v47 = vrot.slane %v2498_v25, 1 }
 0x449   : > { %v2553_v35 = vsub.f32 %v2424_v0, %v6397_v9  ;;  %v2513_v17 = vrot.slane %v2512_v27, 1 }
 0x44a   : > { %v2646_v42 = vadd.f32 %v2645_v36, %v2644_v12  ;;  %v2551_v26 = vsub.f32 %v2422_v49, %v6399_v34  ;;  %v6403_v28 = vmax.f32 %v2498_v25, %v2499_v47 }
 0x44b   : > { %v2579_v45 = vmul.f32 1.442695, %v2553_v35  ;;  %v6405_v51 = vmax.f32 %v2512_v27, %v2513_v17 }
 0x44c   : > { %3924 = vlog2.f32 %v2646_v42  ;;  %v2575_v59 = vmul.f32 1.442695, %v2551_v26  ;;  %v2552_v23 = vsub.f32 %v2423_v21, %v6403_v28 }
 0x44d   : > { %3926 = vpow2.f32 %v2579_v45  ;;  %v2554_v56 = vsub.f32 %v6388_v44, %v6405_v51 }
 0x44e   : > { %3928 = vpow2.f32 %v2575_v59  ;;  %v2577_v15 = vmul.f32 1.442695, %v2552_v23 }
 0x44f   : > { %v3919_v0 = vpop.eup %3918  ;;  %v2581_v20 = vmul.f32 1.442695, %v2554_v56 }
 0x450   : > { %v3921_v58 = vpop.eup %3920  ;;  %v2716_v24 = vmul.f32 0.6931472, %v3919_v0  ;;  %3930 = vpow2.f32 %v2577_v15 }
 0x451   : > { %v3923_v49 = vpop.eup %3922  ;;  %v2712_v31 = vmul.f32 0.6931472, %v3921_v58  ;;  %3932 = vpow2.f32 %v2581_v20 }
 0x452   : > { %v6411_v14 = vadd.f32 %v2716_v24, %v6358_v63  ;;  %v2714_v61 = vmul.f32 0.6931472, %v3923_v49 }
 0x453   : > { %v6414_v21 = vadd.f32 %v2712_v31, %v6360_v50 }
 0x454   : > { %v6417_v40 = vadd.f32 %v2714_v61, %v6363_v32 }
 0x456   : > { %v3925_v44 = vpop.eup %3924 }
 0x457   : > { %v3927_v39 = vpop.eup %3926  ;;  %v2718_v4 = vmul.f32 0.6931472, %v3925_v44 }
 0x458   : > { %v3929_v41 = vpop.eup %3928  ;;  %v2661_v30 = vsel %vm2430_vm0, %v3927_v39, 0.0 }
 0x459   : > { %v6421_v33 = vadd.f32 %v2718_v4, %v6367_v55  ;;  %v2647_v38 = vsel %vm2430_vm0, %v3929_v41, 0.0  ;;  %v2662_v63 = vrot.slane %v2661_v30, 4  ;;  %v2403_v18 = vpop.f32.mrb[6].mxu1 }
 0x45a   : > { %v3931_v54 = vpop.eup %3930  ;;  %v2648_v37 = vrot.slane %v2647_v38, 4  ;;  %v2332_v50 = vpop.f32.mrb[6].mxu0  ;;  %v6425_v6 = vadd.f32 %v6319_v43, %v2403_v18 }
 0x45b   : > { %v2405_v32 = vpop.f32.mrb[7].mxu1  ;;  %v3933_v7 = vpop.eup %3932  ;;  %v2663_v5 = vadd.f32 %v2662_v63, %v2661_v30  ;;  %v2654_v16 = vsel %vm2430_vm0, %v3931_v54, 0.0  ;;  %v2426_v46 = vadd.f32 %v6319_v43, %v2332_v50 }
 0x45c   : > { %v2334_v11 = vpop.f32.mrb[7].mxu0  ;;  %v6430_v55 = vadd.f32 %v6319_v43, %v2405_v32  ;;  %v2649_v52 = vadd.f32 %v2648_v37, %v2647_v38  ;;  %v2655_v53 = vrot.slane %v2654_v16, 4  ;;  %v2668_v8 = vsel %vm2430_vm0, %v3933_v7, 0.0 }
 0x45d   : > { %v2529_v57 = vsel %vm2430_vm0, %v6425_v6, -inf  ;;  %v2664_v29 = vrot.slane %v2663_v5, 2  ;;  %v2669_v48 = vrot.slane %v2668_v8, 4  ;;  %v2515_v62 = vsel %vm2430_vm0, %v2426_v46, -inf }
 0x45e   : > { %v2530_v3 = vrot.slane %v2529_v57, 4  ;;  %v2650_v19 = vrot.slane %v2649_v52, 2  ;;  %v2656_v2 = vadd.f32 %v2655_v53, %v2654_v16  ;;  %v2516_v12 = vrot.slane %v2515_v62, 4 }
 0x45f   : > { %v2427_v13 = vadd.f32 %v6319_v43, %v2334_v11  ;;  %v2665_v25 = vadd.f32 %v2664_v29, %v2663_v5  ;;  %v2670_v27 = vadd.f32 %v2669_v48, %v2668_v8  ;;  %v2536_v47 = vsel %vm2430_vm0, %v6430_v55, -inf }
 0x460   : > { %v2531_v36 = vmax.f32 %v2529_v57, %v2530_v3  ;;  %v2651_v35 = vadd.f32 %v2650_v19, %v2649_v52  ;;  %v2657_v17 = vrot.slane %v2656_v2, 2  ;;  %v2517_v42 = vmax.f32 %v2515_v62, %v2516_v12 }
 0x461   : > { %v2522_v26 = vsel %vm2430_vm0, %v2427_v13, -inf  ;;  %v2666_v45 = vrot.slane %v2665_v25, 1  ;;  %v2671_v59 = vrot.slane %v2670_v27, 2  ;;  %v2537_v58 = vrot.slane %v2536_v47, 4 }
 0x462   : > { %v2532_v23 = vrot.slane %v2531_v36, 2  ;;  %v2523_v56 = vrot.slane %v2522_v26, 4  ;;  %v2652_v15 = vrot.slane %v2651_v35, 1  ;;  %v2658_v0 = vadd.f32 %v2657_v17, %v2656_v2 }
 0x463   : > { %v2518_v20 = vrot.slane %v2517_v42, 2  ;;  %v2667_v43 = vadd.f32 %v2666_v45, %v2665_v25  ;;  %v2672_v24 = vadd.f32 %v2671_v59, %v2670_v27  ;;  %v2538_v4 = vmax.f32 %v2536_v47, %v2537_v58 }
 0x464   : > { %v2533_v49 = vmax.f32 %v2531_v36, %v2532_v23  ;;  %v2524_v31 = vmax.f32 %v2522_v26, %v2523_v56  ;;  %v2653_v61 = vadd.f32 %v2652_v15, %v2651_v35  ;;  %v2659_v44 = vrot.slane %v2658_v0, 1 }
 0x465   : > { %v2519_v39 = vmax.f32 %v2517_v42, %v2518_v20  ;;  %3934 = vlog2.f32 %v2667_v43  ;;  %v2673_v41 = vrot.slane %v2672_v24, 1  ;;  %v2539_v54 = vrot.slane %v2538_v4, 2 }
 0x466   : > { %v2534_v30 = vrot.slane %v2533_v49, 1  ;;  %v2525_v38 = vrot.slane %v2524_v31, 2  ;;  %3936 = vlog2.f32 %v2653_v61  ;;  %v2660_v63 = vadd.f32 %v2659_v44, %v2658_v0 }
 0x467   : > { %v2520_v18 = vrot.slane %v2519_v39, 1  ;;  %v2674_v37 = vadd.f32 %v2673_v41, %v2672_v24  ;;  %v2540_v5 = vmax.f32 %v2538_v4, %v2539_v54 }
 0x468   : > { %v6440_v50 = vmax.f32 %v2533_v49, %v2534_v30  ;;  %v2526_v32 = vmax.f32 %v2524_v31, %v2525_v38  ;;  %3938 = vlog2.f32 %v2660_v63 }
 0x469   : > { %v6442_v7 = vmax.f32 %v2519_v39, %v2520_v18  ;;  %3940 = vlog2.f32 %v2674_v37  ;;  %v2541_v53 = vrot.slane %v2540_v5, 1 }
 0x46a   : > { %v2557_v16 = vsub.f32 %v6425_v6, %v6440_v50  ;;  %v2527_v11 = vrot.slane %v2526_v32, 1 }
 0x46b   : > { %v2555_v52 = vsub.f32 %v2426_v46, %v6442_v7  ;;  %v6449_v48 = vmax.f32 %v2540_v5, %v2541_v53 }
 0x46c   : > { %v2587_v8 = vmul.f32 1.442695, %v2557_v16  ;;  %v6447_v57 = vmax.f32 %v2526_v32, %v2527_v11 }
 0x46d   : > { %v2583_v29 = vmul.f32 1.442695, %v2555_v52  ;;  %v2558_v3 = vsub.f32 %v6430_v55, %v6449_v48 }
 0x46e   : > { %3942 = vpow2.f32 %v2587_v8  ;;  %v2556_v62 = vsub.f32 %v2427_v13, %v6447_v57 }
 0x46f   : > { %3944 = vpow2.f32 %v2583_v29  ;;  %v3935_v19 = vpop.eup %3934  ;;  %v2589_v25 = vmul.f32 1.442695, %v2558_v3 }
 0x470   : > { %v2585_v2 = vmul.f32 1.442695, %v2556_v62  ;;  %v3937_v6 = vpop.eup %3936  ;;  %v2724_v12 = vmul.f32 0.6931472, %v3935_v19 }
 0x471   : > { %v2720_v46 = vmul.f32 0.6931472, %v3937_v6 }
 0x472   : > { %3946 = vpow2.f32 %v2585_v2  ;;  %v3939_v27 = vpop.eup %3938  ;;  %v6455_v36 = vadd.f32 %v2724_v12, %v6397_v9 }
 0x473   : > { %3948 = vpow2.f32 %v2589_v25  ;;  %v3941_v47 = vpop.eup %3940  ;;  %v6458_v35 = vadd.f32 %v2720_v46, %v6399_v34  ;;  %v2722_v13 = vmul.f32 0.6931472, %v3939_v27  ;;  %v2782_v27 = vlaneseq (!%p3289_p6) }
 0x474   : > { %v2726_v17 = vmul.f32 0.6931472, %v3941_v47  ;;  %v4121_v47 = vmov (!%p3289_p6), 1966171168  }
 0x475   : > { %v6461_v55 = vadd.f32 %v2722_v13, %v6403_v28  ;;  %v2775_v13 = vcombine.low (!%p3289_p6), %v6374_v1, %v6377_v22 }
 0x476   : > { %v6464_v42 = vadd.f32 %v2726_v17, %v6405_v51  ;;  %v2776_v17 = vcombine.low (!%p3289_p6), %v6371_v10, %v6380_v60 }
 0x478   : > { %v3943_v26 = vpop.eup %3942 }
 0x479   : > { %v3945_v45 = vpop.eup %3944  ;;  %v2689_v59 = vsel %vm2430_vm0, %v3943_v26, 0.0 }
 0x47a   : > { %v2675_v9 = vsel %vm2430_vm0, %v3945_v45, 0.0  ;;  %v2690_v23 = vrot.slane %v2689_v59, 4  ;;  %v2824_v45 = vcombine.low (!%p3289_p6), %v6458_v35, %v6461_v55 }
 0x47b   : > { %v2676_v56 = vrot.slane %v2675_v9, 4 }
 0x47c   : > { %v3947_v15 = vpop.eup %3946  ;;  %v2691_v0 = vadd.f32 %v2690_v23, %v2689_v59  ;;  %v2825_v59 = vcombine.low (!%p3289_p6), %v6455_v36, %v6464_v42 }
 0x47d   : > { %v3949_v34 = vpop.eup %3948  ;;  %v2677_v20 = vadd.f32 %v2676_v56, %v2675_v9  ;;  %v2682_v58 = vsel %vm2430_vm0, %v3947_v15, 0.0 }
 0x47e   : > { %v2692_v43 = vrot.slane %v2691_v0, 2  ;;  %v2683_v28 = vrot.slane %v2682_v58, 4  ;;  %v2696_v24 = vsel %vm2430_vm0, %v3949_v34, 0.0 }
 0x47f   : > { %v2678_v51 = vrot.slane %v2677_v20, 2  ;;  %v2697_v49 = vrot.slane %v2696_v24, 4 }
 0x480   : > { %v2693_v31 = vadd.f32 %v2692_v43, %v2691_v0  ;;  %v2684_v61 = vadd.f32 %v2683_v28, %v2682_v58 }
 0x481   : > { %v2679_v44 = vadd.f32 %v2678_v51, %v2677_v20  ;;  %v2698_v39 = vadd.f32 %v2697_v49, %v2696_v24 }
 0x482   : > { %v2694_v4 = vrot.slane %v2693_v31, 1  ;;  %v2685_v41 = vrot.slane %v2684_v61, 2 }
 0x483   : > { %v2680_v30 = vrot.slane %v2679_v44, 1  ;;  %v2699_v38 = vrot.slane %v2698_v39, 2 }
 0x484   : > { %v2695_v63 = vadd.f32 %v2694_v4, %v2693_v31  ;;  %v2686_v18 = vadd.f32 %v2685_v41, %v2684_v61  ;;  %v2757_v4 = vld [vmem:[#allocation2] sm:$0xff] (!%p3289_p6) }
 0x485   : > { %v2681_v54 = vadd.f32 %v2680_v30, %v2679_v44  ;;  %v2700_v37 = vadd.f32 %v2699_v38, %v2698_v39 }
 0x486   : > { %3950 = vlog2.f32 %v2695_v63  ;;  %v2687_v32 = vrot.slane %v2686_v18, 1  ;;  %v2758_v63 = vld [vmem:[#allocation2 + $0x8] sm:$0xff] (!%p3289_p6) }
 0x487   : > { %3952 = vlog2.f32 %v2681_v54  ;;  %v2701_v5 = vrot.slane %v2700_v37, 1 }
 0x488   : > { %v2688_v16 = vadd.f32 %v2687_v32, %v2686_v18 }
 0x489   : > { %v2702_v11 = vadd.f32 %v2701_v5, %v2700_v37 }
 0x48a   : > { %3954 = vlog2.f32 %v2688_v16 }
 0x48b   : > { %3956 = vlog2.f32 %v2702_v11 }
 0x490   : > { %v3951_v52 = vpop.eup %3950 }
 0x491   : > { %v3953_v53 = vpop.eup %3952  ;;  %v2732_v8 = vmul.f32 0.6931472, %v3951_v52 }
 0x492   : > { %v2728_v29 = vmul.f32 0.6931472, %v3953_v53  ;;  %2756 = sbr.rel (%p3289_p6) target bundleno = 1191 (0x4a7), region = 56 }
 0x493   : > { %v6471_v62 = vadd.f32 %v2732_v8, %v6440_v50  ;;  %v2780_v50 = vunpack.c.l.s4 (!%p3289_p6), %v4121_v47 }
 0x494   : > { %v3955_v3 = vpop.eup %3954  ;;  %v6474_v19 = vadd.f32 %v2728_v29, %v6442_v7  ;;  %v2783_v7 = vshrl.u32 (!%p3289_p6), %v2782_v27, 7 }
 0x495   : > { %v3957_v2 = vpop.eup %3956  ;;  %v2730_v6 = vmul.f32 0.6931472, %v3955_v3  ;;  %v2781_v26 = vunpack.c.0.s8 (!%p3289_p6), %v2780_v50 }
 0x496   : > { %v2734_v12 = vmul.f32 0.6931472, %v3957_v2 }
 0x497   : > { %v6477_v25 = vadd.f32 %v2730_v6, %v6447_v57  ;;  %v2777_v57 = vcombine.low (!%p3289_p6), %v6414_v21, %v6417_v40  ;;  %v2784_v56 = vsub.s32 (!%p3289_p6), %v2781_v26, %v2783_v7 }
 0x498   : > { %v6480_v46 = vadd.f32 %v2734_v12, %v6449_v48  ;;  %v2778_v48 = vcombine.low (!%p3289_p6), %v6411_v14, %v6421_v33 }
 0x499   : > { %v2826_v9 = vcombine.low %v6474_v19, %v6477_v25  ;;  %v2785_v15 = vrot.slane %v2775_v13, %v2784_v56  ;;  %v2792_v0 = vrot.slane %v2776_v17, %v2784_v56  ;;  %v2799_v34 = vrot.slane %v2777_v57, %v2784_v56 }
 0x49a   : > { %v2827_v23 = vcombine.low %v6471_v62, %v6480_v46  ;;  %v2806_v20 = vrot.slane %v2778_v48, %v2784_v56  ;;  %v2834_v58 = vrot.slane %v2824_v45, %v2784_v56  ;;  %v2841_v43 = vrot.slane %v2825_v59, %v2784_v56 }
 0x49b   : > { %v2848_v28 = vrot.slane %v2826_v9, %v2784_v56  ;;  %v2807_v51 = vcombine.low %v2785_v15, %v2792_v0 }
 0x49c   : > { %v2855_v24 = vrot.slane %v2827_v23, %v2784_v56  ;;  %v2808_v49 = vcombine.low %v2799_v34, %v2806_v20  ;;  %v2856_v31 = vcombine.low %v2834_v58, %v2841_v43 }
 0x49d   : > { %v2815_v44 = vrot.slane %v2807_v51, %v2784_v56 }
 0x49e   : > { %v2857_v61 = vcombine.low %v2848_v28, %v2855_v24  ;;  %v2822_v39 = vrot.slane %v2808_v49, %v2784_v56  ;;  %v2864_v41 = vrot.slane %v2856_v31, %v2784_v56 }
 0x4a0   : > { %v2871_v30 = vrot.slane %v2857_v61, %v2784_v56  ;;  %v2823_v38 = vcombine.low %v2815_v44, %v2822_v39 }
 0x4a2   : > { %v2872_v18 = vcombine.low %v2864_v41, %v2871_v30  ;;  %v2875_v54 = vadd.f32 %v2823_v38, %v2757_v4 }
 0x4a4   : > { %v2876_v37 = vadd.f32 %v2872_v18, %v2758_v63  ;;  %2877 = vst [vmem:[#allocation2] sm:$0xff] %v2875_v54 }
 0x4a6   : > { %2878 = vst [vmem:[#allocation2 + $0x8] sm:$0xff] %v2876_v37 }
 0x4a7 PF: > { %p3290_p7 = scmp.le.s32.totalorder %s6345_s21, 5000 }
 0x4a8   : > { %v2883_v32 = vlaneseq (!%p3290_p7)  ;;  %v4122_v5 = vmov (!%p3290_p7), 1966171168   ;;  %v2900_v52 = vstv (!%p3290_p7), %s3288_s5 }
 0x4a9   : > { %2882 = sbr.rel (%p3290_p7) target bundleno = 1229 (0x4cd), region = 60  ;;  %v2972_v16 = vunpack.c.l.s4 (!%p3290_p7), %v4122_v5 }
 0x4aa   : > { %v2884_v11 = vand.u32 (!%p3290_p7), 127, %v2883_v32  ;;  %v2975_v8 = vshrl.u32 (!%p3290_p7), %v2883_v32, 7 }
 0x4ab   : > { %v2973_v53 = vunpack.c.0.s8 (!%p3290_p7), %v2972_v16 }
 0x4ac   : > { %v2885_v29 = vadd.s32 (!%p3290_p7), 128, %v2884_v11  ;;  %v2886_v3 = vadd.s32 (!%p3290_p7), 256, %v2884_v11  ;;  %v2887_v2 = vadd.s32 (!%p3290_p7), 384, %v2884_v11  ;;  %v2888_v6 = vadd.s32 (!%p3290_p7), 512, %v2884_v11 }
 0x4ad   : > { %v2889_v12 = vadd.s32 (!%p3290_p7), 640, %v2884_v11  ;;  %v2890_v27 = vadd.s32 (!%p3290_p7), 768, %v2884_v11  ;;  %v2891_v47 = vadd.s32 (!%p3290_p7), 896, %v2884_v11  ;;  %v2901_v50 = vadd.s32 (!%p3290_p7), %v2900_v52, %v2884_v11 }
 0x4ae   : > { %v2902_v13 = vadd.s32 (!%p3290_p7), %v2900_v52, %v2885_v29  ;;  %v2903_v7 = vadd.s32 (!%p3290_p7), %v2900_v52, %v2886_v3  ;;  %v2904_v17 = vadd.s32 (!%p3290_p7), %v2900_v52, %v2887_v2  ;;  %v2905_v57 = vadd.s32 (!%p3290_p7), %v2900_v52, %v2888_v6 }
 0x4af   : > { %v2906_v48 = vadd.s32 (!%p3290_p7), %v2900_v52, %v2889_v12  ;;  %v2907_v26 = vadd.s32 (!%p3290_p7), %v2900_v52, %v2890_v27  ;;  %v2908_v45 = vadd.s32 (!%p3290_p7), %v2900_v52, %v2891_v47  ;;  %vm2917_vm1 = vcmp.lt.s32.totalorder (!%p3290_p7), %v2901_v50, 5000 }
 0x4b0   : > { %vm2918_vm2 = vcmp.lt.s32.totalorder %v2902_v13, 5000  ;;  %vm2919_vm3 = vcmp.lt.s32.totalorder %v2903_v7, 5000  ;;  %vm2920_vm4 = vcmp.lt.s32.totalorder %v2904_v17, 5000  ;;  %vm2921_vm5 = vcmp.lt.s32.totalorder %v2905_v57, 5000 }
 0x4b1   : > { %vm2922_vm6 = vcmp.lt.s32.totalorder %v2906_v48, 5000  ;;  %vm2923_vm7 = vcmp.lt.s32.totalorder %v2907_v26, 5000  ;;  %vm2924_vm8 = vcmp.lt.s32.totalorder %v2908_v45, 5000  ;;  %v2935_v59 = vsel %vm2917_vm1, %v6374_v1, 0.0 }
 0x4b2   : > { %v2936_v9 = vsel %vm2918_vm2, %v6377_v22, 0.0  ;;  %v2937_v23 = vsel %vm2919_vm3, %v6371_v10, 0.0  ;;  %v2938_v56 = vsel %vm2920_vm4, %v6380_v60, 0.0  ;;  %v2939_v15 = vsel %vm2921_vm5, %v6414_v21, 0.0 }
 0x4b3   : > { %v2940_v0 = vsel %vm2922_vm6, %v6417_v40, 0.0  ;;  %v2941_v34 = vsel %vm2923_vm7, %v6411_v14, 0.0  ;;  %v2942_v20 = vsel %vm2924_vm8, %v6421_v33, 0.0  ;;  %v2967_v58 = vcombine.low %v2935_v59, %v2936_v9 }
 0x4b4   : > { %v2968_v43 = vcombine.low %v2937_v23, %v2938_v56  ;;  %v2969_v28 = vcombine.low %v2939_v15, %v2940_v0  ;;  %v2970_v24 = vcombine.low %v2941_v34, %v2942_v20  ;;  %v2976_v51 = vsub.s32 %v2973_v53, %v2975_v8  ;;  %v2933_v53 = vld [vmem:[#allocation2] sm:$0xff] }
 0x4b5   : > { %v2892_v1 = vadd.s32 1024, %v2884_v11  ;;  %v2893_v49 = vadd.s32 1152, %v2884_v11  ;;  %v2894_v22 = vadd.s32 1280, %v2884_v11  ;;  %v2895_v31 = vadd.s32 1408, %v2884_v11 }
 0x4b6   : > { %v2977_v10 = vrot.slane %v2967_v58, %v2976_v51  ;;  %v2984_v61 = vrot.slane %v2968_v43, %v2976_v51  ;;  %v2991_v60 = vrot.slane %v2969_v28, %v2976_v51  ;;  %v2998_v44 = vrot.slane %v2970_v24, %v2976_v51 }
 0x4b7   : > { %v2896_v21 = vadd.s32 1536, %v2884_v11  ;;  %v2897_v39 = vadd.s32 1664, %v2884_v11  ;;  %v2898_v40 = vadd.s32 1792, %v2884_v11  ;;  %v2899_v4 = vadd.s32 1920, %v2884_v11 }
 0x4b8   : > { %v2999_v14 = vcombine.low %v2977_v10, %v2984_v61  ;;  %v3000_v41 = vcombine.low %v2991_v60, %v2998_v44  ;;  %v2909_v33 = vadd.s32 %v2900_v52, %v2892_v1  ;;  %v2910_v30 = vadd.s32 %v2900_v52, %v2893_v49 }
 0x4b9   : > { %v2911_v38 = vadd.s32 %v2900_v52, %v2894_v22  ;;  %v2912_v63 = vadd.s32 %v2900_v52, %v2895_v31  ;;  %v2913_v18 = vadd.s32 %v2900_v52, %v2896_v21  ;;  %v2914_v54 = vadd.s32 %v2900_v52, %v2897_v39 }
 0x4ba   : > { %v3007_v37 = vrot.slane %v2999_v14, %v2976_v51  ;;  %v3014_v32 = vrot.slane %v3000_v41, %v2976_v51  ;;  %v2915_v5 = vadd.s32 %v2900_v52, %v2898_v40  ;;  %v2916_v16 = vadd.s32 %v2900_v52, %v2899_v4 }
 0x4bb   : > { %vm2925_vm9 = vcmp.lt.s32.totalorder %v2909_v33, 5000  ;;  %vm2926_vm10 = vcmp.lt.s32.totalorder %v2910_v30, 5000  ;;  %vm2927_vm11 = vcmp.lt.s32.totalorder %v2911_v38, 5000  ;;  %vm2928_vm12 = vcmp.lt.s32.totalorder %v2912_v63, 5000 }
 0x4bc   : > { %v3015_v8 = vcombine.low %v3007_v37, %v3014_v32  ;;  %vm2929_vm13 = vcmp.lt.s32.totalorder %v2913_v18, 5000  ;;  %vm2930_vm14 = vcmp.lt.s32.totalorder %v2914_v54, 5000  ;;  %vm2931_vm15 = vcmp.lt.s32.totalorder %v2915_v5, 5000 }
 0x4bd   : > { %vm2932_vm0 = vcmp.lt.s32.totalorder %v2916_v16, 5000  ;;  %v2943_v11 = vsel %vm2925_vm9, %v6458_v35, 0.0  ;;  %v2944_v29 = vsel %vm2926_vm10, %v6461_v55, 0.0  ;;  %v2945_v3 = vsel %vm2927_vm11, %v6455_v36, 0.0 }
 0x4be   : > { %v3067_v2 = vadd.f32 %v3015_v8, %v2933_v53  ;;  %v2946_v6 = vsel %vm2928_vm12, %v6464_v42, 0.0  ;;  %v2947_v52 = vsel %vm2929_vm13, %v6474_v19, 0.0  ;;  %v2948_v12 = vsel %vm2930_vm14, %v6477_v25, 0.0  ;;  %v2934_v19 = vld [vmem:[#allocation2 + $0x8] sm:$0xff] }
 0x4bf   : > { %v2949_v27 = vsel %vm2931_vm15, %v6471_v62, 0.0  ;;  %v2950_v47 = vsel %vm2932_vm0, %v6480_v46, 0.0  ;;  %v3016_v50 = vcombine.low %v2943_v11, %v2944_v29  ;;  %v3017_v13 = vcombine.low %v2945_v3, %v2946_v6 }
 0x4c0   : > { %3069 = vst [vmem:[#allocation2] sm:$0xff] %v3067_v2  ;;  %v3018_v7 = vcombine.low %v2947_v52, %v2948_v12  ;;  %v3019_v35 = vcombine.low %v2949_v27, %v2950_v47 }
 0x4c1   : > { %v3026_v17 = vrot.slane %v3016_v50, %v2976_v51  ;;  %v3033_v55 = vrot.slane %v3017_v13, %v2976_v51 }
 0x4c2   : > { %v3040_v57 = vrot.slane %v3018_v7, %v2976_v51  ;;  %v3047_v36 = vrot.slane %v3019_v35, %v2976_v51 }
 0x4c3   : > { %v3048_v48 = vcombine.low %v3026_v17, %v3033_v55 }
 0x4c4   : > { %v3049_v26 = vcombine.low %v3040_v57, %v3047_v36 }
 0x4c5   : > { %v3056_v42 = vrot.slane %v3048_v48, %v2976_v51 }
 0x4c6   : > { %v3063_v45 = vrot.slane %v3049_v26, %v2976_v51 }
 0x4c8   : > { %v3064_v59 = vcombine.low %v3056_v42, %v3063_v45 }
 0x4ca   : > { %v3068_v25 = vadd.f32 %v3064_v59, %v2934_v19 }
 0x4cc   : > { %3070 = vst [vmem:[#allocation2 + $0x8] sm:$0xff] %v3068_v25 }
 0x4cd PF: > { %p3291_p11 = scmp.ne.s32.totalorder %s4168_s19, 2 }
 0x4ce   : > { %v3079_v62 = vlaneseq (!%p3291_p11)  ;;  %v3075_v9 = vld [vmem:[#allocation2] sm:$0xff] (!%p3291_p11)  ;;  %vm3159_vm1 = vcmask (!%p3291_p11), 1040384   ;;  %vm3193_vm2 = vcmask (!%p3291_p11), 0  }
 0x4cf   : > { %3074 = sbr.rel (%p3291_p11) target bundleno = 1412 (0x584), region = 64 }
 0x4d0   : > { %v3080_v46 = vshrl.u32 (!%p3291_p11), %v3079_v62, 7 }
 0x4d2   : > { %v3081_v23 = vsub.s32 (!%p3291_p11), 0, %v3080_v46  ;;  %v3085_v56 = vsub.s32 (!%p3291_p11), 1, %v3080_v46  ;;  %v3089_v15 = vsub.s32 (!%p3291_p11), 2, %v3080_v46  ;;  %v3093_v0 = vsub.s32 (!%p3291_p11), 3, %v3080_v46 }
 0x4d3   : > { %v3097_v43 = vsub.s32 (!%p3291_p11), 4, %v3080_v46  ;;  %v3101_v24 = vsub.s32 (!%p3291_p11), 5, %v3080_v46  ;;  %v3105_v51 = vsub.s32 (!%p3291_p11), 6, %v3080_v46  ;;  %v3109_v60 = vsub.s32 (!%p3291_p11), 7, %v3080_v46  ;;  %v3076_v4 = vld [vmem:[#allocation2 + $0x8] sm:$0xff] (!%p3291_p11) }
 0x4d4   : > { %v3082_v34 = vrot.slane (!%p3291_p11), %v3075_v9, %v3081_v23  ;;  %v3086_v20 = vrot.slane (!%p3291_p11), %v3075_v9, %v3085_v56  ;;  %v3090_v58 = vrot.slane (!%p3291_p11), %v3075_v9, %v3089_v15  ;;  %v3094_v28 = vrot.slane (!%p3291_p11), %v3075_v9, %v3093_v0 }
 0x4d5   : > { %v3098_v1 = vrot.slane (!%p3291_p11), %v3075_v9, %v3097_v43  ;;  %v3102_v61 = vrot.slane (!%p3291_p11), %v3075_v9, %v3101_v24  ;;  %v3106_v39 = vrot.slane (!%p3291_p11), %v3075_v9, %v3105_v51  ;;  %v3110_v41 = vrot.slane (!%p3291_p11), %v3075_v9, %v3109_v60 }
 0x4d6   : > { %v3160_v49 = vsel %vm3159_vm1, %v3082_v34, 0.0  ;;  %v3161_v22 = vsel %vm3159_vm1, %v3086_v20, 0.0  ;;  %v3163_v31 = vsel %vm3159_vm1, %v3090_v58, 0.0  ;;  %v3165_v44 = vsel %vm3159_vm1, %v3094_v28, 0.0 }
 0x4d7   : > { %v3162_v10 = vadd.f32 %v3161_v22, %v3160_v49  ;;  %v3167_v40 = vsel %vm3159_vm1, %v3098_v1, 0.0  ;;  %v3169_v33 = vsel %vm3159_vm1, %v3102_v61, 0.0  ;;  %v3114_v38 = vrot.slane %v3076_v4, %v3081_v23 }
 0x4d8   : > { %v3171_v63 = vsel %vm3159_vm1, %v3106_v39, 0.0  ;;  %v3118_v54 = vrot.slane %v3076_v4, %v3085_v56  ;;  %v3173_v37 = vsel %vm3159_vm1, %v3110_v41, 0.0  ;;  %v3122_v5 = vrot.slane %v3076_v4, %v3089_v15 }
 0x4d9   : > { %v3164_v21 = vadd.f32 %v3163_v31, %v3162_v10  ;;  %v3175_v16 = vsel %vm3159_vm1, %v3114_v38, 0.0  ;;  %v3126_v8 = vrot.slane %v3076_v4, %v3093_v0  ;;  %v3130_v3 = vrot.slane %v3076_v4, %v3097_v43 }
 0x4da   : > { %v3177_v11 = vsel %vm3159_vm1, %v3118_v54, 0.0  ;;  %v3179_v2 = vsel %vm3159_vm1, %v3122_v5, 0.0  ;;  %v3134_v52 = vrot.slane %v3076_v4, %v3101_v24  ;;  %v3138_v47 = vrot.slane %v3076_v4, %v3105_v51 }
 0x4db   : > { %v3166_v14 = vadd.f32 %v3165_v44, %v3164_v21  ;;  %v3181_v12 = vsel %vm3159_vm1, %v3126_v8, 0.0  ;;  %v3183_v50 = vsel %vm3159_vm1, %v3130_v3, 0.0  ;;  %v3142_v7 = vrot.slane %v3076_v4, %v3109_v60 }
 0x4dc   : > { %v3185_v35 = vsel %vm3159_vm1, %v3134_v52, 0.0  ;;  %v3187_v55 = vsel %vm3159_vm1, %v3138_v47, 0.0 }
 0x4dd   : > { %v3168_v30 = vadd.f32 %v3167_v40, %v3166_v14  ;;  %v3189_v36 = vsel %vm3159_vm1, %v3142_v7, 0.0 }
 0x4df   : > { %v3170_v18 = vadd.f32 %v3169_v33, %v3168_v30 }
 0x4e1   : > { %v3172_v32 = vadd.f32 %v3171_v63, %v3170_v18 }
 0x4e3   : > { %v3174_v53 = vadd.f32 %v3173_v37, %v3172_v32 }
 0x4e5   : > { %v3176_v29 = vadd.f32 %v3175_v16, %v3174_v53 }
 0x4e7   : > { %v3178_v6 = vadd.f32 %v3177_v11, %v3176_v29 }
 0x4e9   : > { %v3180_v27 = vadd.f32 %v3179_v2, %v3178_v6 }
 0x4eb   : > { %v3182_v13 = vadd.f32 %v3181_v12, %v3180_v27 }
 0x4ed   : > { %v3184_v17 = vadd.f32 %v3183_v50, %v3182_v13 }
 0x4ef   : > { %v3186_v57 = vadd.f32 %v3185_v35, %v3184_v17 }
 0x4f1   : > { %v3188_v48 = vadd.f32 %v3187_v55, %v3186_v57 }
 0x4f3   : > { %v3190_v26 = vadd.f32 %v3189_v36, %v3188_v48 }
 0x4f5   : > { %3191 = vadd.xlane.f32.xlu0 %v3190_v26 }
 0x582   : > { %v3192_v42 = vpop.xlane.xlu0 %3191 }
 0x583   : > { %3194 = vst.msk [vmem:[#allocation9] sm:$0x1] %vm3193_vm2, %v3192_v42 }
 0x584 PF: > { %p3849_p13 = scmp.eq.s32.totalorder %s4168_s19, 2  ;;  %s4123_s29 = smov [#allocation9]  }
 0x585   : > { %s3202_s6 = sshll.u32 %s4123_s29, 4  ;;  %s3203_s6 = int_to_ptr.vmem [resolvable:$true] %s3202_s6 }
 0x586   : > { %s4043_s8 = scalar_lea.vmem %s3203_s6, 16  ;;  %s4049_s28 = scalar_lea.vmem %s3203_s6, 32 }
 0x587   : > { %p4044_p5 = scmp.ne.s32.totalorder %s3203_s6, %s4043_s8  ;;  %p4050_p4 = scmp.lt.s32.totalorder %s3203_s6, %s3203_s6 }
 0x588   : > { %p4051_p10 = scmp.lt.s32.totalorder %s4049_s28, %s4043_s8 }
 0x589   : > { %p4045_p0 = pnand %p4044_p5, %p3849_p13 }
 0x58a   : > { %p4052_p9 = por %p4051_p10, %p4050_p4 }
 0x58b   : > { %p4046_p8 = pneg %p4045_p0 }
 0x58d   : > { %p4053_p1 = pnand %p4052_p9, %p4046_p8 }
 0x58f   : > { %4056 = shalt.err (!%p4053_p1)
}
 0x590   : > { %s4057_s10 = scalar_lea.hbm %s6575_s4, 16 }
 0x591   : > { %p4058_p2 = scmp.ne.s32.totalorder %s6575_s4, %s4057_s10  ;;  %p4063_p6 = scmp.lt.u32.totalorder %s4057_s10, %s6575_s4 }
 0x593   : > { %p4059_p12 = pnand %p4058_p2, %p3849_p13 }
 0x595   : > { %p4060_p3 = pneg %p4059_p12 }
 0x597   : > { %p4065_p7 = pnand %p4063_p6, %p4060_p3 }
 0x599   : > { %4068 = shalt.err (!%p4065_p7)
}
 0x59a   : > { %3835 = dma.vmem_to_hbm [thread:$0]  (%p3849_p13), %s3203_s6, 16, %s6575_s4, [#allocation5]  }
 0x59b   : > { %4094 = dma.done.wait (%p3849_p13), [#allocation5], 16  }
 0x59c   : > { %4096 = vsyncadd (%p3849_p13), [#allocation5], 4294967280 }
 0x59d PF: > { %p16_p11 = scmp.ge.s32.totalorder %s4171_s20, 5   ;;  %s7329_s15 = smov %s4103_s16 }
 0x59e   : > { %s7330_s16 = smov %s4107_s17  ;;  %s7331_s17 = smov %s4181_s23 }
 0x59f   : > { %s7332_s18 = smov %s4171_s20  ;;  %18 = sbr.rel (!%p16_p11) target bundleno = 5 (0x5), region = 97 }
 0x5a6   :  { %3215 = vsyncpa [#allocation4], 1 }
 0x5a7   :  { %3217 = vsyncpa [#allocation4 + $0x1], 1 }
 0x5a8   :  { %3218 = vsyncpa [#allocation7], 1 }
 0x5a9   :  { %3219 = vsyncpa [#allocation5], 1 }
 0x5aa   :  { %3221 = vsyncpa [#allocation5 + $0x1], 1 }

</bundles_post_ra>
